<compile_context>
chip_gen: v7x
topology: tpu7x:2x2x1
jax: 0.10.0
libtpu: 0.0.40
codegen_flags: <defaults>
</compile_context>

<pallas_src>
import functools

import jax
import jax.numpy as jnp
import numpy as np
from jax.experimental import pallas as pl
from jax.experimental.pallas import tpu as pltpu

_LANE = 128
_NQ = 8      # number of per-row partial sums
_GROUP = 8   # sub-chunks accumulated in registers before flushing to VMEM


# ----------------------------------------------------------------------------
# Pallas kernel: per-row, per-lane partial sums (no finalize).
# out_ref: (NQ, B, 128) f32, resident accumulator for this core's N-half.
# ----------------------------------------------------------------------------
def _criterion_partials_kernel(pm_ref, tgt_ref, pad_ref, ref_ref, rtgt_ref,
                               out_ref):
    @pl.when(pl.program_id(1) == 0)
    def _():
        out_ref[...] = jnp.zeros_like(out_ref)

    B = pm_ref.shape[0]
    tn = pm_ref.shape[1]
    nsub = tn // _LANE

    for g0 in range(0, nsub, _GROUP):
        # Register-resident per-lane partial sums, one (B, 128) f32 vreg each.
        parts = [jnp.zeros((B, _LANE), jnp.float32) for _ in range(_NQ)]

        for c in range(g0, min(g0 + _GROUP, nsub)):      # static, unrolled
            sl = slice(c * _LANE, (c + 1) * _LANE)
            x = pm_ref[:, sl].astype(jnp.float32)        # pred mask logits
            t = tgt_ref[:, sl].astype(jnp.float32)       # gt spmask (exact 0/1)
            pad = pad_ref[:, sl].astype(jnp.float32)     # 1 valid, 0 padding
            r = ref_ref[:, sl].astype(jnp.float32)       # ref-score logits
            rt = rtgt_ref[:, sl].astype(jnp.float32)     # ref targets (0/1)

            # Share exp(-|x|) between sigmoid and the BCE log1p term.
            e = jnp.exp(-jnp.abs(x))
            log1pe = jnp.log1p(e)
            inv = 1.0 / (1.0 + e)                 # exact divide (tolerance-safe)
            sig = jnp.where(x >= 0.0, inv, e * inv) * pad
            # sigmoid(x) >= 0.5  <=>  x >= 0 ; pad zeroes padded columns.
            x_bin = jnp.where(x >= 0.0, pad, 0.0)
            # sigmoid_cross_entropy_with_logits: max(x,0) - x*z + log1p(exp(-|x|))
            bce_mask = (jnp.maximum(x, 0.0) - x * t + log1pe) * pad

            er = jnp.exp(-jnp.abs(r))
            bce_ref = (jnp.maximum(r, 0.0) - r * rt + jnp.log1p(er)) * pad

            parts[0] = parts[0] + x_bin * t       # IoU intersection
            parts[1] = parts[1] + x_bin           # sum of binarized preds
            parts[2] = parts[2] + t               # target sum (== binarized)
            parts[3] = parts[3] + sig * t         # dice numerator part
            parts[4] = parts[4] + sig             # dice denominator: inputs
            parts[5] = parts[5] + bce_mask        # masked mask-BCE sum
            parts[6] = parts[6] + pad             # valid (non-pad) count
            parts[7] = parts[7] + bce_ref         # masked ref-BCE sum

        # Lane-dense, full-width accumulator update: one ld/add/st per quantity.
        for i in range(_NQ):
            out_ref[i] = out_ref[i] + parts[i]


# ----------------------------------------------------------------------------
# Wrapper
# ----------------------------------------------------------------------------
def _pick_tiling(n_padded, max_tn):
    chunks = n_padded // _LANE
    split = 2 if (chunks % 2 == 0 and chunks >= 2) else 1   # 2 TCs on v7x
    per_core = chunks // split
    tn_chunks = max(1, min(max_tn // _LANE, per_core))
    while per_core % tn_chunks:
        tn_chunks -= 1
    return split, tn_chunks * _LANE, per_core // tn_chunks


@functools.partial(jax.jit, static_argnames=("max_tn",))
def criterion_pallas(loss_weight, pred_scores, pred_masks, gt_masks, pad_masks,
                     ref_scores, ref_targets, *, max_tn=4096):
    """Returns (loss, loss_dict) matching Criterion.forward (loss_fun='bce').

    gt/pad/ref_target masks must be exact 0/1 (any dtype); logits any float
    dtype.  All math is done in f32 inside the kernel.
    """
    B, N = pred_masks.shape

    # Pad superpoints to a multiple of 128 lanes (zero pad -> zero contribution)
    # and batch to a multiple of 8 sublanes (extra rows sliced off afterwards).
    Np = ((N + _LANE - 1) // _LANE) * _LANE
    Bp = max(8, ((B + 7) // 8) * 8)

    def prep(a):
        a = jnp.asarray(a)
        if Bp != B or Np != N:
            a = jnp.pad(a, ((0, Bp - B), (0, Np - N)))
        return a

    pm, gt, pad, rs, rt = map(prep, (pred_masks, gt_masks, pad_masks,
                                     ref_scores, ref_targets))

    split, tn, J = _pick_tiling(Np, max_tn)

    col_spec = pl.BlockSpec((Bp, tn), lambda c, j: (0, c * J + j))

    partials = pl.pallas_call(
        _criterion_partials_kernel,
        out_shape=jax.ShapeDtypeStruct((split * _NQ, Bp, _LANE), jnp.float32),
        grid_spec=pltpu.PrefetchScalarGridSpec(
            num_scalar_prefetch=0,
            grid=(split, J),
            in_specs=[col_spec, col_spec, col_spec, col_spec, col_spec],
            out_specs=pl.BlockSpec((_NQ, Bp, _LANE), lambda c, j: (c, 0, 0)),
        ),
        compiler_params=pltpu.CompilerParams(
            dimension_semantics=("parallel", "arbitrary")),
    )(pm, gt, pad, rs, rt)

    # ---- finalize in plain JAX (tiny: NQ x B scalars) ----
    p = partials.reshape(split, _NQ, Bp, _LANE).sum(axis=(0, 3))[:, :B]  # (NQ,B)
    (inter, xb_sum, t_sum, dice_num, sig_sum,
     bce_sum, pad_sum, refbce_sum) = p

    union = t_sum + xb_sum - inter
    iou = inter / (union + 1e-6)                       # tgt_scores, (B,)

    mask_bce = jnp.mean(bce_sum / pad_sum)
    mask_dice = jnp.mean(1.0 - (2.0 * dice_num + 1.0) / (sig_sum + t_sum + 1.0))
    sample = jnp.mean(refbce_sum / pad_sum)

    scores = pred_scores.reshape(-1).astype(jnp.float32)
    smask = iou > 0.5
    cnt = jnp.sum(smask.astype(jnp.float32))
    sq = jnp.where(smask, (scores - iou) ** 2, 0.0)
    score_loss = jnp.where(cnt > 0.0,
                           jnp.sum(sq) / jnp.maximum(cnt, 1.0),
                           0.0)

    w = loss_weight.astype(jnp.float32)
    loss = (w[0] * mask_bce + w[1] * mask_dice
            + w[2] * score_loss + w[3] * sample)

    loss_out = {
        "mask_bce_loss": mask_bce,
        "mask_dice_loss": mask_dice,
        "score_loss": score_loss,
        "sample_loss": sample,
        "loss": loss,
    }
    return loss, loss_out


# ----------------------------------------------------------------------------
# Pure-JAX reference (mirrors the PyTorch module, loss_fun='bce')
# ----------------------------------------------------------------------------
def criterion_ref(loss_weight, pred_scores, pred_masks, gt_masks, pad_masks,
                  ref_scores, ref_targets):
    padf = pad_masks.astype(jnp.float32)
    t = gt_masks.astype(jnp.float32)
    x = pred_masks.astype(jnp.float32)
    r = ref_scores.astype(jnp.float32)
    rt = ref_targets.astype(jnp.float32)

    sig = jax.nn.sigmoid(x) * padf
    tb = (t > 0.5).astype(jnp.float32)
    xb = (sig >= 0.5).astype(jnp.float32)
    inter = (xb * tb).sum(-1)
    union = tb.sum(-1) + xb.sum(-1) - inter
    iou = inter / (union + 1e-6)
    smask = iou > 0.5
    cnt = smask.sum()
    sq = jnp.where(smask, (pred_scores - iou) ** 2, 0.0)
    score_loss = jnp.where(cnt > 0, sq.sum() / jnp.maximum(cnt, 1), 0.0)

    def bce(a, z):
        return jnp.maximum(a, 0.0) - a * z + jnp.log1p(jnp.exp(-jnp.abs(a)))

    mask_bce = ((bce(x, t) * padf).sum(-1) / padf.sum(-1)).mean()
    dice = 1.0 - (2.0 * (sig * t).sum(-1) + 1.0) / (sig.sum(-1) + t.sum(-1) + 1.0)
    mask_dice = dice.mean()
    sample = ((bce(r, rt) * padf).sum(-1) / padf.sum(-1)).mean()
    total = (loss_weight[0] * mask_bce + loss_weight[1] * mask_dice
             + loss_weight[2] * score_loss + loss_weight[3] * sample)
    return total, mask_bce, mask_dice, score_loss, sample


# ----------------------------------------------------------------------------
if __name__ == "__main__":
    key = jax.random.PRNGKey(0)
    B, N = 8, 8192  # batch, padded number of superpoints

    k1, k2, k3, k4, k5, k6 = jax.random.split(key, 6)

    # loss weights from the module __init__
    loss_weight = jnp.array([1.0, 1.0, 1.0, 1.0, 1.0], jnp.float32)

    # per-sample valid lengths -> pad mask (1 valid, 0 padding)
    lens = jax.random.randint(k1, (B,), minval=N // 2, maxval=N + 1)
    pad_f32 = (jnp.arange(N)[None, :] < lens[:, None]).astype(jnp.float32)

    pred_masks = jax.random.normal(k2, (B, N), jnp.float32) * 2.0   # logits
    ref_scores = jax.random.normal(k3, (B, N), jnp.float32) * 2.0   # logits
    gt_f32 = (jax.random.bernoulli(k4, 0.4, (B, N)).astype(jnp.float32)
              * pad_f32)                          # pad_sequence zeros padding
    rt_f32 = (jax.random.bernoulli(k5, 0.3, (B, N)).astype(jnp.float32)
              * pad_f32)
    pred_scores = jax.random.uniform(k6, (B,), jnp.float32)

    # Stream binary masks at bf16 (0/1 exact in bf16) to cut HBM traffic;
    # logits stay f32 to match the f32 PyTorch path.
    pad_masks = pad_f32.astype(jnp.bfloat16)
    gt_masks = gt_f32.astype(jnp.bfloat16)
    ref_targets = rt_f32.astype(jnp.bfloat16)

    # max_tn=2048 -> grid (2, 2): exercises both the core split and the
    # cross-step accumulation path.
    loss, loss_out = criterion_pallas(loss_weight, pred_scores, pred_masks,
                                      gt_masks, pad_masks, ref_scores,
                                      ref_targets, max_tn=2048)
    jax.block_until_ready(loss)

    ref_total, ref_bce, ref_dice, ref_score, ref_sample = criterion_ref(
        loss_weight, pred_scores, pred_masks, gt_f32, pad_f32,
        ref_scores, rt_f32)

    np.testing.assert_allclose(np.asarray(loss_out["mask_bce_loss"]),
                               np.asarray(ref_bce), rtol=1e-5, atol=1e-5)
    np.testing.assert_allclose(np.asarray(loss_out["mask_dice_loss"]),
                               np.asarray(ref_dice), rtol=1e-5, atol=1e-5)
    np.testing.assert_allclose(np.asarray(loss_out["score_loss"]),
                               np.asarray(ref_score), rtol=1e-5, atol=1e-5)
    np.testing.assert_allclose(np.asarray(loss_out["sample_loss"]),
                               np.asarray(ref_sample), rtol=1e-5, atol=1e-5)
    np.testing.assert_allclose(np.asarray(loss), np.asarray(ref_total),
                               rtol=1e-5, atol=1e-5)

    print("KERNEL_OK")
</pallas_src>

<mosaic_0001>
module attributes {stable_mosaic.version = 11 : i64} {
  func.func @_criterion_partials_kernel(%arg0: i32, %arg1: i32, %arg2: memref<8x2048xf32, #tpu.memory_space<vmem>>, %arg3: memref<8x2048xbf16, #tpu.memory_space<vmem>>, %arg4: memref<8x2048xbf16, #tpu.memory_space<vmem>>, %arg5: memref<8x2048xf32, #tpu.memory_space<vmem>>, %arg6: memref<8x2048xbf16, #tpu.memory_space<vmem>>, %arg7: memref<8x8x128xf32, #tpu.memory_space<vmem>>) attributes {dimension_semantics = [#tpu.dimension_semantics<parallel>, #tpu.dimension_semantics<arbitrary>], iteration_bounds = array<i64: 2, 2>, scalar_prefetch = 0 : i64, scratch_operands = 0 : i64, tpu.core_type = #tpu.core_type<tc>, window_params = [{transform_indices = @transform_0, window_bounds = array<i64: 8, 2048>}, {transform_indices = @transform_1, window_bounds = array<i64: 8, 2048>}, {transform_indices = @transform_2, window_bounds = array<i64: 8, 2048>}, {transform_indices = @transform_3, window_bounds = array<i64: 8, 2048>}, {transform_indices = @transform_4, window_bounds = array<i64: 8, 2048>}, {transform_indices = @transform_5, window_bounds = array<i64: 8, 8, 128>}]} {
    %c0_i32 = arith.constant 0 : i32
    %0 = arith.cmpi eq, %arg1, %c0_i32 : i32
    %1 = arith.extui %0 : i1 to i32
    %c0_i32_0 = arith.constant 0 : i32
    %2 = arith.cmpi ne, %1, %c0_i32_0 : i32
    scf.if %2 {
      %cst_393 = arith.constant 0.000000e+00 : f32
      %963 = vector.broadcast %cst_393 : f32 to vector<8x8x128xf32>
      %c0_394 = arith.constant 0 : index
      %c0_395 = arith.constant 0 : index
      %c0_396 = arith.constant 0 : index
      %964 = vector.load %arg7[%c0_394, %c0_395, %c0_396] : memref<8x8x128xf32, #tpu.memory_space<vmem>>, vector<8x8x128xf32>
      tpu.vector_store %arg7[%c0_394, %c0_395, %c0_396], %963 {strides = array<i32>} : memref<8x8x128xf32, #tpu.memory_space<vmem>>, vector<8x8x128xf32>,
    } else {
    }
    %cst = arith.constant 0.000000e+00 : f32
    %3 = vector.broadcast %cst : f32 to vector<8x128xf32>
    %cst_1 = arith.constant 0.000000e+00 : f32
    %4 = vector.broadcast %cst_1 : f32 to vector<8x128xf32>
    %cst_2 = arith.constant 0.000000e+00 : f32
    %5 = vector.broadcast %cst_2 : f32 to vector<8x128xf32>
    %cst_3 = arith.constant 0.000000e+00 : f32
    %6 = vector.broadcast %cst_3 : f32 to vector<8x128xf32>
    %cst_4 = arith.constant 0.000000e+00 : f32
    %7 = vector.broadcast %cst_4 : f32 to vector<8x128xf32>
    %cst_5 = arith.constant 0.000000e+00 : f32
    %8 = vector.broadcast %cst_5 : f32 to vector<8x128xf32>
    %cst_6 = arith.constant 0.000000e+00 : f32
    %9 = vector.broadcast %cst_6 : f32 to vector<8x128xf32>
    %cst_7 = arith.constant 0.000000e+00 : f32
    %10 = vector.broadcast %cst_7 : f32 to vector<8x128xf32>
    %c0 = arith.constant 0 : index
    %c0_8 = arith.constant 0 : index
    %11 = vector.load %arg2[%c0, %c0_8] : memref<8x2048xf32, #tpu.memory_space<vmem>>, vector<8x128xf32>
    %c0_9 = arith.constant 0 : index
    %c0_10 = arith.constant 0 : index
    %12 = vector.load %arg3[%c0_9, %c0_10] : memref<8x2048xbf16, #tpu.memory_space<vmem>>, vector<8x128xbf16>
    %13 = arith.extf %12 : vector<8x128xbf16> to vector<8x128xf32>
    %c0_11 = arith.constant 0 : index
    %c0_12 = arith.constant 0 : index
    %14 = vector.load %arg4[%c0_11, %c0_12] : memref<8x2048xbf16, #tpu.memory_space<vmem>>, vector<8x128xbf16>
    %15 = arith.extf %14 : vector<8x128xbf16> to vector<8x128xf32>
    %c0_13 = arith.constant 0 : index
    %c0_14 = arith.constant 0 : index
    %16 = vector.load %arg5[%c0_13, %c0_14] : memref<8x2048xf32, #tpu.memory_space<vmem>>, vector<8x128xf32>
    %c0_15 = arith.constant 0 : index
    %c0_16 = arith.constant 0 : index
    %17 = vector.load %arg6[%c0_15, %c0_16] : memref<8x2048xbf16, #tpu.memory_space<vmem>>, vector<8x128xbf16>
    %18 = arith.extf %17 : vector<8x128xbf16> to vector<8x128xf32>
    %19 = math.absf %11 : vector<8x128xf32>
    %cst_17 = arith.constant 0.000000e+00 : f32
    %20 = vector.broadcast %cst_17 : f32 to vector<8x128xf32>
    %21 = arith.subf %20, %19 : vector<8x128xf32>
    %22 = math.exp %21 : vector<8x128xf32>
    %23 = math.log1p %22 : vector<8x128xf32>
    %cst_18 = arith.constant 1.000000e+00 : f32
    %24 = vector.broadcast %cst_18 : f32 to vector<8x128xf32>
    %25 = arith.addf %24, %22 : vector<8x128xf32>
    %cst_19 = arith.constant 1.000000e+00 : f32
    %26 = vector.broadcast %cst_19 : f32 to vector<8x128xf32>
    %27 = arith.divf %26, %25 : vector<8x128xf32>
    %cst_20 = arith.constant 0.000000e+00 : f32
    %28 = vector.broadcast %cst_20 : f32 to vector<8x128xf32>
    %29 = arith.cmpf oge, %11, %28 : vector<8x128xf32>
    %30 = arith.mulf %22, %27 : vector<8x128xf32>
    %31 = arith.select %29, %27, %30 : vector<8x128xi1>, vector<8x128xf32>
    %32 = arith.mulf %31, %15 : vector<8x128xf32>
    %cst_21 = arith.constant 0.000000e+00 : f32
    %33 = vector.broadcast %cst_21 : f32 to vector<8x128xf32>
    %34 = arith.cmpf oge, %11, %33 : vector<8x128xf32>
    %cst_22 = arith.constant 0.000000e+00 : f32
    %35 = vector.broadcast %cst_22 : f32 to vector<8x128xf32>
    %36 = arith.select %34, %15, %35 : vector<8x128xi1>, vector<8x128xf32>
    %cst_23 = arith.constant 0.000000e+00 : f32
    %37 = vector.broadcast %cst_23 : f32 to vector<8x128xf32>
    %38 = arith.maximumf %11, %37 : vector<8x128xf32>
    %39 = arith.mulf %11, %13 : vector<8x128xf32>
    %40 = arith.subf %38, %39 : vector<8x128xf32>
    %41 = arith.addf %40, %23 : vector<8x128xf32>
    %42 = arith.mulf %41, %15 : vector<8x128xf32>
    %43 = math.absf %16 : vector<8x128xf32>
    %cst_24 = arith.constant 0.000000e+00 : f32
    %44 = vector.broadcast %cst_24 : f32 to vector<8x128xf32>
    %45 = arith.subf %44, %43 : vector<8x128xf32>
    %46 = math.exp %45 : vector<8x128xf32>
    %cst_25 = arith.constant 0.000000e+00 : f32
    %47 = vector.broadcast %cst_25 : f32 to vector<8x128xf32>
    %48 = arith.maximumf %16, %47 : vector<8x128xf32>
    %49 = arith.mulf %16, %18 : vector<8x128xf32>
    %50 = arith.subf %48, %49 : vector<8x128xf32>
    %51 = math.log1p %46 : vector<8x128xf32>
    %52 = arith.addf %50, %51 : vector<8x128xf32>
    %53 = arith.mulf %52, %15 : vector<8x128xf32>
    %54 = arith.mulf %36, %13 : vector<8x128xf32>
    %55 = arith.addf %3, %54 : vector<8x128xf32>
    %56 = arith.addf %4, %36 : vector<8x128xf32>
    %57 = arith.addf %5, %13 : vector<8x128xf32>
    %58 = arith.mulf %32, %13 : vector<8x128xf32>
    %59 = arith.addf %6, %58 : vector<8x128xf32>
    %60 = arith.addf %7, %32 : vector<8x128xf32>
    %61 = arith.addf %8, %42 : vector<8x128xf32>
    %62 = arith.addf %9, %15 : vector<8x128xf32>
    %63 = arith.addf %10, %53 : vector<8x128xf32>
    %c0_26 = arith.constant 0 : index
    %c128 = arith.constant 128 : index
    %64 = vector.load %arg2[%c0_26, %c128] : memref<8x2048xf32, #tpu.memory_space<vmem>>, vector<8x128xf32>
    %c0_27 = arith.constant 0 : index
    %c128_28 = arith.constant 128 : index
    %65 = vector.load %arg3[%c0_27, %c128_28] : memref<8x2048xbf16, #tpu.memory_space<vmem>>, vector<8x128xbf16>
    %66 = arith.extf %65 : vector<8x128xbf16> to vector<8x128xf32>
    %c0_29 = arith.constant 0 : index
    %c128_30 = arith.constant 128 : index
    %67 = vector.load %arg4[%c0_29, %c128_30] : memref<8x2048xbf16, #tpu.memory_space<vmem>>, vector<8x128xbf16>
    %68 = arith.extf %67 : vector<8x128xbf16> to vector<8x128xf32>
    %c0_31 = arith.constant 0 : index
    %c128_32 = arith.constant 128 : index
    %69 = vector.load %arg5[%c0_31, %c128_32] : memref<8x2048xf32, #tpu.memory_space<vmem>>, vector<8x128xf32>
    %c0_33 = arith.constant 0 : index
    %c128_34 = arith.constant 128 : index
    %70 = vector.load %arg6[%c0_33, %c128_34] : memref<8x2048xbf16, #tpu.memory_space<vmem>>, vector<8x128xbf16>
    %71 = arith.extf %70 : vector<8x128xbf16> to vector<8x128xf32>
    %72 = math.absf %64 : vector<8x128xf32>
    %cst_35 = arith.constant 0.000000e+00 : f32
    %73 = vector.broadcast %cst_35 : f32 to vector<8x128xf32>
    %74 = arith.subf %73, %72 : vector<8x128xf32>
    %75 = math.exp %74 : vector<8x128xf32>
    %76 = math.log1p %75 : vector<8x128xf32>
    %cst_36 = arith.constant 1.000000e+00 : f32
    %77 = vector.broadcast %cst_36 : f32 to vector<8x128xf32>
    %78 = arith.addf %77, %75 : vector<8x128xf32>
    %cst_37 = arith.constant 1.000000e+00 : f32
    %79 = vector.broadcast %cst_37 : f32 to vector<8x128xf32>
    %80 = arith.divf %79, %78 : vector<8x128xf32>
    %cst_38 = arith.constant 0.000000e+00 : f32
    %81 = vector.broadcast %cst_38 : f32 to vector<8x128xf32>
    %82 = arith.cmpf oge, %64, %81 : vector<8x128xf32>
    %83 = arith.mulf %75, %80 : vector<8x128xf32>
    %84 = arith.select %82, %80, %83 : vector<8x128xi1>, vector<8x128xf32>
    %85 = arith.mulf %84, %68 : vector<8x128xf32>
    %cst_39 = arith.constant 0.000000e+00 : f32
    %86 = vector.broadcast %cst_39 : f32 to vector<8x128xf32>
    %87 = arith.cmpf oge, %64, %86 : vector<8x128xf32>
    %cst_40 = arith.constant 0.000000e+00 : f32
    %88 = vector.broadcast %cst_40 : f32 to vector<8x128xf32>
    %89 = arith.select %87, %68, %88 : vector<8x128xi1>, vector<8x128xf32>
    %cst_41 = arith.constant 0.000000e+00 : f32
    %90 = vector.broadcast %cst_41 : f32 to vector<8x128xf32>
    %91 = arith.maximumf %64, %90 : vector<8x128xf32>
    %92 = arith.mulf %64, %66 : vector<8x128xf32>
    %93 = arith.subf %91, %92 : vector<8x128xf32>
    %94 = arith.addf %93, %76 : vector<8x128xf32>
    %95 = arith.mulf %94, %68 : vector<8x128xf32>
    %96 = math.absf %69 : vector<8x128xf32>
    %cst_42 = arith.constant 0.000000e+00 : f32
    %97 = vector.broadcast %cst_42 : f32 to vector<8x128xf32>
    %98 = arith.subf %97, %96 : vector<8x128xf32>
    %99 = math.exp %98 : vector<8x128xf32>
    %cst_43 = arith.constant 0.000000e+00 : f32
    %100 = vector.broadcast %cst_43 : f32 to vector<8x128xf32>
    %101 = arith.maximumf %69, %100 : vector<8x128xf32>
    %102 = arith.mulf %69, %71 : vector<8x128xf32>
    %103 = arith.subf %101, %102 : vector<8x128xf32>
    %104 = math.log1p %99 : vector<8x128xf32>
    %105 = arith.addf %103, %104 : vector<8x128xf32>
    %106 = arith.mulf %105, %68 : vector<8x128xf32>
    %107 = arith.mulf %89, %66 : vector<8x128xf32>
    %108 = arith.addf %55, %107 : vector<8x128xf32>
    %109 = arith.addf %56, %89 : vector<8x128xf32>
    %110 = arith.addf %57, %66 : vector<8x128xf32>
    %111 = arith.mulf %85, %66 : vector<8x128xf32>
    %112 = arith.addf %59, %111 : vector<8x128xf32>
    %113 = arith.addf %60, %85 : vector<8x128xf32>
    %114 = arith.addf %61, %95 : vector<8x128xf32>
    %115 = arith.addf %62, %68 : vector<8x128xf32>
    %116 = arith.addf %63, %106 : vector<8x128xf32>
    %c0_44 = arith.constant 0 : index
    %c256 = arith.constant 256 : index
    %117 = vector.load %arg2[%c0_44, %c256] : memref<8x2048xf32, #tpu.memory_space<vmem>>, vector<8x128xf32>
    %c0_45 = arith.constant 0 : index
    %c256_46 = arith.constant 256 : index
    %118 = vector.load %arg3[%c0_45, %c256_46] : memref<8x2048xbf16, #tpu.memory_space<vmem>>, vector<8x128xbf16>
    %119 = arith.extf %118 : vector<8x128xbf16> to vector<8x128xf32>
    %c0_47 = arith.constant 0 : index
    %c256_48 = arith.constant 256 : index
    %120 = vector.load %arg4[%c0_47, %c256_48] : memref<8x2048xbf16, #tpu.memory_space<vmem>>, vector<8x128xbf16>
    %121 = arith.extf %120 : vector<8x128xbf16> to vector<8x128xf32>
    %c0_49 = arith.constant 0 : index
    %c256_50 = arith.constant 256 : index
    %122 = vector.load %arg5[%c0_49, %c256_50] : memref<8x2048xf32, #tpu.memory_space<vmem>>, vector<8x128xf32>
    %c0_51 = arith.constant 0 : index
    %c256_52 = arith.constant 256 : index
    %123 = vector.load %arg6[%c0_51, %c256_52] : memref<8x2048xbf16, #tpu.memory_space<vmem>>, vector<8x128xbf16>
    %124 = arith.extf %123 : vector<8x128xbf16> to vector<8x128xf32>
    %125 = math.absf %117 : vector<8x128xf32>
    %cst_53 = arith.constant 0.000000e+00 : f32
    %126 = vector.broadcast %cst_53 : f32 to vector<8x128xf32>
    %127 = arith.subf %126, %125 : vector<8x128xf32>
    %128 = math.exp %127 : vector<8x128xf32>
    %129 = math.log1p %128 : vector<8x128xf32>
    %cst_54 = arith.constant 1.000000e+00 : f32
    %130 = vector.broadcast %cst_54 : f32 to vector<8x128xf32>
    %131 = arith.addf %130, %128 : vector<8x128xf32>
    %cst_55 = arith.constant 1.000000e+00 : f32
    %132 = vector.broadcast %cst_55 : f32 to vector<8x128xf32>
    %133 = arith.divf %132, %131 : vector<8x128xf32>
    %cst_56 = arith.constant 0.000000e+00 : f32
    %134 = vector.broadcast %cst_56 : f32 to vector<8x128xf32>
    %135 = arith.cmpf oge, %117, %134 : vector<8x128xf32>
    %136 = arith.mulf %128, %133 : vector<8x128xf32>
    %137 = arith.select %135, %133, %136 : vector<8x128xi1>, vector<8x128xf32>
    %138 = arith.mulf %137, %121 : vector<8x128xf32>
    %cst_57 = arith.constant 0.000000e+00 : f32
    %139 = vector.broadcast %cst_57 : f32 to vector<8x128xf32>
    %140 = arith.cmpf oge, %117, %139 : vector<8x128xf32>
    %cst_58 = arith.constant 0.000000e+00 : f32
    %141 = vector.broadcast %cst_58 : f32 to vector<8x128xf32>
    %142 = arith.select %140, %121, %141 : vector<8x128xi1>, vector<8x128xf32>
    %cst_59 = arith.constant 0.000000e+00 : f32
    %143 = vector.broadcast %cst_59 : f32 to vector<8x128xf32>
    %144 = arith.maximumf %117, %143 : vector<8x128xf32>
    %145 = arith.mulf %117, %119 : vector<8x128xf32>
    %146 = arith.subf %144, %145 : vector<8x128xf32>
    %147 = arith.addf %146, %129 : vector<8x128xf32>
    %148 = arith.mulf %147, %121 : vector<8x128xf32>
    %149 = math.absf %122 : vector<8x128xf32>
    %cst_60 = arith.constant 0.000000e+00 : f32
    %150 = vector.broadcast %cst_60 : f32 to vector<8x128xf32>
    %151 = arith.subf %150, %149 : vector<8x128xf32>
    %152 = math.exp %151 : vector<8x128xf32>
    %cst_61 = arith.constant 0.000000e+00 : f32
    %153 = vector.broadcast %cst_61 : f32 to vector<8x128xf32>
    %154 = arith.maximumf %122, %153 : vector<8x128xf32>
    %155 = arith.mulf %122, %124 : vector<8x128xf32>
    %156 = arith.subf %154, %155 : vector<8x128xf32>
    %157 = math.log1p %152 : vector<8x128xf32>
    %158 = arith.addf %156, %157 : vector<8x128xf32>
    %159 = arith.mulf %158, %121 : vector<8x128xf32>
    %160 = arith.mulf %142, %119 : vector<8x128xf32>
    %161 = arith.addf %108, %160 : vector<8x128xf32>
    %162 = arith.addf %109, %142 : vector<8x128xf32>
    %163 = arith.addf %110, %119 : vector<8x128xf32>
    %164 = arith.mulf %138, %119 : vector<8x128xf32>
    %165 = arith.addf %112, %164 : vector<8x128xf32>
    %166 = arith.addf %113, %138 : vector<8x128xf32>
    %167 = arith.addf %114, %148 : vector<8x128xf32>
    %168 = arith.addf %115, %121 : vector<8x128xf32>
    %169 = arith.addf %116, %159 : vector<8x128xf32>
    %c0_62 = arith.constant 0 : index
    %c384 = arith.constant 384 : index
    %170 = vector.load %arg2[%c0_62, %c384] : memref<8x2048xf32, #tpu.memory_space<vmem>>, vector<8x128xf32>
    %c0_63 = arith.constant 0 : index
    %c384_64 = arith.constant 384 : index
    %171 = vector.load %arg3[%c0_63, %c384_64] : memref<8x2048xbf16, #tpu.memory_space<vmem>>, vector<8x128xbf16>
    %172 = arith.extf %171 : vector<8x128xbf16> to vector<8x128xf32>
    %c0_65 = arith.constant 0 : index
    %c384_66 = arith.constant 384 : index
    %173 = vector.load %arg4[%c0_65, %c384_66] : memref<8x2048xbf16, #tpu.memory_space<vmem>>, vector<8x128xbf16>
    %174 = arith.extf %173 : vector<8x128xbf16> to vector<8x128xf32>
    %c0_67 = arith.constant 0 : index
    %c384_68 = arith.constant 384 : index
    %175 = vector.load %arg5[%c0_67, %c384_68] : memref<8x2048xf32, #tpu.memory_space<vmem>>, vector<8x128xf32>
    %c0_69 = arith.constant 0 : index
    %c384_70 = arith.constant 384 : index
    %176 = vector.load %arg6[%c0_69, %c384_70] : memref<8x2048xbf16, #tpu.memory_space<vmem>>, vector<8x128xbf16>
    %177 = arith.extf %176 : vector<8x128xbf16> to vector<8x128xf32>
    %178 = math.absf %170 : vector<8x128xf32>
    %cst_71 = arith.constant 0.000000e+00 : f32
    %179 = vector.broadcast %cst_71 : f32 to vector<8x128xf32>
    %180 = arith.subf %179, %178 : vector<8x128xf32>
    %181 = math.exp %180 : vector<8x128xf32>
    %182 = math.log1p %181 : vector<8x128xf32>
    %cst_72 = arith.constant 1.000000e+00 : f32
    %183 = vector.broadcast %cst_72 : f32 to vector<8x128xf32>
    %184 = arith.addf %183, %181 : vector<8x128xf32>
    %cst_73 = arith.constant 1.000000e+00 : f32
    %185 = vector.broadcast %cst_73 : f32 to vector<8x128xf32>
    %186 = arith.divf %185, %184 : vector<8x128xf32>
    %cst_74 = arith.constant 0.000000e+00 : f32
    %187 = vector.broadcast %cst_74 : f32 to vector<8x128xf32>
    %188 = arith.cmpf oge, %170, %187 : vector<8x128xf32>
    %189 = arith.mulf %181, %186 : vector<8x128xf32>
    %190 = arith.select %188, %186, %189 : vector<8x128xi1>, vector<8x128xf32>
    %191 = arith.mulf %190, %174 : vector<8x128xf32>
    %cst_75 = arith.constant 0.000000e+00 : f32
    %192 = vector.broadcast %cst_75 : f32 to vector<8x128xf32>
    %193 = arith.cmpf oge, %170, %192 : vector<8x128xf32>
    %cst_76 = arith.constant 0.000000e+00 : f32
    %194 = vector.broadcast %cst_76 : f32 to vector<8x128xf32>
    %195 = arith.select %193, %174, %194 : vector<8x128xi1>, vector<8x128xf32>
    %cst_77 = arith.constant 0.000000e+00 : f32
    %196 = vector.broadcast %cst_77 : f32 to vector<8x128xf32>
    %197 = arith.maximumf %170, %196 : vector<8x128xf32>
    %198 = arith.mulf %170, %172 : vector<8x128xf32>
    %199 = arith.subf %197, %198 : vector<8x128xf32>
    %200 = arith.addf %199, %182 : vector<8x128xf32>
    %201 = arith.mulf %200, %174 : vector<8x128xf32>
    %202 = math.absf %175 : vector<8x128xf32>
    %cst_78 = arith.constant 0.000000e+00 : f32
    %203 = vector.broadcast %cst_78 : f32 to vector<8x128xf32>
    %204 = arith.subf %203, %202 : vector<8x128xf32>
    %205 = math.exp %204 : vector<8x128xf32>
    %cst_79 = arith.constant 0.000000e+00 : f32
    %206 = vector.broadcast %cst_79 : f32 to vector<8x128xf32>
    %207 = arith.maximumf %175, %206 : vector<8x128xf32>
    %208 = arith.mulf %175, %177 : vector<8x128xf32>
    %209 = arith.subf %207, %208 : vector<8x128xf32>
    %210 = math.log1p %205 : vector<8x128xf32>
    %211 = arith.addf %209, %210 : vector<8x128xf32>
    %212 = arith.mulf %211, %174 : vector<8x128xf32>
    %213 = arith.mulf %195, %172 : vector<8x128xf32>
    %214 = arith.addf %161, %213 : vector<8x128xf32>
    %215 = arith.addf %162, %195 : vector<8x128xf32>
    %216 = arith.addf %163, %172 : vector<8x128xf32>
    %217 = arith.mulf %191, %172 : vector<8x128xf32>
    %218 = arith.addf %165, %217 : vector<8x128xf32>
    %219 = arith.addf %166, %191 : vector<8x128xf32>
    %220 = arith.addf %167, %201 : vector<8x128xf32>
    %221 = arith.addf %168, %174 : vector<8x128xf32>
    %222 = arith.addf %169, %212 : vector<8x128xf32>
    %c0_80 = arith.constant 0 : index
    %c512 = arith.constant 512 : index
    %223 = vector.load %arg2[%c0_80, %c512] : memref<8x2048xf32, #tpu.memory_space<vmem>>, vector<8x128xf32>
    %c0_81 = arith.constant 0 : index
    %c512_82 = arith.constant 512 : index
    %224 = vector.load %arg3[%c0_81, %c512_82] : memref<8x2048xbf16, #tpu.memory_space<vmem>>, vector<8x128xbf16>
    %225 = arith.extf %224 : vector<8x128xbf16> to vector<8x128xf32>
    %c0_83 = arith.constant 0 : index
    %c512_84 = arith.constant 512 : index
    %226 = vector.load %arg4[%c0_83, %c512_84] : memref<8x2048xbf16, #tpu.memory_space<vmem>>, vector<8x128xbf16>
    %227 = arith.extf %226 : vector<8x128xbf16> to vector<8x128xf32>
    %c0_85 = arith.constant 0 : index
    %c512_86 = arith.constant 512 : index
    %228 = vector.load %arg5[%c0_85, %c512_86] : memref<8x2048xf32, #tpu.memory_space<vmem>>, vector<8x128xf32>
    %c0_87 = arith.constant 0 : index
    %c512_88 = arith.constant 512 : index
    %229 = vector.load %arg6[%c0_87, %c512_88] : memref<8x2048xbf16, #tpu.memory_space<vmem>>, vector<8x128xbf16>
    %230 = arith.extf %229 : vector<8x128xbf16> to vector<8x128xf32>
    %231 = math.absf %223 : vector<8x128xf32>
    %cst_89 = arith.constant 0.000000e+00 : f32
    %232 = vector.broadcast %cst_89 : f32 to vector<8x128xf32>
    %233 = arith.subf %232, %231 : vector<8x128xf32>
    %234 = math.exp %233 : vector<8x128xf32>
    %235 = math.log1p %234 : vector<8x128xf32>
    %cst_90 = arith.constant 1.000000e+00 : f32
    %236 = vector.broadcast %cst_90 : f32 to vector<8x128xf32>
    %237 = arith.addf %236, %234 : vector<8x128xf32>
    %cst_91 = arith.constant 1.000000e+00 : f32
    %238 = vector.broadcast %cst_91 : f32 to vector<8x128xf32>
    %239 = arith.divf %238, %237 : vector<8x128xf32>
    %cst_92 = arith.constant 0.000000e+00 : f32
    %240 = vector.broadcast %cst_92 : f32 to vector<8x128xf32>
    %241 = arith.cmpf oge, %223, %240 : vector<8x128xf32>
    %242 = arith.mulf %234, %239 : vector<8x128xf32>
    %243 = arith.select %241, %239, %242 : vector<8x128xi1>, vector<8x128xf32>
    %244 = arith.mulf %243, %227 : vector<8x128xf32>
    %cst_93 = arith.constant 0.000000e+00 : f32
    %245 = vector.broadcast %cst_93 : f32 to vector<8x128xf32>
    %246 = arith.cmpf oge, %223, %245 : vector<8x128xf32>
    %cst_94 = arith.constant 0.000000e+00 : f32
    %247 = vector.broadcast %cst_94 : f32 to vector<8x128xf32>
    %248 = arith.select %246, %227, %247 : vector<8x128xi1>, vector<8x128xf32>
    %cst_95 = arith.constant 0.000000e+00 : f32
    %249 = vector.broadcast %cst_95 : f32 to vector<8x128xf32>
    %250 = arith.maximumf %223, %249 : vector<8x128xf32>
    %251 = arith.mulf %223, %225 : vector<8x128xf32>
    %252 = arith.subf %250, %251 : vector<8x128xf32>
    %253 = arith.addf %252, %235 : vector<8x128xf32>
    %254 = arith.mulf %253, %227 : vector<8x128xf32>
    %255 = math.absf %228 : vector<8x128xf32>
    %cst_96 = arith.constant 0.000000e+00 : f32
    %256 = vector.broadcast %cst_96 : f32 to vector<8x128xf32>
    %257 = arith.subf %256, %255 : vector<8x128xf32>
    %258 = math.exp %257 : vector<8x128xf32>
    %cst_97 = arith.constant 0.000000e+00 : f32
    %259 = vector.broadcast %cst_97 : f32 to vector<8x128xf32>
    %260 = arith.maximumf %228, %259 : vector<8x128xf32>
    %261 = arith.mulf %228, %230 : vector<8x128xf32>
    %262 = arith.subf %260, %261 : vector<8x128xf32>
    %263 = math.log1p %258 : vector<8x128xf32>
    %264 = arith.addf %262, %263 : vector<8x128xf32>
    %265 = arith.mulf %264, %227 : vector<8x128xf32>
    %266 = arith.mulf %248, %225 : vector<8x128xf32>
    %267 = arith.addf %214, %266 : vector<8x128xf32>
    %268 = arith.addf %215, %248 : vector<8x128xf32>
    %269 = arith.addf %216, %225 : vector<8x128xf32>
    %270 = arith.mulf %244, %225 : vector<8x128xf32>
    %271 = arith.addf %218, %270 : vector<8x128xf32>
    %272 = arith.addf %219, %244 : vector<8x128xf32>
    %273 = arith.addf %220, %254 : vector<8x128xf32>
    %274 = arith.addf %221, %227 : vector<8x128xf32>
    %275 = arith.addf %222, %265 : vector<8x128xf32>
    %c0_98 = arith.constant 0 : index
    %c640 = arith.constant 640 : index
    %276 = vector.load %arg2[%c0_98, %c640] : memref<8x2048xf32, #tpu.memory_space<vmem>>, vector<8x128xf32>
    %c0_99 = arith.constant 0 : index
    %c640_100 = arith.constant 640 : index
    %277 = vector.load %arg3[%c0_99, %c640_100] : memref<8x2048xbf16, #tpu.memory_space<vmem>>, vector<8x128xbf16>
    %278 = arith.extf %277 : vector<8x128xbf16> to vector<8x128xf32>
    %c0_101 = arith.constant 0 : index
    %c640_102 = arith.constant 640 : index
    %279 = vector.load %arg4[%c0_101, %c640_102] : memref<8x2048xbf16, #tpu.memory_space<vmem>>, vector<8x128xbf16>
    %280 = arith.extf %279 : vector<8x128xbf16> to vector<8x128xf32>
    %c0_103 = arith.constant 0 : index
    %c640_104 = arith.constant 640 : index
    %281 = vector.load %arg5[%c0_103, %c640_104] : memref<8x2048xf32, #tpu.memory_space<vmem>>, vector<8x128xf32>
    %c0_105 = arith.constant 0 : index
    %c640_106 = arith.constant 640 : index
    %282 = vector.load %arg6[%c0_105, %c640_106] : memref<8x2048xbf16, #tpu.memory_space<vmem>>, vector<8x128xbf16>
    %283 = arith.extf %282 : vector<8x128xbf16> to vector<8x128xf32>
    %284 = math.absf %276 : vector<8x128xf32>
    %cst_107 = arith.constant 0.000000e+00 : f32
    %285 = vector.broadcast %cst_107 : f32 to vector<8x128xf32>
    %286 = arith.subf %285, %284 : vector<8x128xf32>
    %287 = math.exp %286 : vector<8x128xf32>
    %288 = math.log1p %287 : vector<8x128xf32>
    %cst_108 = arith.constant 1.000000e+00 : f32
    %289 = vector.broadcast %cst_108 : f32 to vector<8x128xf32>
    %290 = arith.addf %289, %287 : vector<8x128xf32>
    %cst_109 = arith.constant 1.000000e+00 : f32
    %291 = vector.broadcast %cst_109 : f32 to vector<8x128xf32>
    %292 = arith.divf %291, %290 : vector<8x128xf32>
    %cst_110 = arith.constant 0.000000e+00 : f32
    %293 = vector.broadcast %cst_110 : f32 to vector<8x128xf32>
    %294 = arith.cmpf oge, %276, %293 : vector<8x128xf32>
    %295 = arith.mulf %287, %292 : vector<8x128xf32>
    %296 = arith.select %294, %292, %295 : vector<8x128xi1>, vector<8x128xf32>
    %297 = arith.mulf %296, %280 : vector<8x128xf32>
    %cst_111 = arith.constant 0.000000e+00 : f32
    %298 = vector.broadcast %cst_111 : f32 to vector<8x128xf32>
    %299 = arith.cmpf oge, %276, %298 : vector<8x128xf32>
    %cst_112 = arith.constant 0.000000e+00 : f32
    %300 = vector.broadcast %cst_112 : f32 to vector<8x128xf32>
    %301 = arith.select %299, %280, %300 : vector<8x128xi1>, vector<8x128xf32>
    %cst_113 = arith.constant 0.000000e+00 : f32
    %302 = vector.broadcast %cst_113 : f32 to vector<8x128xf32>
    %303 = arith.maximumf %276, %302 : vector<8x128xf32>
    %304 = arith.mulf %276, %278 : vector<8x128xf32>
    %305 = arith.subf %303, %304 : vector<8x128xf32>
    %306 = arith.addf %305, %288 : vector<8x128xf32>
    %307 = arith.mulf %306, %280 : vector<8x128xf32>
    %308 = math.absf %281 : vector<8x128xf32>
    %cst_114 = arith.constant 0.000000e+00 : f32
    %309 = vector.broadcast %cst_114 : f32 to vector<8x128xf32>
    %310 = arith.subf %309, %308 : vector<8x128xf32>
    %311 = math.exp %310 : vector<8x128xf32>
    %cst_115 = arith.constant 0.000000e+00 : f32
    %312 = vector.broadcast %cst_115 : f32 to vector<8x128xf32>
    %313 = arith.maximumf %281, %312 : vector<8x128xf32>
    %314 = arith.mulf %281, %283 : vector<8x128xf32>
    %315 = arith.subf %313, %314 : vector<8x128xf32>
    %316 = math.log1p %311 : vector<8x128xf32>
    %317 = arith.addf %315, %316 : vector<8x128xf32>
    %318 = arith.mulf %317, %280 : vector<8x128xf32>
    %319 = arith.mulf %301, %278 : vector<8x128xf32>
    %320 = arith.addf %267, %319 : vector<8x128xf32>
    %321 = arith.addf %268, %301 : vector<8x128xf32>
    %322 = arith.addf %269, %278 : vector<8x128xf32>
    %323 = arith.mulf %297, %278 : vector<8x128xf32>
    %324 = arith.addf %271, %323 : vector<8x128xf32>
    %325 = arith.addf %272, %297 : vector<8x128xf32>
    %326 = arith.addf %273, %307 : vector<8x128xf32>
    %327 = arith.addf %274, %280 : vector<8x128xf32>
    %328 = arith.addf %275, %318 : vector<8x128xf32>
    %c0_116 = arith.constant 0 : index
    %c768 = arith.constant 768 : index
    %329 = vector.load %arg2[%c0_116, %c768] : memref<8x2048xf32, #tpu.memory_space<vmem>>, vector<8x128xf32>
    %c0_117 = arith.constant 0 : index
    %c768_118 = arith.constant 768 : index
    %330 = vector.load %arg3[%c0_117, %c768_118] : memref<8x2048xbf16, #tpu.memory_space<vmem>>, vector<8x128xbf16>
    %331 = arith.extf %330 : vector<8x128xbf16> to vector<8x128xf32>
    %c0_119 = arith.constant 0 : index
    %c768_120 = arith.constant 768 : index
    %332 = vector.load %arg4[%c0_119, %c768_120] : memref<8x2048xbf16, #tpu.memory_space<vmem>>, vector<8x128xbf16>
    %333 = arith.extf %332 : vector<8x128xbf16> to vector<8x128xf32>
    %c0_121 = arith.constant 0 : index
    %c768_122 = arith.constant 768 : index
    %334 = vector.load %arg5[%c0_121, %c768_122] : memref<8x2048xf32, #tpu.memory_space<vmem>>, vector<8x128xf32>
    %c0_123 = arith.constant 0 : index
    %c768_124 = arith.constant 768 : index
    %335 = vector.load %arg6[%c0_123, %c768_124] : memref<8x2048xbf16, #tpu.memory_space<vmem>>, vector<8x128xbf16>
    %336 = arith.extf %335 : vector<8x128xbf16> to vector<8x128xf32>
    %337 = math.absf %329 : vector<8x128xf32>
    %cst_125 = arith.constant 0.000000e+00 : f32
    %338 = vector.broadcast %cst_125 : f32 to vector<8x128xf32>
    %339 = arith.subf %338, %337 : vector<8x128xf32>
    %340 = math.exp %339 : vector<8x128xf32>
    %341 = math.log1p %340 : vector<8x128xf32>
    %cst_126 = arith.constant 1.000000e+00 : f32
    %342 = vector.broadcast %cst_126 : f32 to vector<8x128xf32>
    %343 = arith.addf %342, %340 : vector<8x128xf32>
    %cst_127 = arith.constant 1.000000e+00 : f32
    %344 = vector.broadcast %cst_127 : f32 to vector<8x128xf32>
    %345 = arith.divf %344, %343 : vector<8x128xf32>
    %cst_128 = arith.constant 0.000000e+00 : f32
    %346 = vector.broadcast %cst_128 : f32 to vector<8x128xf32>
    %347 = arith.cmpf oge, %329, %346 : vector<8x128xf32>
    %348 = arith.mulf %340, %345 : vector<8x128xf32>
    %349 = arith.select %347, %345, %348 : vector<8x128xi1>, vector<8x128xf32>
    %350 = arith.mulf %349, %333 : vector<8x128xf32>
    %cst_129 = arith.constant 0.000000e+00 : f32
    %351 = vector.broadcast %cst_129 : f32 to vector<8x128xf32>
    %352 = arith.cmpf oge, %329, %351 : vector<8x128xf32>
    %cst_130 = arith.constant 0.000000e+00 : f32
    %353 = vector.broadcast %cst_130 : f32 to vector<8x128xf32>
    %354 = arith.select %352, %333, %353 : vector<8x128xi1>, vector<8x128xf32>
    %cst_131 = arith.constant 0.000000e+00 : f32
    %355 = vector.broadcast %cst_131 : f32 to vector<8x128xf32>
    %356 = arith.maximumf %329, %355 : vector<8x128xf32>
    %357 = arith.mulf %329, %331 : vector<8x128xf32>
    %358 = arith.subf %356, %357 : vector<8x128xf32>
    %359 = arith.addf %358, %341 : vector<8x128xf32>
    %360 = arith.mulf %359, %333 : vector<8x128xf32>
    %361 = math.absf %334 : vector<8x128xf32>
    %cst_132 = arith.constant 0.000000e+00 : f32
    %362 = vector.broadcast %cst_132 : f32 to vector<8x128xf32>
    %363 = arith.subf %362, %361 : vector<8x128xf32>
    %364 = math.exp %363 : vector<8x128xf32>
    %cst_133 = arith.constant 0.000000e+00 : f32
    %365 = vector.broadcast %cst_133 : f32 to vector<8x128xf32>
    %366 = arith.maximumf %334, %365 : vector<8x128xf32>
    %367 = arith.mulf %334, %336 : vector<8x128xf32>
    %368 = arith.subf %366, %367 : vector<8x128xf32>
    %369 = math.log1p %364 : vector<8x128xf32>
    %370 = arith.addf %368, %369 : vector<8x128xf32>
    %371 = arith.mulf %370, %333 : vector<8x128xf32>
    %372 = arith.mulf %354, %331 : vector<8x128xf32>
    %373 = arith.addf %320, %372 : vector<8x128xf32>
    %374 = arith.addf %321, %354 : vector<8x128xf32>
    %375 = arith.addf %322, %331 : vector<8x128xf32>
    %376 = arith.mulf %350, %331 : vector<8x128xf32>
    %377 = arith.addf %324, %376 : vector<8x128xf32>
    %378 = arith.addf %325, %350 : vector<8x128xf32>
    %379 = arith.addf %326, %360 : vector<8x128xf32>
    %380 = arith.addf %327, %333 : vector<8x128xf32>
    %381 = arith.addf %328, %371 : vector<8x128xf32>
    %c0_134 = arith.constant 0 : index
    %c896 = arith.constant 896 : index
    %382 = vector.load %arg2[%c0_134, %c896] : memref<8x2048xf32, #tpu.memory_space<vmem>>, vector<8x128xf32>
    %c0_135 = arith.constant 0 : index
    %c896_136 = arith.constant 896 : index
    %383 = vector.load %arg3[%c0_135, %c896_136] : memref<8x2048xbf16, #tpu.memory_space<vmem>>, vector<8x128xbf16>
    %384 = arith.extf %383 : vector<8x128xbf16> to vector<8x128xf32>
    %c0_137 = arith.constant 0 : index
    %c896_138 = arith.constant 896 : index
    %385 = vector.load %arg4[%c0_137, %c896_138] : memref<8x2048xbf16, #tpu.memory_space<vmem>>, vector<8x128xbf16>
    %386 = arith.extf %385 : vector<8x128xbf16> to vector<8x128xf32>
    %c0_139 = arith.constant 0 : index
    %c896_140 = arith.constant 896 : index
    %387 = vector.load %arg5[%c0_139, %c896_140] : memref<8x2048xf32, #tpu.memory_space<vmem>>, vector<8x128xf32>
    %c0_141 = arith.constant 0 : index
    %c896_142 = arith.constant 896 : index
    %388 = vector.load %arg6[%c0_141, %c896_142] : memref<8x2048xbf16, #tpu.memory_space<vmem>>, vector<8x128xbf16>
    %389 = arith.extf %388 : vector<8x128xbf16> to vector<8x128xf32>
    %390 = math.absf %382 : vector<8x128xf32>
    %cst_143 = arith.constant 0.000000e+00 : f32
    %391 = vector.broadcast %cst_143 : f32 to vector<8x128xf32>
    %392 = arith.subf %391, %390 : vector<8x128xf32>
    %393 = math.exp %392 : vector<8x128xf32>
    %394 = math.log1p %393 : vector<8x128xf32>
    %cst_144 = arith.constant 1.000000e+00 : f32
    %395 = vector.broadcast %cst_144 : f32 to vector<8x128xf32>
    %396 = arith.addf %395, %393 : vector<8x128xf32>
    %cst_145 = arith.constant 1.000000e+00 : f32
    %397 = vector.broadcast %cst_145 : f32 to vector<8x128xf32>
    %398 = arith.divf %397, %396 : vector<8x128xf32>
    %cst_146 = arith.constant 0.000000e+00 : f32
    %399 = vector.broadcast %cst_146 : f32 to vector<8x128xf32>
    %400 = arith.cmpf oge, %382, %399 : vector<8x128xf32>
    %401 = arith.mulf %393, %398 : vector<8x128xf32>
    %402 = arith.select %400, %398, %401 : vector<8x128xi1>, vector<8x128xf32>
    %403 = arith.mulf %402, %386 : vector<8x128xf32>
    %cst_147 = arith.constant 0.000000e+00 : f32
    %404 = vector.broadcast %cst_147 : f32 to vector<8x128xf32>
    %405 = arith.cmpf oge, %382, %404 : vector<8x128xf32>
    %cst_148 = arith.constant 0.000000e+00 : f32
    %406 = vector.broadcast %cst_148 : f32 to vector<8x128xf32>
    %407 = arith.select %405, %386, %406 : vector<8x128xi1>, vector<8x128xf32>
    %cst_149 = arith.constant 0.000000e+00 : f32
    %408 = vector.broadcast %cst_149 : f32 to vector<8x128xf32>
    %409 = arith.maximumf %382, %408 : vector<8x128xf32>
    %410 = arith.mulf %382, %384 : vector<8x128xf32>
    %411 = arith.subf %409, %410 : vector<8x128xf32>
    %412 = arith.addf %411, %394 : vector<8x128xf32>
    %413 = arith.mulf %412, %386 : vector<8x128xf32>
    %414 = math.absf %387 : vector<8x128xf32>
    %cst_150 = arith.constant 0.000000e+00 : f32
    %415 = vector.broadcast %cst_150 : f32 to vector<8x128xf32>
    %416 = arith.subf %415, %414 : vector<8x128xf32>
    %417 = math.exp %416 : vector<8x128xf32>
    %cst_151 = arith.constant 0.000000e+00 : f32
    %418 = vector.broadcast %cst_151 : f32 to vector<8x128xf32>
    %419 = arith.maximumf %387, %418 : vector<8x128xf32>
    %420 = arith.mulf %387, %389 : vector<8x128xf32>
    %421 = arith.subf %419, %420 : vector<8x128xf32>
    %422 = math.log1p %417 : vector<8x128xf32>
    %423 = arith.addf %421, %422 : vector<8x128xf32>
    %424 = arith.mulf %423, %386 : vector<8x128xf32>
    %425 = arith.mulf %407, %384 : vector<8x128xf32>
    %426 = arith.addf %373, %425 : vector<8x128xf32>
    %427 = arith.addf %374, %407 : vector<8x128xf32>
    %428 = arith.addf %375, %384 : vector<8x128xf32>
    %429 = arith.mulf %403, %384 : vector<8x128xf32>
    %430 = arith.addf %377, %429 : vector<8x128xf32>
    %431 = arith.addf %378, %403 : vector<8x128xf32>
    %432 = arith.addf %379, %413 : vector<8x128xf32>
    %433 = arith.addf %380, %386 : vector<8x128xf32>
    %434 = arith.addf %381, %424 : vector<8x128xf32>
    %c0_152 = arith.constant 0 : index
    %c0_153 = arith.constant 0 : index
    %c0_154 = arith.constant 0 : index
    %435 = vector.load %arg7[%c0_152, %c0_153, %c0_154] : memref<8x8x128xf32, #tpu.memory_space<vmem>>, vector<1x8x128xf32>
    %436 = vector.shape_cast %435 : vector<1x8x128xf32> to vector<8x128xf32>
    %437 = arith.addf %436, %426 : vector<8x128xf32>
    %c0_155 = arith.constant 0 : index
    %c0_156 = arith.constant 0 : index
    %c0_157 = arith.constant 0 : index
    %438 = vector.load %arg7[%c0_155, %c0_156, %c0_157] : memref<8x8x128xf32, #tpu.memory_space<vmem>>, vector<1x8x128xf32>
    %439 = vector.shape_cast %438 : vector<1x8x128xf32> to vector<8x128xf32>
    %440 = vector.shape_cast %437 : vector<8x128xf32> to vector<1x8x128xf32>
    tpu.vector_store %arg7[%c0_155, %c0_156, %c0_157], %440 {strides = array<i32>} : memref<8x8x128xf32, #tpu.memory_space<vmem>>, vector<1x8x128xf32>,
    %c1 = arith.constant 1 : index
    %c0_158 = arith.constant 0 : index
    %c0_159 = arith.constant 0 : index
    %441 = vector.load %arg7[%c1, %c0_158, %c0_159] : memref<8x8x128xf32, #tpu.memory_space<vmem>>, vector<1x8x128xf32>
    %442 = vector.shape_cast %441 : vector<1x8x128xf32> to vector<8x128xf32>
    %443 = arith.addf %442, %427 : vector<8x128xf32>
    %c1_160 = arith.constant 1 : index
    %c0_161 = arith.constant 0 : index
    %c0_162 = arith.constant 0 : index
    %444 = vector.load %arg7[%c1_160, %c0_161, %c0_162] : memref<8x8x128xf32, #tpu.memory_space<vmem>>, vector<1x8x128xf32>
    %445 = vector.shape_cast %444 : vector<1x8x128xf32> to vector<8x128xf32>
    %446 = vector.shape_cast %443 : vector<8x128xf32> to vector<1x8x128xf32>
    tpu.vector_store %arg7[%c1_160, %c0_161, %c0_162], %446 {strides = array<i32>} : memref<8x8x128xf32, #tpu.memory_space<vmem>>, vector<1x8x128xf32>,
    %c2 = arith.constant 2 : index
    %c0_163 = arith.constant 0 : index
    %c0_164 = arith.constant 0 : index
    %447 = vector.load %arg7[%c2, %c0_163, %c0_164] : memref<8x8x128xf32, #tpu.memory_space<vmem>>, vector<1x8x128xf32>
    %448 = vector.shape_cast %447 : vector<1x8x128xf32> to vector<8x128xf32>
    %449 = arith.addf %448, %428 : vector<8x128xf32>
    %c2_165 = arith.constant 2 : index
    %c0_166 = arith.constant 0 : index
    %c0_167 = arith.constant 0 : index
    %450 = vector.load %arg7[%c2_165, %c0_166, %c0_167] : memref<8x8x128xf32, #tpu.memory_space<vmem>>, vector<1x8x128xf32>
    %451 = vector.shape_cast %450 : vector<1x8x128xf32> to vector<8x128xf32>
    %452 = vector.shape_cast %449 : vector<8x128xf32> to vector<1x8x128xf32>
    tpu.vector_store %arg7[%c2_165, %c0_166, %c0_167], %452 {strides = array<i32>} : memref<8x8x128xf32, #tpu.memory_space<vmem>>, vector<1x8x128xf32>,
    %c3 = arith.constant 3 : index
    %c0_168 = arith.constant 0 : index
    %c0_169 = arith.constant 0 : index
    %453 = vector.load %arg7[%c3, %c0_168, %c0_169] : memref<8x8x128xf32, #tpu.memory_space<vmem>>, vector<1x8x128xf32>
    %454 = vector.shape_cast %453 : vector<1x8x128xf32> to vector<8x128xf32>
    %455 = arith.addf %454, %430 : vector<8x128xf32>
    %c3_170 = arith.constant 3 : index
    %c0_171 = arith.constant 0 : index
    %c0_172 = arith.constant 0 : index
    %456 = vector.load %arg7[%c3_170, %c0_171, %c0_172] : memref<8x8x128xf32, #tpu.memory_space<vmem>>, vector<1x8x128xf32>
    %457 = vector.shape_cast %456 : vector<1x8x128xf32> to vector<8x128xf32>
    %458 = vector.shape_cast %455 : vector<8x128xf32> to vector<1x8x128xf32>
    tpu.vector_store %arg7[%c3_170, %c0_171, %c0_172], %458 {strides = array<i32>} : memref<8x8x128xf32, #tpu.memory_space<vmem>>, vector<1x8x128xf32>,
    %c4 = arith.constant 4 : index
    %c0_173 = arith.constant 0 : index
    %c0_174 = arith.constant 0 : index
    %459 = vector.load %arg7[%c4, %c0_173, %c0_174] : memref<8x8x128xf32, #tpu.memory_space<vmem>>, vector<1x8x128xf32>
    %460 = vector.shape_cast %459 : vector<1x8x128xf32> to vector<8x128xf32>
    %461 = arith.addf %460, %431 : vector<8x128xf32>
    %c4_175 = arith.constant 4 : index
    %c0_176 = arith.constant 0 : index
    %c0_177 = arith.constant 0 : index
    %462 = vector.load %arg7[%c4_175, %c0_176, %c0_177] : memref<8x8x128xf32, #tpu.memory_space<vmem>>, vector<1x8x128xf32>
    %463 = vector.shape_cast %462 : vector<1x8x128xf32> to vector<8x128xf32>
    %464 = vector.shape_cast %461 : vector<8x128xf32> to vector<1x8x128xf32>
    tpu.vector_store %arg7[%c4_175, %c0_176, %c0_177], %464 {strides = array<i32>} : memref<8x8x128xf32, #tpu.memory_space<vmem>>, vector<1x8x128xf32>,
    %c5 = arith.constant 5 : index
    %c0_178 = arith.constant 0 : index
    %c0_179 = arith.constant 0 : index
    %465 = vector.load %arg7[%c5, %c0_178, %c0_179] : memref<8x8x128xf32, #tpu.memory_space<vmem>>, vector<1x8x128xf32>
    %466 = vector.shape_cast %465 : vector<1x8x128xf32> to vector<8x128xf32>
    %467 = arith.addf %466, %432 : vector<8x128xf32>
    %c5_180 = arith.constant 5 : index
    %c0_181 = arith.constant 0 : index
    %c0_182 = arith.constant 0 : index
    %468 = vector.load %arg7[%c5_180, %c0_181, %c0_182] : memref<8x8x128xf32, #tpu.memory_space<vmem>>, vector<1x8x128xf32>
    %469 = vector.shape_cast %468 : vector<1x8x128xf32> to vector<8x128xf32>
    %470 = vector.shape_cast %467 : vector<8x128xf32> to vector<1x8x128xf32>
    tpu.vector_store %arg7[%c5_180, %c0_181, %c0_182], %470 {strides = array<i32>} : memref<8x8x128xf32, #tpu.memory_space<vmem>>, vector<1x8x128xf32>,
    %c6 = arith.constant 6 : index
    %c0_183 = arith.constant 0 : index
    %c0_184 = arith.constant 0 : index
    %471 = vector.load %arg7[%c6, %c0_183, %c0_184] : memref<8x8x128xf32, #tpu.memory_space<vmem>>, vector<1x8x128xf32>
    %472 = vector.shape_cast %471 : vector<1x8x128xf32> to vector<8x128xf32>
    %473 = arith.addf %472, %433 : vector<8x128xf32>
    %c6_185 = arith.constant 6 : index
    %c0_186 = arith.constant 0 : index
    %c0_187 = arith.constant 0 : index
    %474 = vector.load %arg7[%c6_185, %c0_186, %c0_187] : memref<8x8x128xf32, #tpu.memory_space<vmem>>, vector<1x8x128xf32>
    %475 = vector.shape_cast %474 : vector<1x8x128xf32> to vector<8x128xf32>
    %476 = vector.shape_cast %473 : vector<8x128xf32> to vector<1x8x128xf32>
    tpu.vector_store %arg7[%c6_185, %c0_186, %c0_187], %476 {strides = array<i32>} : memref<8x8x128xf32, #tpu.memory_space<vmem>>, vector<1x8x128xf32>,
    %c7 = arith.constant 7 : index
    %c0_188 = arith.constant 0 : index
    %c0_189 = arith.constant 0 : index
    %477 = vector.load %arg7[%c7, %c0_188, %c0_189] : memref<8x8x128xf32, #tpu.memory_space<vmem>>, vector<1x8x128xf32>
    %478 = vector.shape_cast %477 : vector<1x8x128xf32> to vector<8x128xf32>
    %479 = arith.addf %478, %434 : vector<8x128xf32>
    %c7_190 = arith.constant 7 : index
    %c0_191 = arith.constant 0 : index
    %c0_192 = arith.constant 0 : index
    %480 = vector.load %arg7[%c7_190, %c0_191, %c0_192] : memref<8x8x128xf32, #tpu.memory_space<vmem>>, vector<1x8x128xf32>
    %481 = vector.shape_cast %480 : vector<1x8x128xf32> to vector<8x128xf32>
    %482 = vector.shape_cast %479 : vector<8x128xf32> to vector<1x8x128xf32>
    tpu.vector_store %arg7[%c7_190, %c0_191, %c0_192], %482 {strides = array<i32>} : memref<8x8x128xf32, #tpu.memory_space<vmem>>, vector<1x8x128xf32>,
    %cst_193 = arith.constant 0.000000e+00 : f32
    %483 = vector.broadcast %cst_193 : f32 to vector<8x128xf32>
    %cst_194 = arith.constant 0.000000e+00 : f32
    %484 = vector.broadcast %cst_194 : f32 to vector<8x128xf32>
    %cst_195 = arith.constant 0.000000e+00 : f32
    %485 = vector.broadcast %cst_195 : f32 to vector<8x128xf32>
    %cst_196 = arith.constant 0.000000e+00 : f32
    %486 = vector.broadcast %cst_196 : f32 to vector<8x128xf32>
    %cst_197 = arith.constant 0.000000e+00 : f32
    %487 = vector.broadcast %cst_197 : f32 to vector<8x128xf32>
    %cst_198 = arith.constant 0.000000e+00 : f32
    %488 = vector.broadcast %cst_198 : f32 to vector<8x128xf32>
    %cst_199 = arith.constant 0.000000e+00 : f32
    %489 = vector.broadcast %cst_199 : f32 to vector<8x128xf32>
    %cst_200 = arith.constant 0.000000e+00 : f32
    %490 = vector.broadcast %cst_200 : f32 to vector<8x128xf32>
    %c0_201 = arith.constant 0 : index
    %c1024 = arith.constant 1024 : index
    %491 = vector.load %arg2[%c0_201, %c1024] : memref<8x2048xf32, #tpu.memory_space<vmem>>, vector<8x128xf32>
    %c0_202 = arith.constant 0 : index
    %c1024_203 = arith.constant 1024 : index
    %492 = vector.load %arg3[%c0_202, %c1024_203] : memref<8x2048xbf16, #tpu.memory_space<vmem>>, vector<8x128xbf16>
    %493 = arith.extf %492 : vector<8x128xbf16> to vector<8x128xf32>
    %c0_204 = arith.constant 0 : index
    %c1024_205 = arith.constant 1024 : index
    %494 = vector.load %arg4[%c0_204, %c1024_205] : memref<8x2048xbf16, #tpu.memory_space<vmem>>, vector<8x128xbf16>
    %495 = arith.extf %494 : vector<8x128xbf16> to vector<8x128xf32>
    %c0_206 = arith.constant 0 : index
    %c1024_207 = arith.constant 1024 : index
    %496 = vector.load %arg5[%c0_206, %c1024_207] : memref<8x2048xf32, #tpu.memory_space<vmem>>, vector<8x128xf32>
    %c0_208 = arith.constant 0 : index
    %c1024_209 = arith.constant 1024 : index
    %497 = vector.load %arg6[%c0_208, %c1024_209] : memref<8x2048xbf16, #tpu.memory_space<vmem>>, vector<8x128xbf16>
    %498 = arith.extf %497 : vector<8x128xbf16> to vector<8x128xf32>
    %499 = math.absf %491 : vector<8x128xf32>
    %cst_210 = arith.constant 0.000000e+00 : f32
    %500 = vector.broadcast %cst_210 : f32 to vector<8x128xf32>
    %501 = arith.subf %500, %499 : vector<8x128xf32>
    %502 = math.exp %501 : vector<8x128xf32>
    %503 = math.log1p %502 : vector<8x128xf32>
    %cst_211 = arith.constant 1.000000e+00 : f32
    %504 = vector.broadcast %cst_211 : f32 to vector<8x128xf32>
    %505 = arith.addf %504, %502 : vector<8x128xf32>
    %cst_212 = arith.constant 1.000000e+00 : f32
    %506 = vector.broadcast %cst_212 : f32 to vector<8x128xf32>
    %507 = arith.divf %506, %505 : vector<8x128xf32>
    %cst_213 = arith.constant 0.000000e+00 : f32
    %508 = vector.broadcast %cst_213 : f32 to vector<8x128xf32>
    %509 = arith.cmpf oge, %491, %508 : vector<8x128xf32>
    %510 = arith.mulf %502, %507 : vector<8x128xf32>
    %511 = arith.select %509, %507, %510 : vector<8x128xi1>, vector<8x128xf32>
    %512 = arith.mulf %511, %495 : vector<8x128xf32>
    %cst_214 = arith.constant 0.000000e+00 : f32
    %513 = vector.broadcast %cst_214 : f32 to vector<8x128xf32>
    %514 = arith.cmpf oge, %491, %513 : vector<8x128xf32>
    %cst_215 = arith.constant 0.000000e+00 : f32
    %515 = vector.broadcast %cst_215 : f32 to vector<8x128xf32>
    %516 = arith.select %514, %495, %515 : vector<8x128xi1>, vector<8x128xf32>
    %cst_216 = arith.constant 0.000000e+00 : f32
    %517 = vector.broadcast %cst_216 : f32 to vector<8x128xf32>
    %518 = arith.maximumf %491, %517 : vector<8x128xf32>
    %519 = arith.mulf %491, %493 : vector<8x128xf32>
    %520 = arith.subf %518, %519 : vector<8x128xf32>
    %521 = arith.addf %520, %503 : vector<8x128xf32>
    %522 = arith.mulf %521, %495 : vector<8x128xf32>
    %523 = math.absf %496 : vector<8x128xf32>
    %cst_217 = arith.constant 0.000000e+00 : f32
    %524 = vector.broadcast %cst_217 : f32 to vector<8x128xf32>
    %525 = arith.subf %524, %523 : vector<8x128xf32>
    %526 = math.exp %525 : vector<8x128xf32>
    %cst_218 = arith.constant 0.000000e+00 : f32
    %527 = vector.broadcast %cst_218 : f32 to vector<8x128xf32>
    %528 = arith.maximumf %496, %527 : vector<8x128xf32>
    %529 = arith.mulf %496, %498 : vector<8x128xf32>
    %530 = arith.subf %528, %529 : vector<8x128xf32>
    %531 = math.log1p %526 : vector<8x128xf32>
    %532 = arith.addf %530, %531 : vector<8x128xf32>
    %533 = arith.mulf %532, %495 : vector<8x128xf32>
    %534 = arith.mulf %516, %493 : vector<8x128xf32>
    %535 = arith.addf %483, %534 : vector<8x128xf32>
    %536 = arith.addf %484, %516 : vector<8x128xf32>
    %537 = arith.addf %485, %493 : vector<8x128xf32>
    %538 = arith.mulf %512, %493 : vector<8x128xf32>
    %539 = arith.addf %486, %538 : vector<8x128xf32>
    %540 = arith.addf %487, %512 : vector<8x128xf32>
    %541 = arith.addf %488, %522 : vector<8x128xf32>
    %542 = arith.addf %489, %495 : vector<8x128xf32>
    %543 = arith.addf %490, %533 : vector<8x128xf32>
    %c0_219 = arith.constant 0 : index
    %c1152 = arith.constant 1152 : index
    %544 = vector.load %arg2[%c0_219, %c1152] : memref<8x2048xf32, #tpu.memory_space<vmem>>, vector<8x128xf32>
    %c0_220 = arith.constant 0 : index
    %c1152_221 = arith.constant 1152 : index
    %545 = vector.load %arg3[%c0_220, %c1152_221] : memref<8x2048xbf16, #tpu.memory_space<vmem>>, vector<8x128xbf16>
    %546 = arith.extf %545 : vector<8x128xbf16> to vector<8x128xf32>
    %c0_222 = arith.constant 0 : index
    %c1152_223 = arith.constant 1152 : index
    %547 = vector.load %arg4[%c0_222, %c1152_223] : memref<8x2048xbf16, #tpu.memory_space<vmem>>, vector<8x128xbf16>
    %548 = arith.extf %547 : vector<8x128xbf16> to vector<8x128xf32>
    %c0_224 = arith.constant 0 : index
    %c1152_225 = arith.constant 1152 : index
    %549 = vector.load %arg5[%c0_224, %c1152_225] : memref<8x2048xf32, #tpu.memory_space<vmem>>, vector<8x128xf32>
    %c0_226 = arith.constant 0 : index
    %c1152_227 = arith.constant 1152 : index
    %550 = vector.load %arg6[%c0_226, %c1152_227] : memref<8x2048xbf16, #tpu.memory_space<vmem>>, vector<8x128xbf16>
    %551 = arith.extf %550 : vector<8x128xbf16> to vector<8x128xf32>
    %552 = math.absf %544 : vector<8x128xf32>
    %cst_228 = arith.constant 0.000000e+00 : f32
    %553 = vector.broadcast %cst_228 : f32 to vector<8x128xf32>
    %554 = arith.subf %553, %552 : vector<8x128xf32>
    %555 = math.exp %554 : vector<8x128xf32>
    %556 = math.log1p %555 : vector<8x128xf32>
    %cst_229 = arith.constant 1.000000e+00 : f32
    %557 = vector.broadcast %cst_229 : f32 to vector<8x128xf32>
    %558 = arith.addf %557, %555 : vector<8x128xf32>
    %cst_230 = arith.constant 1.000000e+00 : f32
    %559 = vector.broadcast %cst_230 : f32 to vector<8x128xf32>
    %560 = arith.divf %559, %558 : vector<8x128xf32>
    %cst_231 = arith.constant 0.000000e+00 : f32
    %561 = vector.broadcast %cst_231 : f32 to vector<8x128xf32>
    %562 = arith.cmpf oge, %544, %561 : vector<8x128xf32>
    %563 = arith.mulf %555, %560 : vector<8x128xf32>
    %564 = arith.select %562, %560, %563 : vector<8x128xi1>, vector<8x128xf32>
    %565 = arith.mulf %564, %548 : vector<8x128xf32>
    %cst_232 = arith.constant 0.000000e+00 : f32
    %566 = vector.broadcast %cst_232 : f32 to vector<8x128xf32>
    %567 = arith.cmpf oge, %544, %566 : vector<8x128xf32>
    %cst_233 = arith.constant 0.000000e+00 : f32
    %568 = vector.broadcast %cst_233 : f32 to vector<8x128xf32>
    %569 = arith.select %567, %548, %568 : vector<8x128xi1>, vector<8x128xf32>
    %cst_234 = arith.constant 0.000000e+00 : f32
    %570 = vector.broadcast %cst_234 : f32 to vector<8x128xf32>
    %571 = arith.maximumf %544, %570 : vector<8x128xf32>
    %572 = arith.mulf %544, %546 : vector<8x128xf32>
    %573 = arith.subf %571, %572 : vector<8x128xf32>
    %574 = arith.addf %573, %556 : vector<8x128xf32>
    %575 = arith.mulf %574, %548 : vector<8x128xf32>
    %576 = math.absf %549 : vector<8x128xf32>
    %cst_235 = arith.constant 0.000000e+00 : f32
    %577 = vector.broadcast %cst_235 : f32 to vector<8x128xf32>
    %578 = arith.subf %577, %576 : vector<8x128xf32>
    %579 = math.exp %578 : vector<8x128xf32>
    %cst_236 = arith.constant 0.000000e+00 : f32
    %580 = vector.broadcast %cst_236 : f32 to vector<8x128xf32>
    %581 = arith.maximumf %549, %580 : vector<8x128xf32>
    %582 = arith.mulf %549, %551 : vector<8x128xf32>
    %583 = arith.subf %581, %582 : vector<8x128xf32>
    %584 = math.log1p %579 : vector<8x128xf32>
    %585 = arith.addf %583, %584 : vector<8x128xf32>
    %586 = arith.mulf %585, %548 : vector<8x128xf32>
    %587 = arith.mulf %569, %546 : vector<8x128xf32>
    %588 = arith.addf %535, %587 : vector<8x128xf32>
    %589 = arith.addf %536, %569 : vector<8x128xf32>
    %590 = arith.addf %537, %546 : vector<8x128xf32>
    %591 = arith.mulf %565, %546 : vector<8x128xf32>
    %592 = arith.addf %539, %591 : vector<8x128xf32>
    %593 = arith.addf %540, %565 : vector<8x128xf32>
    %594 = arith.addf %541, %575 : vector<8x128xf32>
    %595 = arith.addf %542, %548 : vector<8x128xf32>
    %596 = arith.addf %543, %586 : vector<8x128xf32>
    %c0_237 = arith.constant 0 : index
    %c1280 = arith.constant 1280 : index
    %597 = vector.load %arg2[%c0_237, %c1280] : memref<8x2048xf32, #tpu.memory_space<vmem>>, vector<8x128xf32>
    %c0_238 = arith.constant 0 : index
    %c1280_239 = arith.constant 1280 : index
    %598 = vector.load %arg3[%c0_238, %c1280_239] : memref<8x2048xbf16, #tpu.memory_space<vmem>>, vector<8x128xbf16>
    %599 = arith.extf %598 : vector<8x128xbf16> to vector<8x128xf32>
    %c0_240 = arith.constant 0 : index
    %c1280_241 = arith.constant 1280 : index
    %600 = vector.load %arg4[%c0_240, %c1280_241] : memref<8x2048xbf16, #tpu.memory_space<vmem>>, vector<8x128xbf16>
    %601 = arith.extf %600 : vector<8x128xbf16> to vector<8x128xf32>
    %c0_242 = arith.constant 0 : index
    %c1280_243 = arith.constant 1280 : index
    %602 = vector.load %arg5[%c0_242, %c1280_243] : memref<8x2048xf32, #tpu.memory_space<vmem>>, vector<8x128xf32>
    %c0_244 = arith.constant 0 : index
    %c1280_245 = arith.constant 1280 : index
    %603 = vector.load %arg6[%c0_244, %c1280_245] : memref<8x2048xbf16, #tpu.memory_space<vmem>>, vector<8x128xbf16>
    %604 = arith.extf %603 : vector<8x128xbf16> to vector<8x128xf32>
    %605 = math.absf %597 : vector<8x128xf32>
    %cst_246 = arith.constant 0.000000e+00 : f32
    %606 = vector.broadcast %cst_246 : f32 to vector<8x128xf32>
    %607 = arith.subf %606, %605 : vector<8x128xf32>
    %608 = math.exp %607 : vector<8x128xf32>
    %609 = math.log1p %608 : vector<8x128xf32>
    %cst_247 = arith.constant 1.000000e+00 : f32
    %610 = vector.broadcast %cst_247 : f32 to vector<8x128xf32>
    %611 = arith.addf %610, %608 : vector<8x128xf32>
    %cst_248 = arith.constant 1.000000e+00 : f32
    %612 = vector.broadcast %cst_248 : f32 to vector<8x128xf32>
    %613 = arith.divf %612, %611 : vector<8x128xf32>
    %cst_249 = arith.constant 0.000000e+00 : f32
    %614 = vector.broadcast %cst_249 : f32 to vector<8x128xf32>
    %615 = arith.cmpf oge, %597, %614 : vector<8x128xf32>
    %616 = arith.mulf %608, %613 : vector<8x128xf32>
    %617 = arith.select %615, %613, %616 : vector<8x128xi1>, vector<8x128xf32>
    %618 = arith.mulf %617, %601 : vector<8x128xf32>
    %cst_250 = arith.constant 0.000000e+00 : f32
    %619 = vector.broadcast %cst_250 : f32 to vector<8x128xf32>
    %620 = arith.cmpf oge, %597, %619 : vector<8x128xf32>
    %cst_251 = arith.constant 0.000000e+00 : f32
    %621 = vector.broadcast %cst_251 : f32 to vector<8x128xf32>
    %622 = arith.select %620, %601, %621 : vector<8x128xi1>, vector<8x128xf32>
    %cst_252 = arith.constant 0.000000e+00 : f32
    %623 = vector.broadcast %cst_252 : f32 to vector<8x128xf32>
    %624 = arith.maximumf %597, %623 : vector<8x128xf32>
    %625 = arith.mulf %597, %599 : vector<8x128xf32>
    %626 = arith.subf %624, %625 : vector<8x128xf32>
    %627 = arith.addf %626, %609 : vector<8x128xf32>
    %628 = arith.mulf %627, %601 : vector<8x128xf32>
    %629 = math.absf %602 : vector<8x128xf32>
    %cst_253 = arith.constant 0.000000e+00 : f32
    %630 = vector.broadcast %cst_253 : f32 to vector<8x128xf32>
    %631 = arith.subf %630, %629 : vector<8x128xf32>
    %632 = math.exp %631 : vector<8x128xf32>
    %cst_254 = arith.constant 0.000000e+00 : f32
    %633 = vector.broadcast %cst_254 : f32 to vector<8x128xf32>
    %634 = arith.maximumf %602, %633 : vector<8x128xf32>
    %635 = arith.mulf %602, %604 : vector<8x128xf32>
    %636 = arith.subf %634, %635 : vector<8x128xf32>
    %637 = math.log1p %632 : vector<8x128xf32>
    %638 = arith.addf %636, %637 : vector<8x128xf32>
    %639 = arith.mulf %638, %601 : vector<8x128xf32>
    %640 = arith.mulf %622, %599 : vector<8x128xf32>
    %641 = arith.addf %588, %640 : vector<8x128xf32>
    %642 = arith.addf %589, %622 : vector<8x128xf32>
    %643 = arith.addf %590, %599 : vector<8x128xf32>
    %644 = arith.mulf %618, %599 : vector<8x128xf32>
    %645 = arith.addf %592, %644 : vector<8x128xf32>
    %646 = arith.addf %593, %618 : vector<8x128xf32>
    %647 = arith.addf %594, %628 : vector<8x128xf32>
    %648 = arith.addf %595, %601 : vector<8x128xf32>
    %649 = arith.addf %596, %639 : vector<8x128xf32>
    %c0_255 = arith.constant 0 : index
    %c1408 = arith.constant 1408 : index
    %650 = vector.load %arg2[%c0_255, %c1408] : memref<8x2048xf32, #tpu.memory_space<vmem>>, vector<8x128xf32>
    %c0_256 = arith.constant 0 : index
    %c1408_257 = arith.constant 1408 : index
    %651 = vector.load %arg3[%c0_256, %c1408_257] : memref<8x2048xbf16, #tpu.memory_space<vmem>>, vector<8x128xbf16>
    %652 = arith.extf %651 : vector<8x128xbf16> to vector<8x128xf32>
    %c0_258 = arith.constant 0 : index
    %c1408_259 = arith.constant 1408 : index
    %653 = vector.load %arg4[%c0_258, %c1408_259] : memref<8x2048xbf16, #tpu.memory_space<vmem>>, vector<8x128xbf16>
    %654 = arith.extf %653 : vector<8x128xbf16> to vector<8x128xf32>
    %c0_260 = arith.constant 0 : index
    %c1408_261 = arith.constant 1408 : index
    %655 = vector.load %arg5[%c0_260, %c1408_261] : memref<8x2048xf32, #tpu.memory_space<vmem>>, vector<8x128xf32>
    %c0_262 = arith.constant 0 : index
    %c1408_263 = arith.constant 1408 : index
    %656 = vector.load %arg6[%c0_262, %c1408_263] : memref<8x2048xbf16, #tpu.memory_space<vmem>>, vector<8x128xbf16>
    %657 = arith.extf %656 : vector<8x128xbf16> to vector<8x128xf32>
    %658 = math.absf %650 : vector<8x128xf32>
    %cst_264 = arith.constant 0.000000e+00 : f32
    %659 = vector.broadcast %cst_264 : f32 to vector<8x128xf32>
    %660 = arith.subf %659, %658 : vector<8x128xf32>
    %661 = math.exp %660 : vector<8x128xf32>
    %662 = math.log1p %661 : vector<8x128xf32>
    %cst_265 = arith.constant 1.000000e+00 : f32
    %663 = vector.broadcast %cst_265 : f32 to vector<8x128xf32>
    %664 = arith.addf %663, %661 : vector<8x128xf32>
    %cst_266 = arith.constant 1.000000e+00 : f32
    %665 = vector.broadcast %cst_266 : f32 to vector<8x128xf32>
    %666 = arith.divf %665, %664 : vector<8x128xf32>
    %cst_267 = arith.constant 0.000000e+00 : f32
    %667 = vector.broadcast %cst_267 : f32 to vector<8x128xf32>
    %668 = arith.cmpf oge, %650, %667 : vector<8x128xf32>
    %669 = arith.mulf %661, %666 : vector<8x128xf32>
    %670 = arith.select %668, %666, %669 : vector<8x128xi1>, vector<8x128xf32>
    %671 = arith.mulf %670, %654 : vector<8x128xf32>
    %cst_268 = arith.constant 0.000000e+00 : f32
    %672 = vector.broadcast %cst_268 : f32 to vector<8x128xf32>
    %673 = arith.cmpf oge, %650, %672 : vector<8x128xf32>
    %cst_269 = arith.constant 0.000000e+00 : f32
    %674 = vector.broadcast %cst_269 : f32 to vector<8x128xf32>
    %675 = arith.select %673, %654, %674 : vector<8x128xi1>, vector<8x128xf32>
    %cst_270 = arith.constant 0.000000e+00 : f32
    %676 = vector.broadcast %cst_270 : f32 to vector<8x128xf32>
    %677 = arith.maximumf %650, %676 : vector<8x128xf32>
    %678 = arith.mulf %650, %652 : vector<8x128xf32>
    %679 = arith.subf %677, %678 : vector<8x128xf32>
    %680 = arith.addf %679, %662 : vector<8x128xf32>
    %681 = arith.mulf %680, %654 : vector<8x128xf32>
    %682 = math.absf %655 : vector<8x128xf32>
    %cst_271 = arith.constant 0.000000e+00 : f32
    %683 = vector.broadcast %cst_271 : f32 to vector<8x128xf32>
    %684 = arith.subf %683, %682 : vector<8x128xf32>
    %685 = math.exp %684 : vector<8x128xf32>
    %cst_272 = arith.constant 0.000000e+00 : f32
    %686 = vector.broadcast %cst_272 : f32 to vector<8x128xf32>
    %687 = arith.maximumf %655, %686 : vector<8x128xf32>
    %688 = arith.mulf %655, %657 : vector<8x128xf32>
    %689 = arith.subf %687, %688 : vector<8x128xf32>
    %690 = math.log1p %685 : vector<8x128xf32>
    %691 = arith.addf %689, %690 : vector<8x128xf32>
    %692 = arith.mulf %691, %654 : vector<8x128xf32>
    %693 = arith.mulf %675, %652 : vector<8x128xf32>
    %694 = arith.addf %641, %693 : vector<8x128xf32>
    %695 = arith.addf %642, %675 : vector<8x128xf32>
    %696 = arith.addf %643, %652 : vector<8x128xf32>
    %697 = arith.mulf %671, %652 : vector<8x128xf32>
    %698 = arith.addf %645, %697 : vector<8x128xf32>
    %699 = arith.addf %646, %671 : vector<8x128xf32>
    %700 = arith.addf %647, %681 : vector<8x128xf32>
    %701 = arith.addf %648, %654 : vector<8x128xf32>
    %702 = arith.addf %649, %692 : vector<8x128xf32>
    %c0_273 = arith.constant 0 : index
    %c1536 = arith.constant 1536 : index
    %703 = vector.load %arg2[%c0_273, %c1536] : memref<8x2048xf32, #tpu.memory_space<vmem>>, vector<8x128xf32>
    %c0_274 = arith.constant 0 : index
    %c1536_275 = arith.constant 1536 : index
    %704 = vector.load %arg3[%c0_274, %c1536_275] : memref<8x2048xbf16, #tpu.memory_space<vmem>>, vector<8x128xbf16>
    %705 = arith.extf %704 : vector<8x128xbf16> to vector<8x128xf32>
    %c0_276 = arith.constant 0 : index
    %c1536_277 = arith.constant 1536 : index
    %706 = vector.load %arg4[%c0_276, %c1536_277] : memref<8x2048xbf16, #tpu.memory_space<vmem>>, vector<8x128xbf16>
    %707 = arith.extf %706 : vector<8x128xbf16> to vector<8x128xf32>
    %c0_278 = arith.constant 0 : index
    %c1536_279 = arith.constant 1536 : index
    %708 = vector.load %arg5[%c0_278, %c1536_279] : memref<8x2048xf32, #tpu.memory_space<vmem>>, vector<8x128xf32>
    %c0_280 = arith.constant 0 : index
    %c1536_281 = arith.constant 1536 : index
    %709 = vector.load %arg6[%c0_280, %c1536_281] : memref<8x2048xbf16, #tpu.memory_space<vmem>>, vector<8x128xbf16>
    %710 = arith.extf %709 : vector<8x128xbf16> to vector<8x128xf32>
    %711 = math.absf %703 : vector<8x128xf32>
    %cst_282 = arith.constant 0.000000e+00 : f32
    %712 = vector.broadcast %cst_282 : f32 to vector<8x128xf32>
    %713 = arith.subf %712, %711 : vector<8x128xf32>
    %714 = math.exp %713 : vector<8x128xf32>
    %715 = math.log1p %714 : vector<8x128xf32>
    %cst_283 = arith.constant 1.000000e+00 : f32
    %716 = vector.broadcast %cst_283 : f32 to vector<8x128xf32>
    %717 = arith.addf %716, %714 : vector<8x128xf32>
    %cst_284 = arith.constant 1.000000e+00 : f32
    %718 = vector.broadcast %cst_284 : f32 to vector<8x128xf32>
    %719 = arith.divf %718, %717 : vector<8x128xf32>
    %cst_285 = arith.constant 0.000000e+00 : f32
    %720 = vector.broadcast %cst_285 : f32 to vector<8x128xf32>
    %721 = arith.cmpf oge, %703, %720 : vector<8x128xf32>
    %722 = arith.mulf %714, %719 : vector<8x128xf32>
    %723 = arith.select %721, %719, %722 : vector<8x128xi1>, vector<8x128xf32>
    %724 = arith.mulf %723, %707 : vector<8x128xf32>
    %cst_286 = arith.constant 0.000000e+00 : f32
    %725 = vector.broadcast %cst_286 : f32 to vector<8x128xf32>
    %726 = arith.cmpf oge, %703, %725 : vector<8x128xf32>
    %cst_287 = arith.constant 0.000000e+00 : f32
    %727 = vector.broadcast %cst_287 : f32 to vector<8x128xf32>
    %728 = arith.select %726, %707, %727 : vector<8x128xi1>, vector<8x128xf32>
    %cst_288 = arith.constant 0.000000e+00 : f32
    %729 = vector.broadcast %cst_288 : f32 to vector<8x128xf32>
    %730 = arith.maximumf %703, %729 : vector<8x128xf32>
    %731 = arith.mulf %703, %705 : vector<8x128xf32>
    %732 = arith.subf %730, %731 : vector<8x128xf32>
    %733 = arith.addf %732, %715 : vector<8x128xf32>
    %734 = arith.mulf %733, %707 : vector<8x128xf32>
    %735 = math.absf %708 : vector<8x128xf32>
    %cst_289 = arith.constant 0.000000e+00 : f32
    %736 = vector.broadcast %cst_289 : f32 to vector<8x128xf32>
    %737 = arith.subf %736, %735 : vector<8x128xf32>
    %738 = math.exp %737 : vector<8x128xf32>
    %cst_290 = arith.constant 0.000000e+00 : f32
    %739 = vector.broadcast %cst_290 : f32 to vector<8x128xf32>
    %740 = arith.maximumf %708, %739 : vector<8x128xf32>
    %741 = arith.mulf %708, %710 : vector<8x128xf32>
    %742 = arith.subf %740, %741 : vector<8x128xf32>
    %743 = math.log1p %738 : vector<8x128xf32>
    %744 = arith.addf %742, %743 : vector<8x128xf32>
    %745 = arith.mulf %744, %707 : vector<8x128xf32>
    %746 = arith.mulf %728, %705 : vector<8x128xf32>
    %747 = arith.addf %694, %746 : vector<8x128xf32>
    %748 = arith.addf %695, %728 : vector<8x128xf32>
    %749 = arith.addf %696, %705 : vector<8x128xf32>
    %750 = arith.mulf %724, %705 : vector<8x128xf32>
    %751 = arith.addf %698, %750 : vector<8x128xf32>
    %752 = arith.addf %699, %724 : vector<8x128xf32>
    %753 = arith.addf %700, %734 : vector<8x128xf32>
    %754 = arith.addf %701, %707 : vector<8x128xf32>
    %755 = arith.addf %702, %745 : vector<8x128xf32>
    %c0_291 = arith.constant 0 : index
    %c1664 = arith.constant 1664 : index
    %756 = vector.load %arg2[%c0_291, %c1664] : memref<8x2048xf32, #tpu.memory_space<vmem>>, vector<8x128xf32>
    %c0_292 = arith.constant 0 : index
    %c1664_293 = arith.constant 1664 : index
    %757 = vector.load %arg3[%c0_292, %c1664_293] : memref<8x2048xbf16, #tpu.memory_space<vmem>>, vector<8x128xbf16>
    %758 = arith.extf %757 : vector<8x128xbf16> to vector<8x128xf32>
    %c0_294 = arith.constant 0 : index
    %c1664_295 = arith.constant 1664 : index
    %759 = vector.load %arg4[%c0_294, %c1664_295] : memref<8x2048xbf16, #tpu.memory_space<vmem>>, vector<8x128xbf16>
    %760 = arith.extf %759 : vector<8x128xbf16> to vector<8x128xf32>
    %c0_296 = arith.constant 0 : index
    %c1664_297 = arith.constant 1664 : index
    %761 = vector.load %arg5[%c0_296, %c1664_297] : memref<8x2048xf32, #tpu.memory_space<vmem>>, vector<8x128xf32>
    %c0_298 = arith.constant 0 : index
    %c1664_299 = arith.constant 1664 : index
    %762 = vector.load %arg6[%c0_298, %c1664_299] : memref<8x2048xbf16, #tpu.memory_space<vmem>>, vector<8x128xbf16>
    %763 = arith.extf %762 : vector<8x128xbf16> to vector<8x128xf32>
    %764 = math.absf %756 : vector<8x128xf32>
    %cst_300 = arith.constant 0.000000e+00 : f32
    %765 = vector.broadcast %cst_300 : f32 to vector<8x128xf32>
    %766 = arith.subf %765, %764 : vector<8x128xf32>
    %767 = math.exp %766 : vector<8x128xf32>
    %768 = math.log1p %767 : vector<8x128xf32>
    %cst_301 = arith.constant 1.000000e+00 : f32
    %769 = vector.broadcast %cst_301 : f32 to vector<8x128xf32>
    %770 = arith.addf %769, %767 : vector<8x128xf32>
    %cst_302 = arith.constant 1.000000e+00 : f32
    %771 = vector.broadcast %cst_302 : f32 to vector<8x128xf32>
    %772 = arith.divf %771, %770 : vector<8x128xf32>
    %cst_303 = arith.constant 0.000000e+00 : f32
    %773 = vector.broadcast %cst_303 : f32 to vector<8x128xf32>
    %774 = arith.cmpf oge, %756, %773 : vector<8x128xf32>
    %775 = arith.mulf %767, %772 : vector<8x128xf32>
    %776 = arith.select %774, %772, %775 : vector<8x128xi1>, vector<8x128xf32>
    %777 = arith.mulf %776, %760 : vector<8x128xf32>
    %cst_304 = arith.constant 0.000000e+00 : f32
    %778 = vector.broadcast %cst_304 : f32 to vector<8x128xf32>
    %779 = arith.cmpf oge, %756, %778 : vector<8x128xf32>
    %cst_305 = arith.constant 0.000000e+00 : f32
    %780 = vector.broadcast %cst_305 : f32 to vector<8x128xf32>
    %781 = arith.select %779, %760, %780 : vector<8x128xi1>, vector<8x128xf32>
    %cst_306 = arith.constant 0.000000e+00 : f32
    %782 = vector.broadcast %cst_306 : f32 to vector<8x128xf32>
    %783 = arith.maximumf %756, %782 : vector<8x128xf32>
    %784 = arith.mulf %756, %758 : vector<8x128xf32>
    %785 = arith.subf %783, %784 : vector<8x128xf32>
    %786 = arith.addf %785, %768 : vector<8x128xf32>
    %787 = arith.mulf %786, %760 : vector<8x128xf32>
    %788 = math.absf %761 : vector<8x128xf32>
    %cst_307 = arith.constant 0.000000e+00 : f32
    %789 = vector.broadcast %cst_307 : f32 to vector<8x128xf32>
    %790 = arith.subf %789, %788 : vector<8x128xf32>
    %791 = math.exp %790 : vector<8x128xf32>
    %cst_308 = arith.constant 0.000000e+00 : f32
    %792 = vector.broadcast %cst_308 : f32 to vector<8x128xf32>
    %793 = arith.maximumf %761, %792 : vector<8x128xf32>
    %794 = arith.mulf %761, %763 : vector<8x128xf32>
    %795 = arith.subf %793, %794 : vector<8x128xf32>
    %796 = math.log1p %791 : vector<8x128xf32>
    %797 = arith.addf %795, %796 : vector<8x128xf32>
    %798 = arith.mulf %797, %760 : vector<8x128xf32>
    %799 = arith.mulf %781, %758 : vector<8x128xf32>
    %800 = arith.addf %747, %799 : vector<8x128xf32>
    %801 = arith.addf %748, %781 : vector<8x128xf32>
    %802 = arith.addf %749, %758 : vector<8x128xf32>
    %803 = arith.mulf %777, %758 : vector<8x128xf32>
    %804 = arith.addf %751, %803 : vector<8x128xf32>
    %805 = arith.addf %752, %777 : vector<8x128xf32>
    %806 = arith.addf %753, %787 : vector<8x128xf32>
    %807 = arith.addf %754, %760 : vector<8x128xf32>
    %808 = arith.addf %755, %798 : vector<8x128xf32>
    %c0_309 = arith.constant 0 : index
    %c1792 = arith.constant 1792 : index
    %809 = vector.load %arg2[%c0_309, %c1792] : memref<8x2048xf32, #tpu.memory_space<vmem>>, vector<8x128xf32>
    %c0_310 = arith.constant 0 : index
    %c1792_311 = arith.constant 1792 : index
    %810 = vector.load %arg3[%c0_310, %c1792_311] : memref<8x2048xbf16, #tpu.memory_space<vmem>>, vector<8x128xbf16>
    %811 = arith.extf %810 : vector<8x128xbf16> to vector<8x128xf32>
    %c0_312 = arith.constant 0 : index
    %c1792_313 = arith.constant 1792 : index
    %812 = vector.load %arg4[%c0_312, %c1792_313] : memref<8x2048xbf16, #tpu.memory_space<vmem>>, vector<8x128xbf16>
    %813 = arith.extf %812 : vector<8x128xbf16> to vector<8x128xf32>
    %c0_314 = arith.constant 0 : index
    %c1792_315 = arith.constant 1792 : index
    %814 = vector.load %arg5[%c0_314, %c1792_315] : memref<8x2048xf32, #tpu.memory_space<vmem>>, vector<8x128xf32>
    %c0_316 = arith.constant 0 : index
    %c1792_317 = arith.constant 1792 : index
    %815 = vector.load %arg6[%c0_316, %c1792_317] : memref<8x2048xbf16, #tpu.memory_space<vmem>>, vector<8x128xbf16>
    %816 = arith.extf %815 : vector<8x128xbf16> to vector<8x128xf32>
    %817 = math.absf %809 : vector<8x128xf32>
    %cst_318 = arith.constant 0.000000e+00 : f32
    %818 = vector.broadcast %cst_318 : f32 to vector<8x128xf32>
    %819 = arith.subf %818, %817 : vector<8x128xf32>
    %820 = math.exp %819 : vector<8x128xf32>
    %821 = math.log1p %820 : vector<8x128xf32>
    %cst_319 = arith.constant 1.000000e+00 : f32
    %822 = vector.broadcast %cst_319 : f32 to vector<8x128xf32>
    %823 = arith.addf %822, %820 : vector<8x128xf32>
    %cst_320 = arith.constant 1.000000e+00 : f32
    %824 = vector.broadcast %cst_320 : f32 to vector<8x128xf32>
    %825 = arith.divf %824, %823 : vector<8x128xf32>
    %cst_321 = arith.constant 0.000000e+00 : f32
    %826 = vector.broadcast %cst_321 : f32 to vector<8x128xf32>
    %827 = arith.cmpf oge, %809, %826 : vector<8x128xf32>
    %828 = arith.mulf %820, %825 : vector<8x128xf32>
    %829 = arith.select %827, %825, %828 : vector<8x128xi1>, vector<8x128xf32>
    %830 = arith.mulf %829, %813 : vector<8x128xf32>
    %cst_322 = arith.constant 0.000000e+00 : f32
    %831 = vector.broadcast %cst_322 : f32 to vector<8x128xf32>
    %832 = arith.cmpf oge, %809, %831 : vector<8x128xf32>
    %cst_323 = arith.constant 0.000000e+00 : f32
    %833 = vector.broadcast %cst_323 : f32 to vector<8x128xf32>
    %834 = arith.select %832, %813, %833 : vector<8x128xi1>, vector<8x128xf32>
    %cst_324 = arith.constant 0.000000e+00 : f32
    %835 = vector.broadcast %cst_324 : f32 to vector<8x128xf32>
    %836 = arith.maximumf %809, %835 : vector<8x128xf32>
    %837 = arith.mulf %809, %811 : vector<8x128xf32>
    %838 = arith.subf %836, %837 : vector<8x128xf32>
    %839 = arith.addf %838, %821 : vector<8x128xf32>
    %840 = arith.mulf %839, %813 : vector<8x128xf32>
    %841 = math.absf %814 : vector<8x128xf32>
    %cst_325 = arith.constant 0.000000e+00 : f32
    %842 = vector.broadcast %cst_325 : f32 to vector<8x128xf32>
    %843 = arith.subf %842, %841 : vector<8x128xf32>
    %844 = math.exp %843 : vector<8x128xf32>
    %cst_326 = arith.constant 0.000000e+00 : f32
    %845 = vector.broadcast %cst_326 : f32 to vector<8x128xf32>
    %846 = arith.maximumf %814, %845 : vector<8x128xf32>
    %847 = arith.mulf %814, %816 : vector<8x128xf32>
    %848 = arith.subf %846, %847 : vector<8x128xf32>
    %849 = math.log1p %844 : vector<8x128xf32>
    %850 = arith.addf %848, %849 : vector<8x128xf32>
    %851 = arith.mulf %850, %813 : vector<8x128xf32>
    %852 = arith.mulf %834, %811 : vector<8x128xf32>
    %853 = arith.addf %800, %852 : vector<8x128xf32>
    %854 = arith.addf %801, %834 : vector<8x128xf32>
    %855 = arith.addf %802, %811 : vector<8x128xf32>
    %856 = arith.mulf %830, %811 : vector<8x128xf32>
    %857 = arith.addf %804, %856 : vector<8x128xf32>
    %858 = arith.addf %805, %830 : vector<8x128xf32>
    %859 = arith.addf %806, %840 : vector<8x128xf32>
    %860 = arith.addf %807, %813 : vector<8x128xf32>
    %861 = arith.addf %808, %851 : vector<8x128xf32>
    %c0_327 = arith.constant 0 : index
    %c1920 = arith.constant 1920 : index
    %862 = vector.load %arg2[%c0_327, %c1920] : memref<8x2048xf32, #tpu.memory_space<vmem>>, vector<8x128xf32>
    %c0_328 = arith.constant 0 : index
    %c1920_329 = arith.constant 1920 : index
    %863 = vector.load %arg3[%c0_328, %c1920_329] : memref<8x2048xbf16, #tpu.memory_space<vmem>>, vector<8x128xbf16>
    %864 = arith.extf %863 : vector<8x128xbf16> to vector<8x128xf32>
    %c0_330 = arith.constant 0 : index
    %c1920_331 = arith.constant 1920 : index
    %865 = vector.load %arg4[%c0_330, %c1920_331] : memref<8x2048xbf16, #tpu.memory_space<vmem>>, vector<8x128xbf16>
    %866 = arith.extf %865 : vector<8x128xbf16> to vector<8x128xf32>
    %c0_332 = arith.constant 0 : index
    %c1920_333 = arith.constant 1920 : index
    %867 = vector.load %arg5[%c0_332, %c1920_333] : memref<8x2048xf32, #tpu.memory_space<vmem>>, vector<8x128xf32>
    %c0_334 = arith.constant 0 : index
    %c1920_335 = arith.constant 1920 : index
    %868 = vector.load %arg6[%c0_334, %c1920_335] : memref<8x2048xbf16, #tpu.memory_space<vmem>>, vector<8x128xbf16>
    %869 = arith.extf %868 : vector<8x128xbf16> to vector<8x128xf32>
    %870 = math.absf %862 : vector<8x128xf32>
    %cst_336 = arith.constant 0.000000e+00 : f32
    %871 = vector.broadcast %cst_336 : f32 to vector<8x128xf32>
    %872 = arith.subf %871, %870 : vector<8x128xf32>
    %873 = math.exp %872 : vector<8x128xf32>
    %874 = math.log1p %873 : vector<8x128xf32>
    %cst_337 = arith.constant 1.000000e+00 : f32
    %875 = vector.broadcast %cst_337 : f32 to vector<8x128xf32>
    %876 = arith.addf %875, %873 : vector<8x128xf32>
    %cst_338 = arith.constant 1.000000e+00 : f32
    %877 = vector.broadcast %cst_338 : f32 to vector<8x128xf32>
    %878 = arith.divf %877, %876 : vector<8x128xf32>
    %cst_339 = arith.constant 0.000000e+00 : f32
    %879 = vector.broadcast %cst_339 : f32 to vector<8x128xf32>
    %880 = arith.cmpf oge, %862, %879 : vector<8x128xf32>
    %881 = arith.mulf %873, %878 : vector<8x128xf32>
    %882 = arith.select %880, %878, %881 : vector<8x128xi1>, vector<8x128xf32>
    %883 = arith.mulf %882, %866 : vector<8x128xf32>
    %cst_340 = arith.constant 0.000000e+00 : f32
    %884 = vector.broadcast %cst_340 : f32 to vector<8x128xf32>
    %885 = arith.cmpf oge, %862, %884 : vector<8x128xf32>
    %cst_341 = arith.constant 0.000000e+00 : f32
    %886 = vector.broadcast %cst_341 : f32 to vector<8x128xf32>
    %887 = arith.select %885, %866, %886 : vector<8x128xi1>, vector<8x128xf32>
    %cst_342 = arith.constant 0.000000e+00 : f32
    %888 = vector.broadcast %cst_342 : f32 to vector<8x128xf32>
    %889 = arith.maximumf %862, %888 : vector<8x128xf32>
    %890 = arith.mulf %862, %864 : vector<8x128xf32>
    %891 = arith.subf %889, %890 : vector<8x128xf32>
    %892 = arith.addf %891, %874 : vector<8x128xf32>
    %893 = arith.mulf %892, %866 : vector<8x128xf32>
    %894 = math.absf %867 : vector<8x128xf32>
    %cst_343 = arith.constant 0.000000e+00 : f32
    %895 = vector.broadcast %cst_343 : f32 to vector<8x128xf32>
    %896 = arith.subf %895, %894 : vector<8x128xf32>
    %897 = math.exp %896 : vector<8x128xf32>
    %cst_344 = arith.constant 0.000000e+00 : f32
    %898 = vector.broadcast %cst_344 : f32 to vector<8x128xf32>
    %899 = arith.maximumf %867, %898 : vector<8x128xf32>
    %900 = arith.mulf %867, %869 : vector<8x128xf32>
    %901 = arith.subf %899, %900 : vector<8x128xf32>
    %902 = math.log1p %897 : vector<8x128xf32>
    %903 = arith.addf %901, %902 : vector<8x128xf32>
    %904 = arith.mulf %903, %866 : vector<8x128xf32>
    %905 = arith.mulf %887, %864 : vector<8x128xf32>
    %906 = arith.addf %853, %905 : vector<8x128xf32>
    %907 = arith.addf %854, %887 : vector<8x128xf32>
    %908 = arith.addf %855, %864 : vector<8x128xf32>
    %909 = arith.mulf %883, %864 : vector<8x128xf32>
    %910 = arith.addf %857, %909 : vector<8x128xf32>
    %911 = arith.addf %858, %883 : vector<8x128xf32>
    %912 = arith.addf %859, %893 : vector<8x128xf32>
    %913 = arith.addf %860, %866 : vector<8x128xf32>
    %914 = arith.addf %861, %904 : vector<8x128xf32>
    %c0_345 = arith.constant 0 : index
    %c0_346 = arith.constant 0 : index
    %c0_347 = arith.constant 0 : index
    %915 = vector.load %arg7[%c0_345, %c0_346, %c0_347] : memref<8x8x128xf32, #tpu.memory_space<vmem>>, vector<1x8x128xf32>
    %916 = vector.shape_cast %915 : vector<1x8x128xf32> to vector<8x128xf32>
    %917 = arith.addf %916, %906 : vector<8x128xf32>
    %c0_348 = arith.constant 0 : index
    %c0_349 = arith.constant 0 : index
    %c0_350 = arith.constant 0 : index
    %918 = vector.load %arg7[%c0_348, %c0_349, %c0_350] : memref<8x8x128xf32, #tpu.memory_space<vmem>>, vector<1x8x128xf32>
    %919 = vector.shape_cast %918 : vector<1x8x128xf32> to vector<8x128xf32>
    %920 = vector.shape_cast %917 : vector<8x128xf32> to vector<1x8x128xf32>
    tpu.vector_store %arg7[%c0_348, %c0_349, %c0_350], %920 {strides = array<i32>} : memref<8x8x128xf32, #tpu.memory_space<vmem>>, vector<1x8x128xf32>,
    %c1_351 = arith.constant 1 : index
    %c0_352 = arith.constant 0 : index
    %c0_353 = arith.constant 0 : index
    %921 = vector.load %arg7[%c1_351, %c0_352, %c0_353] : memref<8x8x128xf32, #tpu.memory_space<vmem>>, vector<1x8x128xf32>
    %922 = vector.shape_cast %921 : vector<1x8x128xf32> to vector<8x128xf32>
    %923 = arith.addf %922, %907 : vector<8x128xf32>
    %c1_354 = arith.constant 1 : index
    %c0_355 = arith.constant 0 : index
    %c0_356 = arith.constant 0 : index
    %924 = vector.load %arg7[%c1_354, %c0_355, %c0_356] : memref<8x8x128xf32, #tpu.memory_space<vmem>>, vector<1x8x128xf32>
    %925 = vector.shape_cast %924 : vector<1x8x128xf32> to vector<8x128xf32>
    %926 = vector.shape_cast %923 : vector<8x128xf32> to vector<1x8x128xf32>
    tpu.vector_store %arg7[%c1_354, %c0_355, %c0_356], %926 {strides = array<i32>} : memref<8x8x128xf32, #tpu.memory_space<vmem>>, vector<1x8x128xf32>,
    %c2_357 = arith.constant 2 : index
    %c0_358 = arith.constant 0 : index
    %c0_359 = arith.constant 0 : index
    %927 = vector.load %arg7[%c2_357, %c0_358, %c0_359] : memref<8x8x128xf32, #tpu.memory_space<vmem>>, vector<1x8x128xf32>
    %928 = vector.shape_cast %927 : vector<1x8x128xf32> to vector<8x128xf32>
    %929 = arith.addf %928, %908 : vector<8x128xf32>
    %c2_360 = arith.constant 2 : index
    %c0_361 = arith.constant 0 : index
    %c0_362 = arith.constant 0 : index
    %930 = vector.load %arg7[%c2_360, %c0_361, %c0_362] : memref<8x8x128xf32, #tpu.memory_space<vmem>>, vector<1x8x128xf32>
    %931 = vector.shape_cast %930 : vector<1x8x128xf32> to vector<8x128xf32>
    %932 = vector.shape_cast %929 : vector<8x128xf32> to vector<1x8x128xf32>
    tpu.vector_store %arg7[%c2_360, %c0_361, %c0_362], %932 {strides = array<i32>} : memref<8x8x128xf32, #tpu.memory_space<vmem>>, vector<1x8x128xf32>,
    %c3_363 = arith.constant 3 : index
    %c0_364 = arith.constant 0 : index
    %c0_365 = arith.constant 0 : index
    %933 = vector.load %arg7[%c3_363, %c0_364, %c0_365] : memref<8x8x128xf32, #tpu.memory_space<vmem>>, vector<1x8x128xf32>
    %934 = vector.shape_cast %933 : vector<1x8x128xf32> to vector<8x128xf32>
    %935 = arith.addf %934, %910 : vector<8x128xf32>
    %c3_366 = arith.constant 3 : index
    %c0_367 = arith.constant 0 : index
    %c0_368 = arith.constant 0 : index
    %936 = vector.load %arg7[%c3_366, %c0_367, %c0_368] : memref<8x8x128xf32, #tpu.memory_space<vmem>>, vector<1x8x128xf32>
    %937 = vector.shape_cast %936 : vector<1x8x128xf32> to vector<8x128xf32>
    %938 = vector.shape_cast %935 : vector<8x128xf32> to vector<1x8x128xf32>
    tpu.vector_store %arg7[%c3_366, %c0_367, %c0_368], %938 {strides = array<i32>} : memref<8x8x128xf32, #tpu.memory_space<vmem>>, vector<1x8x128xf32>,
    %c4_369 = arith.constant 4 : index
    %c0_370 = arith.constant 0 : index
    %c0_371 = arith.constant 0 : index
    %939 = vector.load %arg7[%c4_369, %c0_370, %c0_371] : memref<8x8x128xf32, #tpu.memory_space<vmem>>, vector<1x8x128xf32>
    %940 = vector.shape_cast %939 : vector<1x8x128xf32> to vector<8x128xf32>
    %941 = arith.addf %940, %911 : vector<8x128xf32>
    %c4_372 = arith.constant 4 : index
    %c0_373 = arith.constant 0 : index
    %c0_374 = arith.constant 0 : index
    %942 = vector.load %arg7[%c4_372, %c0_373, %c0_374] : memref<8x8x128xf32, #tpu.memory_space<vmem>>, vector<1x8x128xf32>
    %943 = vector.shape_cast %942 : vector<1x8x128xf32> to vector<8x128xf32>
    %944 = vector.shape_cast %941 : vector<8x128xf32> to vector<1x8x128xf32>
    tpu.vector_store %arg7[%c4_372, %c0_373, %c0_374], %944 {strides = array<i32>} : memref<8x8x128xf32, #tpu.memory_space<vmem>>, vector<1x8x128xf32>,
    %c5_375 = arith.constant 5 : index
    %c0_376 = arith.constant 0 : index
    %c0_377 = arith.constant 0 : index
    %945 = vector.load %arg7[%c5_375, %c0_376, %c0_377] : memref<8x8x128xf32, #tpu.memory_space<vmem>>, vector<1x8x128xf32>
    %946 = vector.shape_cast %945 : vector<1x8x128xf32> to vector<8x128xf32>
    %947 = arith.addf %946, %912 : vector<8x128xf32>
    %c5_378 = arith.constant 5 : index
    %c0_379 = arith.constant 0 : index
    %c0_380 = arith.constant 0 : index
    %948 = vector.load %arg7[%c5_378, %c0_379, %c0_380] : memref<8x8x128xf32, #tpu.memory_space<vmem>>, vector<1x8x128xf32>
    %949 = vector.shape_cast %948 : vector<1x8x128xf32> to vector<8x128xf32>
    %950 = vector.shape_cast %947 : vector<8x128xf32> to vector<1x8x128xf32>
    tpu.vector_store %arg7[%c5_378, %c0_379, %c0_380], %950 {strides = array<i32>} : memref<8x8x128xf32, #tpu.memory_space<vmem>>, vector<1x8x128xf32>,
    %c6_381 = arith.constant 6 : index
    %c0_382 = arith.constant 0 : index
    %c0_383 = arith.constant 0 : index
    %951 = vector.load %arg7[%c6_381, %c0_382, %c0_383] : memref<8x8x128xf32, #tpu.memory_space<vmem>>, vector<1x8x128xf32>
    %952 = vector.shape_cast %951 : vector<1x8x128xf32> to vector<8x128xf32>
    %953 = arith.addf %952, %913 : vector<8x128xf32>
    %c6_384 = arith.constant 6 : index
    %c0_385 = arith.constant 0 : index
    %c0_386 = arith.constant 0 : index
    %954 = vector.load %arg7[%c6_384, %c0_385, %c0_386] : memref<8x8x128xf32, #tpu.memory_space<vmem>>, vector<1x8x128xf32>
    %955 = vector.shape_cast %954 : vector<1x8x128xf32> to vector<8x128xf32>
    %956 = vector.shape_cast %953 : vector<8x128xf32> to vector<1x8x128xf32>
    tpu.vector_store %arg7[%c6_384, %c0_385, %c0_386], %956 {strides = array<i32>} : memref<8x8x128xf32, #tpu.memory_space<vmem>>, vector<1x8x128xf32>,
    %c7_387 = arith.constant 7 : index
    %c0_388 = arith.constant 0 : index
    %c0_389 = arith.constant 0 : index
    %957 = vector.load %arg7[%c7_387, %c0_388, %c0_389] : memref<8x8x128xf32, #tpu.memory_space<vmem>>, vector<1x8x128xf32>
    %958 = vector.shape_cast %957 : vector<1x8x128xf32> to vector<8x128xf32>
    %959 = arith.addf %958, %914 : vector<8x128xf32>
    %c7_390 = arith.constant 7 : index
    %c0_391 = arith.constant 0 : index
    %c0_392 = arith.constant 0 : index
    %960 = vector.load %arg7[%c7_390, %c0_391, %c0_392] : memref<8x8x128xf32, #tpu.memory_space<vmem>>, vector<1x8x128xf32>
    %961 = vector.shape_cast %960 : vector<1x8x128xf32> to vector<8x128xf32>
    %962 = vector.shape_cast %959 : vector<8x128xf32> to vector<1x8x128xf32>
    tpu.vector_store %arg7[%c7_390, %c0_391, %c0_392], %962 {strides = array<i32>} : memref<8x8x128xf32, #tpu.memory_space<vmem>>, vector<1x8x128xf32>,
    return
  }
  func.func @transform_0(%arg0: i32, %arg1: i32) -> (i32, i32) {
    %c2_i32 = arith.constant 2 : i32
    %0 = arith.muli %arg0, %c2_i32 : i32
    %1 = arith.addi %0, %arg1 : i32
    %c0_i32 = arith.constant 0 : i32
    %c0_i32_0 = arith.constant 0 : i32
    return %c0_i32, %1 : i32, i32
  }
  func.func @transform_1(%arg0: i32, %arg1: i32) -> (i32, i32) {
    %c2_i32 = arith.constant 2 : i32
    %0 = arith.muli %arg0, %c2_i32 : i32
    %1 = arith.addi %0, %arg1 : i32
    %c0_i32 = arith.constant 0 : i32
    %c0_i32_0 = arith.constant 0 : i32
    return %c0_i32, %1 : i32, i32
  }
  func.func @transform_2(%arg0: i32, %arg1: i32) -> (i32, i32) {
    %c2_i32 = arith.constant 2 : i32
    %0 = arith.muli %arg0, %c2_i32 : i32
    %1 = arith.addi %0, %arg1 : i32
    %c0_i32 = arith.constant 0 : i32
    %c0_i32_0 = arith.constant 0 : i32
    return %c0_i32, %1 : i32, i32
  }
  func.func @transform_3(%arg0: i32, %arg1: i32) -> (i32, i32) {
    %c2_i32 = arith.constant 2 : i32
    %0 = arith.muli %arg0, %c2_i32 : i32
    %1 = arith.addi %0, %arg1 : i32
    %c0_i32 = arith.constant 0 : i32
    %c0_i32_0 = arith.constant 0 : i32
    return %c0_i32, %1 : i32, i32
  }
  func.func @transform_4(%arg0: i32, %arg1: i32) -> (i32, i32) {
    %c2_i32 = arith.constant 2 : i32
    %0 = arith.muli %arg0, %c2_i32 : i32
    %1 = arith.addi %0, %arg1 : i32
    %c0_i32 = arith.constant 0 : i32
    %c0_i32_0 = arith.constant 0 : i32
    return %c0_i32, %1 : i32, i32
  }
  func.func @transform_5(%arg0: i32, %arg1: i32) -> (i32, i32, i32) {
    %c0_i32 = arith.constant 0 : i32
    %c0_i32_0 = arith.constant 0 : i32
    %c0_i32_1 = arith.constant 0 : i32
    return %arg0, %c0_i32, %c0_i32_0 : i32, i32, i32
  }
}

</mosaic_0001>

<bundles_post_ra>
// kernel: criterion_pallas.1
= control target key start
LH: loop header
LB: loop body
LE: loop exit
PB: predicated region body
PF: predicated region fallthrough
CT: control target
= control target key end

     0   :  { %s3724_s0 = inlined_call_operand.hbm [shape: f32[8,8192], index: 0, kind: input, shape index: {}]   ;;  %s3725_s1 = inlined_call_operand.hbm [shape: bf16[8,8192], index: 1, kind: input, shape index: {}]   ;;  %s3726_s2 = inlined_call_operand.hbm [shape: bf16[8,8192], index: 2, kind: input, shape index: {}]   ;;  %s3727_s3 = inlined_call_operand.hbm [shape: f32[8,8192], index: 3, kind: input, shape index: {}]   ;;  %s3728_s4 = inlined_call_operand.hbm [shape: bf16[8,8192], index: 4, kind: input, shape index: {}]   ;;  %s3729_s5 = inlined_call_operand.vmem [shape: f32[16,8,128], index: 5, kind: output, shape index: {}]  }
   0x1   :  { %3765 = sst [smem:[#allocation46_spill]] %s3724_s0 }
   0x2   :  { %3766 = sst [smem:[#allocation47_spill]] %s3725_s1 }
   0x3   :  { %3767 = sst [smem:[#allocation48_spill]] %s3727_s3 }
   0x4   :  { %10 = vsyncpa [#allocation3], 0 }
   0x5   :  { %12 = vsyncpa [#allocation3 + $0x1], 0 }
   0x6   :  { %13 = vsyncpa [#allocation5], 0 }
   0x7   :  { %15 = vsyncpa [#allocation5 + $0x1], 0 }
   0x8   :  { %16 = vsyncpa [#allocation8], 0 }
   0x9   :  { %18 = vsyncpa [#allocation8 + $0x1], 0  ;;  %s2273_s18 = smov 0   ;;  %s2275_s19 = smov 0  }
   0xa   :  { %s2277_s20 = smov 0   ;;  %s2279_s21 = smov 0  }
   0xb   :  { %s2281_s22 = smov 0   ;;  %s2283_s23 = smov 0  }
   0xc   :  { %s2285_s24 = smov 0   ;;  %s2287_s25 = smov 0  }
   0xd LB: > { %3768 = sst [smem:[#allocation13_spill]] %s2227_s23  ;;  %s3730_s26 = sadd.s32 4294967295, %s2235_s25   ;;  %s2235_s25 = sphi %s2287_s25, %s24_s25   ;;  %s2231_s24 = sphi %s2285_s24, %s3921_s24   ;;  %s2227_s23 = sphi %s2283_s23, %s3920_s23   ;;  %s2223_s22 = sphi %s2281_s22, %s3926_s22   ;;  %s2219_s21 = sphi %s2279_s21, %s3925_s21   ;;  %s2215_s20 = sphi %s2277_s20, %s3924_s20   ;;  %s2211_s19 = sphi %s2275_s19, %s3923_s19   ;;  %s2207_s18 = sphi %s2273_s18, %s3922_s18  }
   0xe   : > { %3769 = sst [smem:[#allocation14_spill]] %s2231_s24  ;;  %s33_s27 = sadd.s32 1, %s2227_s23 }
   0xf   : > { %p34_p0 = scmp.ge.s32.totalorder %s33_s27, 2  ;;  %s36_s28 = sadd.s32 1, %s2231_s24 }
  0x10   : > { %s1683_s29 = sshll.u32 %s2231_s24, 1  ;;  %s47_s30 = sadd.s32 1, %s2215_s20 }
  0x11   : > { %s3928_s27 = smov (%p34_p0, %s33_s27), 0  ;;  %s3930_s28 = smov (!%p34_p0, %s36_s28), %s2231_s24 }
  0x12   : > { %3770 = sst [smem:[#allocation15_spill]] %s3928_s27  ;;  %s2320_s6 = sadd.s32 %s2227_s23, %s1683_s29 }
  0x13   : > { %p54_p1 = scmp.ne.s32.totalorder %s2215_s20, %s2211_s19  ;;  %p38_p2 = scmp.ge.s32.totalorder %s3930_s28, 2 }
  0x14   : > { %p55_p3 = scmp.eq.s32.totalorder %s2235_s25, 0  ;;  %p60_p4 = scmp.ne.s32.totalorder %s2211_s19, %s2207_s18 }
  0x15   : > { %p61_p5 = scmp.eq.s32.totalorder %s3730_s26, 0  ;;  %s3932_s28 = smov (%p38_p2, %s3930_s28), 0 }
  0x16   : > { %3771 = sst [smem:[#allocation16_spill]] %s3932_s28  ;;  %p56_p6 = por %p55_p3, %p54_p1 }
  0x17   : > { %p2330_p7 = por %p61_p5, %p60_p4  ;;  %s1684_s8 = sshll.u32 %s3932_s28, 1 }
  0x18   : > { %s43_s9 = sadd.s32 %s1684_s8, %s3928_s27  ;;  %p1785_p8 = scmp.lt.s32.totalorder %s2235_s25, 4 }
  0x19   : > { %s3772_s7 = scalar_select %p2330_p7, 1, 0 }
  0x1a   : > { %s44_s10 = ssub.s32 %s2320_s6, %s43_s9  ;;  %s2339_s11 = sand.u32 1, %s2215_s20  }
  0x1b   : > { %p45_p9 = scmp.eq.s32.totalorder %s44_s10, 0  ;;  %p2341_p10 = pnand %p1785_p8, %p56_p6 }
  0x1c   : > { %s3733_s13 = sand.u32 1, %s2235_s25   ;;  %s2347_s14 = sshll.u32 %s2339_s11, 6 }
  0x1d   : > { %s3773_s12 = scalar_select %p2341_p10, 1, 0 }
  0x1e   : > { %s2350_s15 = scalar_select %p45_p9, %s2215_s20, %s47_s30  }
  0x1f   : > { %s2353_s16 = sshll.u32 %s2320_s6, 10  ;;  %s3775_s1 = sld [smem:[#allocation47_spill]] }
  0x20   : > { %3774 = sst [smem:[#allocation17_spill]] %s2350_s15  ;;  %s255_s8 = scalar_lea.vmem [#allocation4], %s2347_s14 }
  0x21   : > { %s265_s9 = sshll.u32 %s255_s8, 4  ;;  %s2367_s30 = scalar_lea.sflag [#allocation5], %s3733_s13  ;;  %s2362_s9 = int_to_ptr.vmem [resolvable:$true] %s265_s9 }
  0x22   : > { %p2373_p13 = pneg %p2341_p10 }
  0x25   : > { %s2359_s29 = scalar_lea.hbm %s3775_s1, %s2353_s16  ;;  %s2016_s8 = scalar_lea.hbm %s3775_s1, 4096 }
  0x26   : > { %s2011_s10 = scalar_lea.hbm %s2359_s29, 1024  ;;  %p2017_p2 = scmp.lt.u32.totalorder %s2359_s29, %s3775_s1 }
  0x27   : > { %p2012_p12 = scmp.ne.s32.totalorder %s2359_s29, %s2011_s10  ;;  %p2018_p3 = scmp.lt.u32.totalorder %s2016_s8, %s2011_s10 }
  0x28   : > { %p2020_p5 = scmp.lt.u32.totalorder %s2011_s10, %s2359_s29 }
  0x29   : > { %p2014_p0 = pnand %p2373_p13, %p2012_p12  ;;  %p2019_p4 = por %p2018_p3, %p2017_p2 }
  0x2b   : > { %p2015_p1 = pneg %p2014_p0  ;;  %p2021_p6 = por %p2020_p5, %p2019_p4 }
  0x2d   : > { %p2022_p8 = pnand %p2021_p6, %p2015_p1 }
  0x2f   : > { %2025 = shalt.err (!%p2022_p8)
}
  0x30   : > { %s2026_s13 = scalar_lea.vmem %s2362_s9, 1024  ;;  %s2237_s17 = smov [#allocation4]  }
  0x31   : > { %p2027_p9 = scmp.ne.s32.totalorder %s2362_s9, %s2026_s13  ;;  %s2031_s18 = sshll.u32 %s2237_s17, 4  ;;  %s2032_s18 = int_to_ptr.vmem [resolvable:$false] %s2031_s18 }
  0x32   : > { %s2033_s27 = scalar_lea.vmem %s2032_s18, 2048  ;;  %p2034_p11 = scmp.lt.s32.totalorder %s2362_s9, %s2032_s18 }
  0x33   : > { %p2029_p12 = pnand %p2027_p9, %p2373_p13  ;;  %p2035_p7 = scmp.lt.s32.totalorder %s2033_s27, %s2026_s13 }
  0x35   : > { %p2030_p0 = pneg %p2029_p12  ;;  %p2036_p2 = por %p2035_p7, %p2034_p11 }
  0x37   : > { %p2037_p3 = pnand %p2036_p2, %p2030_p0 }
  0x39   : > { %2040 = shalt.err (!%p2037_p3)
}
  0x3a   : > { %1775 = dma.hbm_to_vmem [thread:$0]  (!%p2341_p10), %s2359_s29, 1024, %s2362_s9, %s2367_s30  }
  0x3b   : > { %p333_p1 = scmp.lt.s32.totalorder %s2235_s25, 5  ;;  %s3738_s28 = sshll.u32 %s2339_s11, 7 }
  0x3c   : > { %s3737_s13 = sshll.u32 %s2320_s6, 11  ;;  %p3777_p7 = scmp.ge.s32.totalorder %s2235_s25, 1 }
  0x3d   : > { %s3779_s3 = sld [smem:[#allocation48_spill]]  ;;  %s297_s29 = scalar_lea.vmem [#allocation7], %s3738_s28 }
  0x3e   : > { %p2402_p11 = pnand %p3777_p7, %p333_p1  ;;  %s307_s9 = sshll.u32 %s297_s29, 4  ;;  %s308_s9 = int_to_ptr.vmem [resolvable:$true] %s307_s9 }
  0x3f   : > { %s3780_s27 = sand.u32 1, %s2235_s25  }
  0x40   : > { %s3778_s10 = scalar_select %p2402_p11, 1, 0 }
  0x41   : > { %s2417_s1 = scalar_lea.sflag [#allocation8], %s3780_s27 }
  0x43   : > { %s2411_s18 = scalar_lea.hbm %s3779_s3, %s3737_s13  ;;  %s2046_s17 = scalar_lea.hbm %s3779_s3, 8192 }
  0x44   : > { %s2041_s24 = scalar_lea.hbm %s2411_s18, 2048  ;;  %p2047_p8 = scmp.lt.u32.totalorder %s2411_s18, %s3779_s3 }
  0x45   : > { %p2042_p4 = scmp.ne.s32.totalorder %s2411_s18, %s2041_s24  ;;  %p2048_p9 = scmp.lt.u32.totalorder %s2046_s17, %s2041_s24 }
  0x46   : > { %p2050_p0 = scmp.lt.u32.totalorder %s2041_s24, %s2411_s18 }
  0x47   : > { %p2044_p5 = pnand %p2042_p4, %p2373_p13  ;;  %p2049_p12 = por %p2048_p9, %p2047_p8 }
  0x49   : > { %p2045_p6 = pneg %p2044_p5  ;;  %p2051_p2 = por %p2050_p0, %p2049_p12 }
  0x4b   : > { %p2052_p3 = pnand %p2051_p2, %p2045_p6 }
  0x4d   : > { %2055 = shalt.err (!%p2052_p3)
}
  0x4e   : > { %s2056_s29 = scalar_lea.vmem %s308_s9, 2048  ;;  %s2238_s27 = smov [#allocation7]  }
  0x4f   : > { %p2057_p1 = scmp.ne.s32.totalorder %s308_s9, %s2056_s29  ;;  %s2061_s28 = sshll.u32 %s2238_s27, 4  ;;  %s2062_s28 = int_to_ptr.vmem [resolvable:$false] %s2061_s28 }
  0x50   : > { %s2063_s23 = scalar_lea.vmem %s2062_s28, 4096  ;;  %p2064_p5 = scmp.lt.s32.totalorder %s308_s9, %s2062_s28 }
  0x51   : > { %p2059_p7 = pnand %p2057_p1, %p2373_p13  ;;  %p2065_p11 = scmp.lt.s32.totalorder %s2063_s23, %s2056_s29 }
  0x53   : > { %p2060_p4 = pneg %p2059_p7  ;;  %p2066_p10 = por %p2065_p11, %p2064_p5 }
  0x55   : > { %p2067_p8 = pnand %p2066_p10, %p2060_p4 }
  0x57   : > { %2070 = shalt.err (!%p2067_p8)
}
  0x58   : > { %p3781_p9 = scmp.ne.s32.totalorder %s3773_s12, 0  ;;  %s3782_s24 = sshll.u32 %s2320_s6, 11 }
  0x59   : > { %s3783_s0 = sld [smem:[#allocation46_spill]]  ;;  %s3784_s28 = sshll.u32 %s2339_s11, 7 }
  0x5a   : > { %1781 = dma.hbm_to_vmem [thread:$0]  (!%p3781_p9), %s2411_s18, 2048, %s308_s9, %s2417_s1  }
  0x5b   : > { %s234_s17 = scalar_lea.vmem [#allocation2], %s3784_s28  ;;  %s2452_s3 = scalar_lea.hbm %s3726_s2, %s2353_s16 }
  0x5c   : > { %s244_s29 = sshll.u32 %s234_s17, 4  ;;  %s231_s6 = scalar_lea.sflag [#allocation3], %s2339_s11  ;;  %s2446_s29 = int_to_ptr.vmem [resolvable:$true] %s244_s29 }
  0x5f   : > { %s2442_s8 = scalar_lea.hbm %s3783_s0, %s3782_s24  ;;  %s2076_s15 = scalar_lea.hbm %s3783_s0, 8192 }
  0x60   : > { %s2071_s18 = scalar_lea.hbm %s2442_s8, 2048  ;;  %p2077_p12 = scmp.lt.u32.totalorder %s2442_s8, %s3783_s0 }
  0x61   : > { %p2072_p10 = scmp.ne.s32.totalorder %s2442_s8, %s2071_s18  ;;  %p2078_p0 = scmp.lt.u32.totalorder %s2076_s15, %s2071_s18 }
  0x62   : > { %p2080_p3 = scmp.lt.u32.totalorder %s2071_s18, %s2442_s8 }
  0x63   : > { %p2074_p11 = pnand %p2072_p10, %p2373_p13  ;;  %p2079_p2 = por %p2078_p0, %p2077_p12 }
  0x65   : > { %p2075_p6 = pneg %p2074_p11  ;;  %p2081_p1 = por %p2080_p3, %p2079_p2 }
  0x67   : > { %p2082_p7 = pnand %p2081_p1, %p2075_p6 }
  0x69   : > { %2085 = shalt.err (!%p2082_p7)
}
  0x6a   : > { %s2086_s11 = scalar_lea.vmem %s2446_s29, 2048  ;;  %s2239_s17 = smov [#allocation2]  }
  0x6b   : > { %p2087_p4 = scmp.ne.s32.totalorder %s2446_s29, %s2086_s11  ;;  %s2091_s27 = sshll.u32 %s2239_s17, 4  ;;  %s2092_s27 = int_to_ptr.vmem [resolvable:$false] %s2091_s27 }
  0x6c   : > { %s2093_s23 = scalar_lea.vmem %s2092_s27, 4096  ;;  %p2094_p10 = scmp.lt.s32.totalorder %s2446_s29, %s2092_s27 }
  0x6d   : > { %p2089_p5 = pnand %p2087_p4, %p2373_p13  ;;  %p2095_p11 = scmp.lt.s32.totalorder %s2093_s23, %s2086_s11 }
  0x6f   : > { %p2090_p8 = pneg %p2089_p5  ;;  %p2096_p12 = por %p2095_p11, %p2094_p10 }
  0x71   : > { %p2097_p0 = pnand %p2096_p12, %p2090_p8 }
  0x73   : > { %2100 = shalt.err (!%p2097_p0)
}
  0x74   : > { %1772 = dma.hbm_to_vmem [thread:$0]  (!%p3781_p9), %s2442_s8, 2048, %s2446_s29, %s231_s6  }
  0x75   : > { %s276_s18 = scalar_lea.vmem [#allocation6], %s2347_s14  ;;  %s2481_s13 = scalar_lea.hbm %s3728_s4, %s2353_s16 }
  0x76   : > { %s286_s9 = sshll.u32 %s276_s18, 4  ;;  %s2101_s28 = scalar_lea.hbm %s2452_s3, 1024  ;;  %s287_s9 = int_to_ptr.vmem [resolvable:$true] %s286_s9 }
  0x77   : > { %p2102_p6 = scmp.ne.s32.totalorder %s2452_s3, %s2101_s28  ;;  %s2106_s27 = scalar_lea.hbm %s3726_s2, 4096 }
  0x78   : > { %p2107_p1 = scmp.lt.u32.totalorder %s2452_s3, %s3726_s2  ;;  %p2108_p7 = scmp.lt.u32.totalorder %s2106_s27, %s2101_s28 }
  0x79   : > { %p2104_p2 = pnand %p2102_p6, %p2373_p13  ;;  %p2110_p5 = scmp.lt.u32.totalorder %s2101_s28, %s2452_s3 }
  0x7a   : > { %p2109_p4 = por %p2108_p7, %p2107_p1 }
  0x7b   : > { %p2105_p3 = pneg %p2104_p2 }
  0x7c   : > { %p2111_p8 = por %p2110_p5, %p2109_p4 }
  0x7e   : > { %p2112_p10 = pnand %p2111_p8, %p2105_p3 }
  0x80   : > { %2115 = shalt.err (!%p2112_p10)
}
  0x81   : > { %s2116_s16 = scalar_lea.vmem %s287_s9, 1024  ;;  %s2240_s8 = smov [#allocation6]  }
  0x82   : > { %p2117_p11 = scmp.ne.s32.totalorder %s287_s9, %s2116_s16  ;;  %s2121_s29 = sshll.u32 %s2240_s8, 4  ;;  %s2122_s29 = int_to_ptr.vmem [resolvable:$false] %s2121_s29 }
  0x83   : > { %s2123_s6 = scalar_lea.vmem %s2122_s29, 2048  ;;  %p2124_p6 = scmp.lt.s32.totalorder %s287_s9, %s2122_s29 }
  0x84   : > { %p2119_p12 = pnand %p2117_p11, %p2373_p13  ;;  %p2125_p2 = scmp.lt.s32.totalorder %s2123_s6, %s2116_s16 }
  0x86   : > { %p2120_p0 = pneg %p2119_p12  ;;  %p2126_p9 = por %p2125_p2, %p2124_p6 }
  0x88   : > { %p2127_p1 = pnand %p2126_p9, %p2120_p0 }
  0x8a   : > { %2130 = shalt.err (!%p2127_p1)
}
  0x8b   : > { %p3785_p7 = scmp.ne.s32.totalorder %s3773_s12, 0  ;;  %s318_s0 = scalar_lea.vmem [#allocation9], %s2347_s14 }
  0x8c   : > { %s328_s18 = sshll.u32 %s318_s0, 4  ;;  %s2131_s24 = scalar_lea.hbm %s2481_s13, 1024  ;;  %s329_s18 = int_to_ptr.vmem [resolvable:$true] %s328_s18 }
  0x8d   : > { %1778 = dma.hbm_to_vmem [thread:$0]  (!%p3785_p7), %s2452_s3, 1024, %s287_s9, %s2367_s30  }
  0x8e   : > { %p2132_p3 = scmp.ne.s32.totalorder %s2481_s13, %s2131_s24  ;;  %s2136_s11 = scalar_lea.hbm %s3728_s4, 4096 }
  0x8f   : > { %p2137_p5 = scmp.lt.u32.totalorder %s2481_s13, %s3728_s4  ;;  %p2138_p8 = scmp.lt.u32.totalorder %s2136_s11, %s2131_s24 }
  0x90   : > { %p2134_p4 = pnand %p2132_p3, %p2373_p13  ;;  %p2140_p11 = scmp.lt.u32.totalorder %s2131_s24, %s2481_s13 }
  0x91   : > { %p2139_p10 = por %p2138_p8, %p2137_p5 }
  0x92   : > { %p2135_p9 = pneg %p2134_p4 }
  0x93   : > { %p2141_p12 = por %p2140_p11, %p2139_p10 }
  0x95   : > { %p2142_p0 = pnand %p2141_p12, %p2135_p9 }
  0x97   : > { %2145 = shalt.err (!%p2142_p0)
}
  0x98   : > { %s2146_s3 = scalar_lea.vmem %s329_s18, 1024  ;;  %s2241_s14 = smov [#allocation9]  }
  0x99   : > { %p2147_p6 = scmp.ne.s32.totalorder %s329_s18, %s2146_s3  ;;  %s2151_s30 = sshll.u32 %s2241_s14, 4  ;;  %s2152_s30 = int_to_ptr.vmem [resolvable:$false] %s2151_s30 }
  0x9a   : > { %s2153_s9 = scalar_lea.vmem %s2152_s30, 2048  ;;  %p2154_p3 = scmp.lt.s32.totalorder %s329_s18, %s2152_s30 }
  0x9b   : > { %p2149_p2 = pnand %p2147_p6, %p2373_p13  ;;  %p2155_p4 = scmp.lt.s32.totalorder %s2153_s9, %s2146_s3 }
  0x9d   : > { %p2150_p1 = pneg %p2149_p2  ;;  %p2156_p7 = por %p2155_p4, %p2154_p3 }
  0x9f   : > { %p2157_p5 = pnand %p2156_p7, %p2150_p1 }
  0xa1   : > { %2160 = shalt.err (!%p2157_p5)
}
  0xa2   : > { %p3786_p8 = scmp.ne.s32.totalorder %s3773_s12, 0  ;;  %p3787_p9 = scmp.ne.s32.totalorder %s3778_s10, 0 }
  0xa4   : > { %1784 = dma.hbm_to_vmem [thread:$0]  (!%p3786_p8), %s2481_s13, 1024, %s329_s18, %s2417_s1  }
  0xa5   : > { %337 = sbr.rel (%p3787_p9) target bundleno = 431 (0x1af), region = 40 }
  0xac   : > { %s339_s26 = sand.u32 1, %s2211_s19   ;;  %p3788_p13 = scmp.ne.s32.totalorder %s3772_s7, 0 }
  0xad   : > { %s1716_s23 = sshll.u32 %s339_s26, 7  ;;  %s340_s16 = scalar_lea.sflag [#allocation3], %s339_s26 }
  0xae   : > { %s2523_s8 = scalar_lea.vmem [#allocation2], %s1716_s23 }
  0xaf   : > { %2194 = dma.done.wait (%p3788_p13), %s340_s16, 2048  }
  0xb0   : > { %2196 = vsyncadd (%p3788_p13), %s340_s16, 4294965248  ;;  %s3789_s12 = sadd.s32 4294967295, %s2235_s25   ;;  %s1717_s1 = sshll.u32 %s339_s26, 6 }
  0xb1   : > { %s348_s29 = sand.u32 1, %s3789_s12   ;;  %s2531_s10 = scalar_lea.vmem [#allocation4], %s1717_s1 }
  0xb2   : > { %s349_s13 = scalar_lea.sflag [#allocation5], %s348_s29 }
  0xb3   : > { %2198 = dma.done.wait (%p3788_p13), %s349_s13, 2048  }
  0xb4   : > { %2200 = vsyncadd (%p3788_p13), %s349_s13, 4294965248  ;;  %s2537_s6 = scalar_lea.vmem [#allocation6], %s1717_s1  ;;  %s367_s0 = scalar_lea.sflag [#allocation8], %s348_s29 }
  0xb5   : > { %s2539_s18 = scalar_lea.vmem [#allocation7], %s1716_s23 }
  0xb6   : > { %2202 = dma.done.wait (%p3788_p13), %s367_s0, 3072  }
  0xb7   : > { %2204 = vsyncadd (%p3788_p13), %s367_s0, 4294964224  ;;  %s1721_s24 = sshll.u32 %s2223_s22, 3  ;;  %s2551_s27 = scalar_lea.vmem [#allocation9], %s1717_s1 }
  0xb8   : > { %p442_p7 = scmp.lt.s32.totalorder %s1721_s24, 15  ;;  %p1723_p10 = scmp.ne.s32.totalorder %s2219_s21, 0 }
  0xb9   : > { %v2242_v0 = vmov (!%p1723_p10), 0.0  }
  0xba   : > { %s3934_s24 = smov (!%p442_p7, %s1721_s24), 15  ;;  %450 = sbr.rel (%p1723_p10) target bundleno = 193 (0xc1), region = 64 }
  0xbb   : > { %s1722_s15 = sshll.u32 %s3934_s24, 3 }
  0xbc   : > { %s2549_s17 = scalar_lea.vmem %s3729_s5, %s1722_s15 }
  0xbd   : > { %451 = vst [vmem:[%s2549_s17] sm:$0xff] (!%p1723_p10), %v2242_v0  ;;  %452 = vst [vmem:[%s2549_s17 + $0x8] sm:$0xff] (!%p1723_p10), %v2242_v0 }
  0xbe   : > { %453 = vst [vmem:[%s2549_s17 + $0x10] sm:$0xff] (!%p1723_p10), %v2242_v0  ;;  %454 = vst [vmem:[%s2549_s17 + $0x18] sm:$0xff] (!%p1723_p10), %v2242_v0 }
  0xbf   : > { %455 = vst [vmem:[%s2549_s17 + $0x20] sm:$0xff] (!%p1723_p10), %v2242_v0  ;;  %456 = vst [vmem:[%s2549_s17 + $0x28] sm:$0xff] (!%p1723_p10), %v2242_v0 }
  0xc0   : > { %457 = vst [vmem:[%s2549_s17 + $0x30] sm:$0xff] (!%p1723_p10), %v2242_v0  ;;  %458 = vst [vmem:[%s2549_s17 + $0x38] sm:$0xff] (!%p1723_p10), %v2242_v0 }
  0xc1 PF: > { %v2563_v1 = vld [vmem:[%s2523_s8] sm:$0xff]  ;;  %v2568_v4 = vld [vmem:[%s2523_s8 + $0x8] sm:$0xff]  ;;  %v2571_v5 = vld [vmem:[%s2523_s8 + $0x10] sm:$0xff] }
  0xc2   : > { %v462_v2 = vld [vmem:[%s2537_s6] sm:$0xff]   ;;  %v467_v3 = vand.u32 2147483647, %v2563_v1  ;;  %v529_v6 = vand.u32 2147483647, %v2568_v4  ;;  %v2578_v11 = vld [vmem:[%s2523_s8 + $0x18] sm:$0xff] }
  0xc3   : > { %v2574_v8 = vunpack.c.l.bf16 %v462_v2  ;;  %v591_v10 = vand.u32 2147483647, %v2571_v5  ;;  %v2580_v13 = vunpack.c.h.bf16 %v462_v2  ;;  %v460_v14 = vld [vmem:[%s2531_s10] sm:$0xff]   ;;  %v586_v16 = vld [vmem:[%s2537_s6 + $0x8] sm:$0xff]   ;;  %vm483_vm0 = vcmp.ge.f32.partialorder %v2563_v1, 0.0  ;;  %v2618_v35 = vld [vmem:[%s2523_s8 + $0x30] sm:$0xff] }
  0xc4   : > { %v468_v7 = vsub.f32 0.0, %v467_v3  ;;  %v530_v9 = vsub.f32 0.0, %v529_v6  ;;  %v653_v18 = vand.u32 2147483647, %v2578_v11  ;;  %v2587_v19 = vld [vmem:[%s2523_s8 + $0x20] sm:$0xff]  ;;  %vm545_vm1 = vcmp.ge.f32.partialorder %v2568_v4, 0.0 }
  0xc5   : > { %v592_v17 = vsub.f32 0.0, %v591_v10  ;;  %v2592_v20 = vsel %vm483_vm0, %v2574_v8, 0.0  ;;  %v2595_v22 = vunpack.c.l.bf16 %v460_v14  ;;  %v2600_v23 = vsel %vm545_vm1, %v2580_v13, 0.0  ;;  %v2605_v26 = vld [vmem:[%s2523_s8 + $0x28] sm:$0xff]  ;;  %v2630_v41 = vld [vmem:[%s2523_s8 + $0x38] sm:$0xff]  ;;  %v710_v42 = vld [vmem:[%s2537_s6 + $0x10] sm:$0xff]  }
  0xc6   : > { %v469_v12 = vmul.f32 1.442695, %v468_v7  ;;  %v531_v15 = vmul.f32 1.442695, %v530_v9  ;;  %v2602_v24 = vunpack.c.l.bf16 %v586_v16  ;;  %v654_v25 = vsub.f32 0.0, %v653_v18  ;;  %v584_v30 = vld [vmem:[%s2531_s10 + $0x8] sm:$0xff]  }
  0xc7   : > { %v593_v21 = vmul.f32 1.442695, %v592_v17  ;;  %v2607_v27 = vunpack.c.h.bf16 %v460_v14  ;;  %v715_v28 = vand.u32 2147483647, %v2587_v19  ;;  %v511_v29 = vmul.f32 %v2592_v20, %v2595_v22  ;;  %3792 = vst [vmem:[#allocation20_spill] sm:$0xff] %v2630_v41  ;;  %v708_v58 = vld [vmem:[%s2531_s10 + $0x10] sm:$0xff]  }
  0xc8   : > { %1851 = vpow2.f32 %v469_v12  ;;  %3790 = vst [vmem:[#allocation18_spill] sm:$0xff] %v2602_v24  ;;  %v655_v31 = vmul.f32 1.442695, %v654_v25  ;;  %vm607_vm2 = vcmp.ge.f32.partialorder %v2571_v5, 0.0  ;;  %v777_v34 = vand.u32 2147483647, %v2605_v26 }
  0xc9   : > { %1853 = vpow2.f32 %v531_v15  ;;  %v573_v32 = vmul.f32 %v2600_v23, %v2607_v27  ;;  %v716_v33 = vsub.f32 0.0, %v715_v28  ;;  %v2623_v36 = vsel %vm607_vm2, %v2602_v24, 0.0  ;;  %v834_v7 = vld [vmem:[%s2537_s6 + $0x18] sm:$0xff]  }
  0xca   : > { %1855 = vpow2.f32 %v593_v21  ;;  %v2625_v37 = vunpack.c.l.bf16 %v584_v30  ;;  %v2627_v38 = vunpack.c.h.bf16 %v586_v16  ;;  %v778_v40 = vsub.f32 0.0, %v777_v34  ;;  %v832_v28 = vld [vmem:[%s2531_s10 + $0x18] sm:$0xff]  }
  0xcb   : > { %1857 = vpow2.f32 %v655_v31  ;;  %v717_v39 = vmul.f32 1.442695, %v716_v33  ;;  %v839_v43 = vand.u32 2147483647, %v2618_v35  ;;  %v574_v44 = vadd.f32 %v573_v32, %v511_v29 }
  0xcc   : > { %3791 = vst [vmem:[#allocation19_spill] sm:$0xff] %v2627_v38  ;;  %v635_v45 = vmul.f32 %v2623_v36, %v2625_v37  ;;  %v779_v46 = vmul.f32 1.442695, %v778_v40  ;;  %vm669_vm3 = vcmp.ge.f32.partialorder %v2578_v11, 0.0  ;;  %v901_v49 = vand.u32 2147483647, %v2630_v41 }
  0xcd   : > { %1859 = vpow2.f32 %v717_v39  ;;  %v840_v48 = vsub.f32 0.0, %v839_v43  ;;  %v2645_v51 = vsel %vm669_vm3, %v2627_v38, 0.0  ;;  %v2647_v52 = vunpack.c.l.bf16 %v710_v42 }
  0xce   : > { %1861 = vpow2.f32 %v779_v46  ;;  %v2649_v53 = vunpack.c.h.bf16 %v584_v30  ;;  %v902_v55 = vsub.f32 0.0, %v901_v49  ;;  %v636_v57 = vadd.f32 %v635_v45, %v574_v44 }
  0xcf   : > { %3793 = vst [vmem:[#allocation21_spill] sm:$0xff] %v2647_v52  ;;  %v841_v54 = vmul.f32 1.442695, %v840_v48  ;;  %vm731_vm4 = vcmp.ge.f32.partialorder %v2587_v19, 0.0  ;;  %v2669_v3 = vunpack.c.l.bf16 %v708_v58  ;;  %v2671_v6 = vunpack.c.h.bf16 %v710_v42 }
  0xd0   : > { %v697_v60 = vmul.f32 %v2645_v51, %v2649_v53  ;;  %v2665_v63 = vsel %vm731_vm4, %v2647_v52, 0.0  ;;  %v903_v0 = vmul.f32 1.442695, %v902_v55  ;;  %vm793_vm5 = vcmp.ge.f32.partialorder %v2605_v26, 0.0 }
  0xd1   : > { %3794 = vst [vmem:[#allocation22_spill] sm:$0xff] %v2671_v6  ;;  %v759_v10 = vmul.f32 %v2665_v63, %v2669_v3  ;;  %v2686_v15 = vsel %vm793_vm5, %v2671_v6, 0.0  ;;  %v2688_v16 = vunpack.c.l.bf16 %v834_v7  ;;  %v2696_v21 = vunpack.c.h.bf16 %v708_v58 }
  0xd2   : > { %v2636_v47 = vpop.eup %1851  ;;  %v698_v9 = vadd.f32 %v697_v60, %v636_v57  ;;  %vm855_vm6 = vcmp.ge.f32.partialorder %v2618_v35, 0.0  ;;  %v2711_v33 = vunpack.c.l.bf16 %v832_v28  ;;  %v575_v34 = vadd.f32 %v2600_v23, %v2592_v20 }
  0xd3   : > { %v2640_v50 = vpop.eup %1853  ;;  %v471_v59 = vadd.f32 1.0, %v2636_v47  ;;  %3795 = vst [vmem:[#allocation23_spill] sm:$0xff] %v2688_v16  ;;  %v821_v29 = vmul.f32 %v2686_v15, %v2696_v21  ;;  %v2709_v31 = vsel %vm855_vm6, %v2688_v16, 0.0  ;;  %v576_v39 = vadd.f32 %v2607_v27, %v2595_v22 }
  0xd4   : > { %v2651_v56 = vpop.eup %1855  ;;  %v533_v61 = vadd.f32 1.0, %v2640_v50  ;;  %v760_v25 = vadd.f32 %v759_v10, %v698_v9  ;;  %v883_v45 = vmul.f32 %v2709_v31, %v2711_v33  ;;  %v2723_v48 = vunpack.c.h.bf16 %v834_v7 }
  0xd5   : > { %v2660_v62 = vadd.f32 1.0, %v2651_v56  ;;  %1863 = vrcp.f32 %v471_v59  ;;  %v2667_v2 = vpop.eup %1857  ;;  %v474_v49 = vmul.f32 -0.5, %v2636_v47  ;;  %v2731_v55 = vunpack.c.h.bf16 %v832_v28 }
  0xd6   : > { %1865 = vpow2.f32 %v841_v54  ;;  %v2678_v12 = vadd.f32 1.0, %v2667_v2  ;;  %v822_v44 = vadd.f32 %v821_v29, %v760_v25  ;;  %3796 = vst [vmem:[#allocation24_spill] sm:$0xff] %v2723_v48  ;;  %v637_v57 = vadd.f32 %v2623_v36, %v575_v34 }
  0xd7   : > { %1867 = vrcp.f32 %v533_v61  ;;  %v2680_v14 = vpop.eup %1859  ;;  %v638_v58 = vadd.f32 %v2625_v37, %v576_v39  ;;  %v477_v7 = vand.u32 2147483647, %v2636_v47  ;;  %v536_v9 = vmul.f32 -0.5, %v2640_v50 }
  0xd8   : > { %1869 = vrcp.f32 %v2660_v62  ;;  %v2692_v17 = vadd.f32 1.0, %v2680_v14  ;;  %v2694_v18 = vpop.eup %1861  ;;  %v2743_v10 = vadd.f32 %v883_v45, %v822_v44  ;;  %vm917_vm7 = vcmp.ge.f32.partialorder %v2630_v41, 0.0 }
  0xd9   : > { %1871 = vpow2.f32 %v903_v0  ;;  %v2704_v30 = vadd.f32 1.0, %v2694_v18  ;;  %v2751_v28 = vsel %vm917_vm7, %v2723_v48, 0.0  ;;  %v475_v34 = vadd.f32 1.0, %v474_v49 }
  0xda   : > { %1873 = vrcp.f32 %v2678_v12  ;;  %vm2763_vm8 = vcmp.lt.f32.partialorder %v477_v7, 0.0004427343  ;;  %v550_v41 = vmax.f32 %v2568_v4, 0.0 }
  0xdb   : > { %1875 = vrcp.f32 %v2692_v17  ;;  %v476_v7 = vmul.f32 %v2636_v47, %v475_v34 }
  0xdc   : > { %1877 = vlog2.f32 %v471_v59 }
  0xdd   : > { %1879 = vlog2.f32 %v533_v61 }
  0xde   : > { %1881 = vrcp.f32 %v2704_v30 }
  0xdf   : > { %v1864_v32 = vpop.eup %1863  ;;  %1883 = vlog2.f32 %v2660_v62 }
  0xe0   : > { %v2717_v40 = vpop.eup %1865  ;;  %v484_v42 = vmul.f32 %v1864_v32, %v2636_v47 }
  0xe1   : > { %v1868_v43 = vpop.eup %1867  ;;  %v2739_v0 = vadd.f32 1.0, %v2717_v40 }
  0xe2   : > { %v1870_v46 = vpop.eup %1869  ;;  %v485_v20 = vsel %vm483_vm0, %v1864_v32, %v484_v42  ;;  %v546_v23 = vmul.f32 %v1868_v43, %v2640_v50  ;;  %v699_v42 = vadd.f32 %v2645_v51, %v637_v57 }
  0xe3   : > { %v2729_v54 = vpop.eup %1871  ;;  %v608_v59 = vmul.f32 %v1870_v46, %v2651_v56  ;;  %3797 = vst [vmem:[#allocation25_spill] sm:$0xff] %v2739_v0  ;;  %v486_v36 = vmul.f32 %v485_v20, %v2574_v8  ;;  %1885 = vrcp.f32 %v2739_v0  ;;  %v537_v20 = vadd.f32 1.0, %v536_v9 }
  0xe4   : > { %v1874_v60 = vpop.eup %1873  ;;  %v547_v61 = vsel %vm545_vm1, %v1868_v43, %v546_v23  ;;  %v700_v43 = vadd.f32 %v2649_v53, %v638_v58  ;;  %v2759_v44 = vadd.f32 1.0, %v2729_v54  ;;  %v489_v58 = vmul.f32 %v2595_v22, %v2563_v1 }
  0xe5   : > { %v548_v25 = vmul.f32 %v547_v61, %v2580_v13  ;;  %v609_v29 = vsel %vm607_vm2, %v1870_v46, %v608_v59  ;;  %v670_v32 = vmul.f32 %v1874_v60, %v2667_v2  ;;  %v1876_v39 = vpop.eup %1875  ;;  %v488_v46 = vmax.f32 %v2563_v1, 0.0 }
  0xe6   : > { %3798 = vst [vmem:[#allocation26_spill] sm:$0xff] %v2759_v44  ;;  %v1878_v23 = vpop.eup %1877  ;;  %v515_v49 = vmul.f32 %v486_v36, %v2595_v22  ;;  %v610_v57 = vmul.f32 %v609_v29, %v2602_v24  ;;  %v732_v61 = vmul.f32 %v1876_v39, %v2680_v14  ;;  %v539_v9 = vand.u32 2147483647, %v2640_v50 }
  0xe7   : > { %v577_v51 = vmul.f32 %v548_v25, %v2607_v27  ;;  %v1880_v62 = vpop.eup %1879  ;;  %v671_v59 = vsel %vm669_vm3, %v1874_v60, %v670_v32  ;;  %1887 = vrcp.f32 %v2759_v44  ;;  %v551_v29 = vmul.f32 %v2607_v27, %v2568_v4 }
  0xe8   : > { %v1882_v48 = vpop.eup %1881  ;;  %v598_v1 = vmul.f32 -0.5, %v2651_v56  ;;  %v579_v22 = vadd.f32 %v548_v25, %v486_v36  ;;  %v473_v24 = vmul.f32 0.6931472, %v1878_v23  ;;  %v538_v60 = vmul.f32 %v2640_v50, %v537_v20 }
  0xe9   : > { %1889 = vlog2.f32 %v2678_v12  ;;  %v578_v32 = vadd.f32 %v577_v51, %v515_v49  ;;  %v639_v47 = vmul.f32 %v610_v57, %v2625_v37  ;;  %v672_v34 = vmul.f32 %v671_v59, %v2627_v38  ;;  %v1884_v23 = vpop.eup %1883 }
  0xea   : > { %v535_v16 = vmul.f32 0.6931472, %v1880_v62  ;;  %v761_v44 = vadd.f32 %v2665_v63, %v699_v42  ;;  %v733_v0 = vsel %vm731_vm4, %v1876_v39, %v732_v61  ;;  %v794_v4 = vmul.f32 %v1882_v48, %v2694_v18 }
  0xeb   : > { %vm2791_vm9 = vcmp.lt.f32.partialorder %v539_v9, 0.0004427343  ;;  %v945_v50 = vmul.f32 %v2751_v28, %v2731_v55  ;;  %v762_v12 = vadd.f32 %v2669_v3, %v700_v43  ;;  %v490_v36 = vsub.f32 %v488_v46, %v489_v58 }
  0xec   : > { %v599_v25 = vadd.f32 1.0, %v598_v1  ;;  %v641_v20 = vadd.f32 %v610_v57, %v579_v22  ;;  %v479_v63 = vsel %vm2763_vm8, %v476_v7, %v473_v24  ;;  %v552_v42 = vsub.f32 %v550_v41, %v551_v29 }
  0xed   : > { %v601_v39 = vand.u32 2147483647, %v2651_v56  ;;  %v640_v49 = vadd.f32 %v639_v47, %v578_v32  ;;  %v701_v51 = vmul.f32 %v672_v34, %v2649_v53  ;;  %v734_v62 = vmul.f32 %v733_v0, %v2647_v52  ;;  %v1886_v61 = vpop.eup %1885 }
  0xee   : > { %v541_v59 = vsel %vm2791_vm9, %v538_v60, %v535_v16  ;;  %v823_v43 = vadd.f32 %v2686_v15, %v761_v44  ;;  %v795_v46 = vsel %vm793_vm5, %v1882_v48, %v794_v4  ;;  %v612_v24 = vmax.f32 %v2571_v5, 0.0 }
  0xef   : > { %v660_v41 = vmul.f32 -0.5, %v2667_v2  ;;  %v491_v45 = vadd.f32 %v490_v36, %v479_v63  ;;  %v600_v57 = vmul.f32 %v2651_v56, %v599_v25  ;;  %v613_v58 = vmul.f32 %v2625_v37, %v2571_v5 }
  0xf0   : > { %1891 = vlog2.f32 %v2692_v17  ;;  %v703_v0 = vadd.f32 %v672_v34, %v641_v20  ;;  %v553_v16 = vadd.f32 %v552_v42, %v541_v59  ;;  %v597_v7 = vmul.f32 0.6931472, %v1884_v23 }
  0xf1   : > { %vm2814_vm10 = vcmp.lt.f32.partialorder %v601_v39, 0.0004427343  ;;  %v1888_v48 = vpop.eup %1887  ;;  %v702_v44 = vadd.f32 %v701_v51, %v640_v49  ;;  %v763_v9 = vmul.f32 %v734_v62, %v2669_v3  ;;  %v796_v29 = vmul.f32 %v795_v46, %v2671_v6  ;;  %v3807_v49 = vld [vmem:[#allocation25_spill] sm:$0xff]  ;;  %v3808_v51 = vld [vmem:[#allocation23_spill] sm:$0xff]  ;;  %v3809_v46 = vld [vmem:[#allocation20_spill] sm:$0xff] }
  0xf2   : > { %v856_v56 = vmul.f32 %v1886_v61, %v2717_v40  ;;  %v2822_v5 = vadd.f32 %v945_v50, %v2743_v10  ;;  %v2825_v37 = vadd.f32 %v2709_v31, %v823_v43  ;;  %v824_v17 = vadd.f32 %v2696_v21, %v762_v12  ;;  %v2855_v43 = vld [vmem:[%s2539_s18] sm:$0xff]  ;;  %v3814_v39 = vld [vmem:[#allocation24_spill] sm:$0xff] }
  0xf3   : > { %v1890_v1 = vpop.eup %1889  ;;  %v661_v22 = vadd.f32 1.0, %v660_v41  ;;  %v492_v60 = vmul.f32 %v491_v45, %v2574_v8  ;;  %v614_v32 = vsub.f32 %v612_v24, %v613_v58  ;;  %v663_v47 = vand.u32 2147483647, %v2667_v2 }
  0xf4   : > { %1893 = vlog2.f32 %v2704_v30  ;;  %v765_v34 = vadd.f32 %v734_v62, %v703_v0  ;;  %v554_v4 = vmul.f32 %v553_v16, %v2580_v13  ;;  %v603_v10 = vsel %vm2814_vm10, %v600_v57, %v597_v7  ;;  %v2867_v7 = vld [vmem:[%s2539_s18 + $0x8] sm:$0xff] }
  0xf5   : > { %v722_v27 = vmul.f32 -0.5, %v2680_v14  ;;  %v764_v31 = vadd.f32 %v763_v9, %v702_v44  ;;  %v825_v50 = vmul.f32 %v796_v29, %v2696_v21  ;;  %v857_v12 = vsel %vm855_vm6, %v1886_v61, %v856_v56  ;;  %v3810_v9 = vld [vmem:[#allocation26_spill] sm:$0xff] }
  0xf6   : > { %v918_v36 = vmul.f32 %v1888_v48, %v2729_v54  ;;  %v659_v25 = vmul.f32 0.6931472, %v1890_v1  ;;  %v662_v30 = vmul.f32 %v2667_v2, %v661_v22  ;;  %v674_v20 = vmax.f32 %v2578_v11, 0.0 }
  0xf7   : > { %v675_v63 = vmul.f32 %v2649_v53, %v2578_v11  ;;  %v2844_v42 = vadd.f32 %v2711_v33, %v824_v17  ;;  %vm2846_vm11 = vcmp.lt.f32.partialorder %v663_v47, 0.0004427343  ;;  %v784_v23 = vmul.f32 -0.5, %v2694_v18 }
  0xf8   : > { %1895 = vlog2.f32 %v3807_v49  ;;  %v858_v62 = vmul.f32 %v857_v12, %v3808_v51  ;;  %v580_v2 = vadd.f32 %v554_v4, %v492_v60  ;;  %v723_v59 = vadd.f32 1.0, %v722_v27 }
  0xf9   : > { %v725_v61 = vand.u32 2147483647, %v2680_v14  ;;  %v2857_v53 = vadd.f32 %v825_v50, %v764_v31  ;;  %v919_v24 = vsel %vm917_vm7, %v1888_v48, %v918_v36  ;;  %v827_v41 = vadd.f32 %v796_v29, %v765_v34 }
  0xfa   : > { %v1892_v11 = vpop.eup %1891  ;;  %v615_v45 = vadd.f32 %v614_v32, %v603_v10  ;;  %v665_v57 = vsel %vm2846_vm11, %v662_v30, %v659_v25  ;;  %v676_v58 = vsub.f32 %v674_v20, %v675_v63  ;;  %v736_v0 = vmax.f32 %v2587_v19, 0.0 }
  0xfb   : > { %v737_v16 = vmul.f32 %v2669_v3, %v2587_v19  ;;  %v785_v15 = vadd.f32 1.0, %v784_v23  ;;  %v846_v44 = vmul.f32 -0.5, %v2717_v40  ;;  %1897 = vlog2.f32 %v3810_v9  ;;  %v3813_v19 = vld [vmem:[#allocation18_spill] sm:$0xff] }
  0xfc   : > { %v493_v48 = vand.u32 2147483647, %v2855_v43  ;;  %v887_v29 = vmul.f32 %v858_v62, %v2711_v33  ;;  %v721_v56 = vmul.f32 0.6931472, %v1892_v11  ;;  %v724_v1 = vmul.f32 %v2680_v14, %v723_v59 }
  0xfd   : > { %vm2874_vm12 = vcmp.lt.f32.partialorder %v725_v61, 0.0004427343  ;;  %v616_v3 = vmul.f32 %v615_v45, %v3813_v19  ;;  %v787_v60 = vand.u32 2147483647, %v2694_v18  ;;  %v555_v47 = vand.u32 2147483647, %v2867_v7 }
  0xfe   : > { %v1894_v22 = vpop.eup %1893  ;;  %v494_v32 = vsub.f32 0.0, %v493_v48  ;;  %v677_v34 = vadd.f32 %v676_v58, %v665_v57  ;;  %v798_v4 = vmax.f32 %v2605_v26, 0.0  ;;  %v799_v10 = vmul.f32 %v2696_v21, %v2605_v26  ;;  %v2900_v45 = vld [vmem:[%s2539_s18 + $0x10] sm:$0xff] }
  0xff   : > { %v581_v14 = vadd.f32 %v2580_v13, %v2574_v8  ;;  %v738_v27 = vsub.f32 %v736_v0, %v737_v16  ;;  %v786_v31 = vmul.f32 %v2694_v18, %v785_v15  ;;  %v847_v50 = vadd.f32 1.0, %v846_v44  ;;  %v2908_v44 = vld [vmem:[%s2539_s18 + $0x18] sm:$0xff] }
 0x100   : > { %v908_v12 = vmul.f32 -0.5, %v2729_v54  ;;  %v727_v36 = vsel %vm2874_vm12, %v724_v1, %v721_v56  ;;  %v783_v25 = vmul.f32 0.6931472, %v1894_v22  ;;  %v495_v30 = vmul.f32 1.442695, %v494_v32  ;;  %v465_v32 = vld [vmem:[%s2551_s27] sm:$0xff]  }
 0x101   : > { %v556_v20 = vsub.f32 0.0, %v555_v47  ;;  %v920_v23 = vmul.f32 %v919_v24, %v3814_v39  ;;  %v642_v26 = vadd.f32 %v616_v3, %v580_v2  ;;  %vm2891_vm13 = vcmp.lt.f32.partialorder %v787_v60, 0.0004427343 }
 0x102   : > { %v1896_v63 = vpop.eup %1895  ;;  %v849_v18 = vand.u32 2147483647, %v2717_v40  ;;  %v678_v49 = vmul.f32 %v677_v34, %v2627_v38  ;;  %v800_v59 = vsub.f32 %v798_v4, %v799_v10  ;;  %v860_v61 = vmax.f32 %v2618_v35, 0.0 }
 0x103   : > { %v643_v11 = vadd.f32 %v3813_v19, %v581_v14  ;;  %v739_v57 = vadd.f32 %v738_v27, %v727_v36  ;;  %v848_v24 = vmul.f32 %v2717_v40, %v847_v50  ;;  %v861_v2 = vmul.f32 %v2711_v33, %v2618_v35 }
 0x104   : > { %v909_v58 = vadd.f32 1.0, %v908_v12  ;;  %v789_v0 = vsel %vm2891_vm13, %v786_v31, %v783_v25  ;;  %v845_v16 = vmul.f32 0.6931472, %v1896_v63  ;;  %1899 = vpow2.f32 %v495_v30  ;;  %v2933_v31 = vld [vmem:[%s2539_s18 + $0x20] sm:$0xff] }
 0x105   : > { %v557_v15 = vmul.f32 1.442695, %v556_v20  ;;  %v1898_v9 = vpop.eup %1897  ;;  %v889_v48 = vadd.f32 %v858_v62, %v827_v41  ;;  %vm2910_vm14 = vcmp.lt.f32.partialorder %v849_v18, 0.0004427343  ;;  %v911_v40 = vand.u32 2147483647, %v2729_v54 }
 0x106   : > { %v617_v35 = vand.u32 2147483647, %v2900_v45  ;;  %v704_v33 = vadd.f32 %v678_v49, %v642_v26  ;;  %v922_v1 = vmax.f32 %v3809_v46, 0.0  ;;  %v923_v17 = vmul.f32 %v2731_v55, %v3809_v46  ;;  %v1724_v18 = vld [vmem:[%s2549_s17 + $0x8] sm:$0xff]  ;;  %v1726_v49 = vld [vmem:[%s2549_s17 + $0x10] sm:$0xff] }
 0x107   : > { %v705_v22 = vadd.f32 %v2627_v38, %v643_v11  ;;  %v740_v62 = vmul.f32 %v739_v57, %v2647_v52  ;;  %v801_v41 = vadd.f32 %v800_v59, %v789_v0  ;;  %v862_v3 = vsub.f32 %v860_v61, %v861_v2  ;;  %v1728_v0 = vld [vmem:[%s2549_s17 + $0x18] sm:$0xff] }
 0x108   : > { %v910_v60 = vmul.f32 %v2729_v54, %v909_v58  ;;  %v851_v47 = vsel %vm2910_vm14, %v848_v24, %v845_v16  ;;  %v907_v34 = vmul.f32 0.6931472, %v1898_v9  ;;  %1901 = vpow2.f32 %v557_v15  ;;  %v955_v54 = vld [vmem:[%s2549_s17] sm:$0xff] }
 0x109   : > { %v679_v4 = vand.u32 2147483647, %v2908_v44  ;;  %v888_v10 = vadd.f32 %v887_v29, %v2857_v53  ;;  %v949_v46 = vmul.f32 %v920_v23, %v2731_v55  ;;  %vm2928_vm15 = vcmp.lt.f32.partialorder %v911_v40, 0.0004427343 }
 0x10a   : > { %v618_v27 = vsub.f32 0.0, %v617_v35  ;;  %v947_v50 = vadd.f32 %v2751_v28, %v2825_v37  ;;  %v924_v12 = vsub.f32 %v922_v1, %v923_v17  ;;  %v767_v36 = vadd.f32 %v2647_v52, %v705_v22  ;;  %v713_v17 = vld [vmem:[%s2551_s27 + $0x10] sm:$0xff]  }
 0x10b   : > { %v466_v25 = vunpack.c.l.bf16 %v465_v32  ;;  %v766_v53 = vadd.f32 %v740_v62, %v704_v33  ;;  %v802_v29 = vmul.f32 %v801_v41, %v2671_v6  ;;  %v863_v30 = vadd.f32 %v862_v3, %v851_v47 }
 0x10c   : > { %v528_v20 = vunpack.c.h.bf16 %v465_v32  ;;  %v948_v63 = vadd.f32 %v2731_v55, %v2844_v42  ;;  %v913_v26 = vsel %vm2928_vm15, %v910_v60, %v907_v34  ;;  %v680_v21 = vsub.f32 0.0, %v679_v4  ;;  %v1730_v55 = vld [vmem:[%s2549_s17 + $0x20] sm:$0xff] }
 0x10d   : > { %v741_v28 = vand.u32 2147483647, %v2933_v31  ;;  %v2946_v37 = vadd.f32 %v955_v54, %v2822_v5  ;;  %v950_v59 = vadd.f32 %v949_v46, %v888_v10  ;;  %v951_v61 = vadd.f32 %v920_v23, %v889_v48  ;;  %v2958_v5 = vld [vmem:[%s2539_s18 + $0x28] sm:$0xff] }
 0x10e   : > { %v619_v11 = vmul.f32 1.442695, %v618_v27  ;;  %v2950_v57 = vpop.eup %1899  ;;  %v829_v42 = vadd.f32 %v2671_v6, %v767_v36  ;;  %v497_v24 = vmax.f32 %v2855_v43, 0.0  ;;  %v498_v2 = vmul.f32 %v466_v25, %v2855_v43  ;;  %v589_v48 = vld [vmem:[%s2551_s27 + $0x8] sm:$0xff]  }
 0x10f   : > { %v559_v58 = vmax.f32 %v2867_v7, 0.0  ;;  %v828_v16 = vadd.f32 %v802_v29, %v766_v53  ;;  %v864_v15 = vmul.f32 %v863_v30, %v3808_v51  ;;  %v925_v23 = vadd.f32 %v924_v12, %v913_v26  ;;  %v836_v29 = vld [vmem:[%s2539_s18 + $0x30] sm:$0xff]  ;;  %v837_v30 = vld [vmem:[%s2551_s27 + $0x18] sm:$0xff]  }
 0x110   : > { %v560_v9 = vmul.f32 %v528_v20, %v2867_v7  ;;  %v2964_v56 = vadd.f32 %v1724_v18, %v947_v50  ;;  %v2966_v40 = vadd.f32 %v1726_v49, %v948_v63  ;;  %v681_v35 = vmul.f32 1.442695, %v680_v21  ;;  %v1734_v63 = vld [vmem:[%s2549_s17 + $0x30] sm:$0xff] }
 0x111   : > { %v742_v33 = vsub.f32 0.0, %v741_v28  ;;  %v2968_v43 = vadd.f32 %v1730_v55, %v951_v61  ;;  %v500_v1 = vadd.f32 1.0, %v2950_v57  ;;  %1903 = vpow2.f32 %v619_v11  ;;  %v1732_v61 = vld [vmem:[%s2549_s17 + $0x28] sm:$0xff] }
 0x112   : > { %v803_v22 = vand.u32 2147483647, %v2958_v5  ;;  %v2973_v62 = vpop.eup %1901  ;;  %v2975_v41 = vadd.f32 %v1728_v0, %v950_v59  ;;  %v891_v7 = vadd.f32 %v3808_v51, %v829_v42  ;;  %v2978_v3 = vsub.f32 %v497_v24, %v498_v2  ;;  %v1235_v51 = vld [vmem:[%s2531_s10 + $0x30] sm:$0xff]  }
 0x113   : > { %v590_v60 = vunpack.c.l.bf16 %v589_v48  ;;  %v890_v32 = vadd.f32 %v864_v15, %v828_v16  ;;  %v926_v47 = vmul.f32 %v925_v23, %v3814_v39  ;;  %v2981_v34 = vsub.f32 %v559_v58, %v560_v9 }
 0x114   : > { %3821 = vst [vmem:[#allocation25_spill] sm:$0xff] %v2975_v41  ;;  %v652_v4 = vunpack.c.h.bf16 %v589_v48  ;;  %v503_v10 = vmul.f32 -0.5, %v2950_v57  ;;  %1905 = vpow2.f32 %v681_v35  ;;  %v714_v46 = vunpack.c.l.bf16 %v713_v17 }
 0x115   : > { %v743_v14 = vmul.f32 1.442695, %v742_v33  ;;  %1907 = vlog2.f32 %v500_v1  ;;  %v562_v27 = vadd.f32 1.0, %v2973_v62  ;;  %v621_v54 = vmax.f32 %v2900_v45, 0.0 }
 0x116   : > { %v804_v50 = vsub.f32 0.0, %v803_v22  ;;  %v953_v12 = vadd.f32 %v3814_v39, %v891_v7  ;;  %v622_v36 = vmul.f32 %v590_v60, %v2900_v45  ;;  %v683_v25 = vmax.f32 %v2908_v44, 0.0  ;;  %v2998_v45 = vld [vmem:[%s2539_s18 + $0x38] sm:$0xff]  ;;  %v987_v22 = vld [vmem:[%s2531_s10 + $0x20] sm:$0xff]  }
 0x117   : > { %v776_v53 = vunpack.c.h.bf16 %v713_v17  ;;  %v952_v20 = vadd.f32 %v926_v47, %v890_v32  ;;  %v565_v26 = vmul.f32 -0.5, %v2973_v62  ;;  %v684_v21 = vmul.f32 %v652_v4, %v2908_v44  ;;  %3822 = vst [vmem:[#allocation20_spill] sm:$0xff] %v2998_v45  ;;  %v989_v7 = vld [vmem:[%s2537_s6 + $0x20] sm:$0xff]  }
 0x118   : > { %v745_v28 = vmax.f32 %v2933_v31, 0.0  ;;  %v504_v18 = vadd.f32 1.0, %v503_v10  ;;  %v506_v49 = vand.u32 2147483647, %v2950_v57  ;;  %1909 = vpow2.f32 %v743_v14  ;;  %v3033_v10 = vld [vmem:[%s2523_s8 + $0x40] sm:$0xff] }
 0x119   : > { %v746_v59 = vmul.f32 %v714_v46, %v2933_v31  ;;  %1911 = vlog2.f32 %v562_v27  ;;  %v805_v11 = vmul.f32 1.442695, %v804_v50  ;;  %v838_v55 = vunpack.c.l.bf16 %v837_v30 }
 0x11a   : > { %v865_v42 = vand.u32 2147483647, %v836_v29  ;;  %v3001_v24 = vadd.f32 %v1734_v63, %v953_v12  ;;  %v3003_v2 = vsub.f32 %v621_v54, %v622_v36  ;;  %v807_v44 = vmax.f32 %v2958_v5, 0.0 }
 0x11b   : > { %v808_v58 = vmul.f32 %v776_v53, %v2958_v5  ;;  %v3007_v0 = vpop.eup %1903  ;;  %v566_v31 = vadd.f32 1.0, %v565_v26  ;;  %v568_v16 = vand.u32 2147483647, %v2973_v62  ;;  %v3010_v15 = vsub.f32 %v683_v25, %v684_v21 }
 0x11c   : > { %3823 = vst [vmem:[#allocation26_spill] sm:$0xff] %v3001_v24  ;;  %v927_v23 = vand.u32 2147483647, %v2998_v45  ;;  %v3013_v9 = vadd.f32 %v1732_v61, %v952_v20  ;;  %v3016_v48 = vmul.f32 %v2950_v57, %v504_v18  ;;  %vm3018_vm0 = vcmp.lt.f32.partialorder %v506_v49, 0.0004427343  ;;  %v3053_v20 = vld [vmem:[%s2523_s8 + $0x48] sm:$0xff] }
 0x11d   : > { %3824 = vst [vmem:[#allocation18_spill] sm:$0xff] %v3010_v15  ;;  %v3022_v5 = vsub.f32 %v745_v28, %v746_v59  ;;  %1913 = vpow2.f32 %v805_v11  ;;  %v866_v33 = vsub.f32 0.0, %v865_v42  ;;  %v869_v1 = vmax.f32 %v836_v29, 0.0 }
 0x11e   : > { %3825 = vst [vmem:[#allocation27_spill] sm:$0xff] %v3013_v9  ;;  %v870_v17 = vmul.f32 %v838_v55, %v836_v29  ;;  %v3026_v60 = vpop.eup %1905  ;;  %v624_v32 = vadd.f32 1.0, %v3007_v0  ;;  %v627_v47 = vmul.f32 -0.5, %v3007_v0  ;;  %v3030_v57 = vsub.f32 %v807_v44, %v808_v58 }
 0x11f   : > { %3828 = vst [vmem:[#allocation28_spill] sm:$0xff] %v3022_v5  ;;  %v900_v4 = vunpack.c.h.bf16 %v837_v30  ;;  %v1908_v46 = vpop.eup %1907  ;;  %v3036_v14 = vmul.f32 %v2973_v62, %v566_v31  ;;  %vm3038_vm1 = vcmp.lt.f32.partialorder %v568_v16, 0.0004427343  ;;  %v928_v54 = vsub.f32 0.0, %v927_v23 }
 0x120   : > { %3829 = vst [vmem:[#allocation29_spill] sm:$0xff] %v3030_v57  ;;  %v689_v36 = vmul.f32 -0.5, %v3026_v60  ;;  %v3045_v25 = vunpack.c.l.bf16 %v987_v22  ;;  %v3047_v53 = vunpack.c.l.bf16 %v989_v7  ;;  %v867_v29 = vmul.f32 1.442695, %v866_v33 }
 0x121   : > { %v3049_v30 = vsub.f32 %v869_v1, %v870_v17  ;;  %v994_v62 = vand.u32 2147483647, %v3033_v10  ;;  %v3055_v63 = vunpack.c.h.bf16 %v989_v7  ;;  %v502_v21 = vmul.f32 0.6931472, %v1908_v46  ;;  %v1113_v7 = vld [vmem:[%s2537_s6 + $0x28] sm:$0xff]   ;;  %v3094_v46 = vld [vmem:[%s2523_s8 + $0x50] sm:$0xff] }
 0x122   : > { %v3057_v26 = vpop.eup %1909  ;;  %1915 = vlog2.f32 %v624_v32  ;;  %v628_v28 = vadd.f32 1.0, %v627_v47  ;;  %v3060_v18 = vmul.f32 %v900_v4, %v2998_v45  ;;  %v686_v59 = vadd.f32 1.0, %v3026_v60  ;;  %v3207_v45 = vld [vmem:[%s2523_s8 + $0x78] sm:$0xff] }
 0x123   : > { %3832 = vst [vmem:[#allocation30_spill] sm:$0xff] %v3049_v30  ;;  %3833 = vst [vmem:[#allocation31_spill] sm:$0xff] %v3057_v26  ;;  %v1912_v49 = vpop.eup %1911  ;;  %v929_v11 = vmul.f32 1.442695, %v928_v54  ;;  %vm1010_vm2 = vcmp.ge.f32.partialorder %v3033_v10, 0.0  ;;  %v690_v55 = vadd.f32 1.0, %v689_v36  ;;  %1917 = vpow2.f32 %v867_v29 }
 0x124   : > { %3834 = vst [vmem:[#allocation32_spill] sm:$0xff] %v3060_v18  ;;  %v3068_v42 = vsel %vm1010_vm2, %v3047_v53, 0.0  ;;  %v1056_v44 = vand.u32 2147483647, %v3053_v20  ;;  %vm1072_vm3 = vcmp.ge.f32.partialorder %v3053_v20, 0.0  ;;  %v748_v58 = vadd.f32 1.0, %v3057_v26 }
 0x125   : > { %v995_v31 = vsub.f32 0.0, %v994_v62  ;;  %v3076_v16 = vsel %vm1072_vm3, %v3055_v63, 0.0  ;;  %v508_v23 = vsel %vm3018_vm0, %v3016_v48, %v502_v21  ;;  %v564_v33 = vmul.f32 0.6931472, %v1912_v49  ;;  %v1111_v36 = vld [vmem:[%s2531_s10 + $0x28] sm:$0xff]  }
 0x126   : > { %v751_v1 = vmul.f32 -0.5, %v3057_v26  ;;  %v3082_v17 = vunpack.c.h.bf16 %v987_v22  ;;  %v3088_v47 = vmul.f32 %v3007_v0, %v628_v28  ;;  %1919 = vlog2.f32 %v686_v59 }
 0x127   : > { %v3085_v32 = vpop.eup %1913  ;;  %v1038_v35 = vmul.f32 %v3068_v42, %v3045_v25  ;;  %v3097_v48 = vmul.f32 %v3026_v60, %v690_v55  ;;  %1921 = vpow2.f32 %v929_v11  ;;  %v1057_v22 = vsub.f32 0.0, %v1056_v44  ;;  %v3111_v55 = vld [vmem:[%s2523_s8 + $0x58] sm:$0xff] }
 0x128   : > { %3835 = vst [vmem:[#allocation33_spill] sm:$0xff] %v3085_v32  ;;  %v1100_v54 = vmul.f32 %v3076_v16, %v3082_v17  ;;  %v509_v29 = vadd.f32 %v508_v23, %v2978_v3  ;;  %1923 = vlog2.f32 %v748_v58  ;;  %v996_v62 = vmul.f32 1.442695, %v995_v31 }
 0x129   : > { %3836 = vst [vmem:[#allocation34_spill] sm:$0xff] %v3097_v48  ;;  %v3103_v21 = vunpack.c.l.bf16 %v1113_v7  ;;  %v570_v28 = vsel %vm3038_vm1, %v3036_v14, %v564_v33  ;;  %v752_v49 = vadd.f32 1.0, %v751_v1  ;;  %v810_v59 = vadd.f32 1.0, %v3085_v32 }
 0x12a   : > { %v1118_v11 = vand.u32 2147483647, %v3094_v46  ;;  %v1101_v44 = vadd.f32 %v1100_v54, %v1038_v35  ;;  %v3113_v50 = vunpack.c.l.bf16 %v1111_v36  ;;  %vm1134_vm4 = vcmp.ge.f32.partialorder %v3094_v46, 0.0  ;;  %v1237_v54 = vld [vmem:[%s2537_s6 + $0x30] sm:$0xff]  }
 0x12b   : > { %v3116_v3 = vunpack.c.h.bf16 %v1113_v7  ;;  %v813_v27 = vmul.f32 -0.5, %v3085_v32  ;;  %v1058_v14 = vmul.f32 1.442695, %v1057_v22  ;;  %v3122_v23 = vsel %vm1134_vm4, %v3103_v21, 0.0  ;;  %v3130_v7 = vld [vmem:[%s2523_s8 + $0x60] sm:$0xff] }
 0x12c   : > { %v1916_v58 = vpop.eup %1915  ;;  %v1119_v31 = vsub.f32 0.0, %v1118_v11  ;;  %v571_v33 = vadd.f32 %v570_v28, %v2981_v34  ;;  %v1162_v1 = vmul.f32 %v3122_v23, %v3113_v50  ;;  %v1180_v35 = vand.u32 2147483647, %v3111_v55 }
 0x12d   : > { %vm1196_vm5 = vcmp.ge.f32.partialorder %v3111_v55, 0.0  ;;  %v3134_v4 = vunpack.c.h.bf16 %v1111_v36  ;;  %v3141_v34 = vpop.eup %1917  ;;  %v510_v28 = vmul.f32 %v509_v29, %v2574_v8  ;;  %1925 = vpow2.f32 %v996_v62 }
 0x12e   : > { %v1120_v11 = vmul.f32 1.442695, %v1119_v31  ;;  %v3139_v61 = vsel %vm1196_vm5, %v3116_v3, 0.0  ;;  %3837 = vst [vmem:[#allocation35_spill] sm:$0xff] %v3141_v34  ;;  %v1163_v12 = vadd.f32 %v1162_v1, %v1101_v44  ;;  %v1181_v39 = vsub.f32 0.0, %v1180_v35  ;;  %v3165_v35 = vld [vmem:[%s2523_s8 + $0x68] sm:$0xff] }
 0x12f   : > { %v3838_v30 = vand.u32 2147483647, %v3007_v0  ;;  %1927 = vpow2.f32 %v1058_v14  ;;  %v1224_v36 = vmul.f32 %v3139_v61, %v3134_v4  ;;  %v3153_v22 = vunpack.c.l.bf16 %v1237_v54 }
 0x130   : > { %v1242_v6 = vand.u32 2147483647, %v3130_v7  ;;  %v3156_v8 = vpop.eup %1919  ;;  %v572_v29 = vmul.f32 %v571_v33, %v2580_v13  ;;  %v814_v62 = vadd.f32 1.0, %v813_v27  ;;  %1929 = vpow2.f32 %v1120_v11  ;;  %v1361_v11 = vld [vmem:[%s2537_s6 + $0x38] sm:$0xff]  }
 0x131   : > { %vm3147_vm6 = vcmp.lt.f32.partialorder %v3838_v30, 0.0004427343  ;;  %v1182_v0 = vmul.f32 1.442695, %v1181_v39  ;;  %v3159_v30 = vpop.eup %1921  ;;  %v1225_v44 = vadd.f32 %v1224_v36, %v1163_v12  ;;  %v3161_v1 = vunpack.c.l.bf16 %v1235_v51 }
 0x132   : > { %v1243_v14 = vsub.f32 0.0, %v1242_v6  ;;  %vm1258_vm7 = vcmp.ge.f32.partialorder %v3130_v7, 0.0  ;;  %v3167_v57 = vpop.eup %1923  ;;  %v3170_v13 = vmul.f32 %v3057_v26, %v752_v49  ;;  %v3177_v12 = vunpack.c.h.bf16 %v1237_v54  ;;  %v3192_v54 = vld [vmem:[%s2523_s8 + $0x70] sm:$0xff] }
 0x133   : > { %3841 = vst [vmem:[#allocation36_spill] sm:$0xff] %v3167_v57  ;;  %1931 = vpow2.f32 %v1182_v0  ;;  %v3175_v39 = vsel %vm1258_vm7, %v3153_v22, 0.0  ;;  %v3179_v6 = vmul.f32 0.6931472, %v1916_v58  ;;  %v3185_v49 = vmul.f32 %v3085_v32, %v814_v62  ;;  %v1359_v58 = vld [vmem:[%s2531_s10 + $0x38] sm:$0xff]  }
 0x134   : > { %3842 = vst [vmem:[#allocation37_spill] sm:$0xff] %v3170_v13  ;;  %1933 = vlog2.f32 %v810_v59  ;;  %v1244_v27 = vmul.f32 1.442695, %v1243_v14  ;;  %v1286_v33 = vmul.f32 %v3175_v39, %v3161_v1  ;;  %v3187_v36 = vunpack.c.h.bf16 %v1235_v51 }
 0x135   : > { %3843 = vst [vmem:[#allocation38_spill] sm:$0xff] %v3185_v49  ;;  %v1304_v0 = vand.u32 2147483647, %v3165_v35  ;;  %vm1320_vm8 = vcmp.ge.f32.partialorder %v3165_v35, 0.0  ;;  %v3195_v9 = vadd.f32 %v572_v29, %v510_v28  ;;  %v3201_v62 = vadd.f32 1.0, %v3141_v34 }
 0x136   : > { %1935 = vpow2.f32 %v1244_v27  ;;  %v1287_v59 = vadd.f32 %v1286_v33, %v1225_v44  ;;  %v1324_v14 = vsel %vm1320_vm8, %v3177_v12, 0.0  ;;  %v3204_v52 = vunpack.c.l.bf16 %v1361_v11 }
 0x137   : > { %3844 = vst [vmem:[#allocation39_spill] sm:$0xff] %v3195_v9  ;;  %v1305_v51 = vsub.f32 0.0, %v1304_v0  ;;  %v1348_v49 = vmul.f32 %v1324_v14, %v3187_v36  ;;  %v3209_v18 = vunpack.c.l.bf16 %v1359_v58  ;;  %v1366_v28 = vand.u32 2147483647, %v3192_v54  ;;  %v3215_v44 = vpop.eup %1925 }
 0x138   : > { %vm1382_vm9 = vcmp.ge.f32.partialorder %v3192_v54, 0.0  ;;  %v3213_v29 = vunpack.c.h.bf16 %v1361_v11  ;;  %v3220_v24 = vunpack.c.h.bf16 %v1359_v58  ;;  %v1428_v13 = vand.u32 2147483647, %v3207_v45 }
 0x139   : > { %v1306_v27 = vmul.f32 1.442695, %v1305_v51  ;;  %v1349_v33 = vadd.f32 %v1348_v49, %v1287_v59  ;;  %v1386_v0 = vsel %vm1382_vm9, %v3204_v52, 0.0  ;;  %v3222_v5 = vpop.eup %1927  ;;  %v1367_v38 = vsub.f32 0.0, %v1366_v28 }
 0x13a   : > { %v1410_v9 = vmul.f32 %v1386_v0, %v3209_v18  ;;  %vm1444_vm10 = vcmp.ge.f32.partialorder %v3207_v45, 0.0  ;;  %v3227_v11 = vpop.eup %1929  ;;  %v632_v49 = vsel %vm3147_vm6, %v3088_v47, %v3179_v6  ;;  %v1102_v59 = vadd.f32 %v3076_v16, %v3068_v42 }
 0x13b   : > { %1937 = vpow2.f32 %v1306_v27  ;;  %v1448_v58 = vsel %vm1444_vm10, %v3213_v29, 0.0  ;;  %v1368_v51 = vmul.f32 1.442695, %v1367_v38  ;;  %v1429_v32 = vsub.f32 0.0, %v1428_v13 }
 0x13c   : > { %v1411_v28 = vadd.f32 %v1410_v9, %v1349_v33  ;;  %v1472_v26 = vmul.f32 %v1448_v58, %v3220_v24  ;;  %v1164_v15 = vadd.f32 %v3122_v23, %v1102_v59  ;;  %v1103_v47 = vadd.f32 %v3082_v17, %v3045_v25 }
 0x13d   : > { %v3239_v57 = vpop.eup %1931  ;;  %v998_v31 = vadd.f32 1.0, %v3215_v44  ;;  %v1060_v6 = vadd.f32 1.0, %v3222_v5  ;;  %1939 = vpow2.f32 %v1368_v51  ;;  %v1430_v42 = vmul.f32 1.442695, %v1429_v32 }
 0x13e   : > { %v3246_v27 = vpop.eup %1933  ;;  %v1473_v38 = vadd.f32 %v1472_v26, %v1411_v28  ;;  %v1122_v9 = vadd.f32 1.0, %v3227_v11  ;;  %v1226_v16 = vadd.f32 %v3139_v61, %v1164_v15  ;;  %v1165_v13 = vadd.f32 %v3113_v50, %v1103_v47 }
 0x13f   : > { %3845 = vst [vmem:[#allocation40_spill] sm:$0xff] %v3246_v27  ;;  %1941 = vrcp.f32 %v998_v31  ;;  %v3252_v23 = vadd.f32 1.0, %v3239_v57  ;;  %v3257_v59 = vmul.f32 -0.5, %v3141_v34  ;;  %v1001_v26 = vmul.f32 -0.5, %v3215_v44 }
 0x140   : > { %v3254_v33 = vpop.eup %1935  ;;  %1943 = vpow2.f32 %v1430_v42  ;;  %v1483_v32 = vadd.f32 %v1473_v38, %v2946_v37  ;;  %v1288_v51 = vadd.f32 %v3175_v39, %v1226_v16  ;;  %v1227_v15 = vadd.f32 %v3134_v4, %v1165_v13 }
 0x141   : > { %1945 = vrcp.f32 %v1060_v6  ;;  %v3264_v61 = vadd.f32 1.0, %v3254_v33  ;;  %v3267_v28 = vadd.f32 %v632_v49, %v3003_v2  ;;  %v3270_v47 = vmul.f32 0.6931472, %v3156_v8 }
 0x142   : > { %1484 = vst [vmem:[%s2549_s17] sm:$0xff] %v1483_v32  ;;  %1947 = vrcp.f32 %v1122_v9  ;;  %v1002_v42 = vadd.f32 1.0, %v1001_v26  ;;  %v1350_v37 = vadd.f32 %v1324_v14, %v1288_v51  ;;  %v1289_v38 = vadd.f32 %v3161_v1, %v1227_v15 }
 0x143   : > { %3846 = vst [vmem:[#allocation41_spill] sm:$0xff] %v3267_v28  ;;  %3847 = vst [vmem:[#allocation42_spill] sm:$0xff] %v3270_v47  ;;  %1949 = vrcp.f32 %v3252_v23  ;;  %v1004_v39 = vand.u32 2147483647, %v3215_v44  ;;  %v1015_v16 = vmax.f32 %v3033_v10, 0.0  ;;  %v1016_v2 = vmul.f32 %v3045_v25, %v3033_v10 }
 0x144   : > { %1951 = vrcp.f32 %v3264_v61  ;;  %v1063_v8 = vmul.f32 -0.5, %v3222_v5  ;;  %v1412_v13 = vadd.f32 %v1386_v0, %v1350_v37  ;;  %v1351_v14 = vadd.f32 %v3187_v36, %v1289_v38 }
 0x145   : > { %v3281_v49 = vpop.eup %1937  ;;  %1953 = vlog2.f32 %v998_v31  ;;  %v1066_v32 = vand.u32 2147483647, %v3222_v5  ;;  %v3289_v51 = vmul.f32 %v3215_v44, %v1002_v42  ;;  %vm3292_vm11 = vcmp.lt.f32.partialorder %v1004_v39, 0.0004427343 }
 0x146   : > { %v3286_v26 = vadd.f32 1.0, %v3281_v49  ;;  %1955 = vlog2.f32 %v1060_v6  ;;  %v1064_v15 = vadd.f32 1.0, %v1063_v8  ;;  %v1474_v34 = vadd.f32 %v1448_v58, %v1412_v13 }
 0x147   : > { %v1413_v27 = vadd.f32 %v3209_v18, %v1351_v14  ;;  %v1077_v0 = vmax.f32 %v3053_v20, 0.0  ;;  %v1078_v31 = vmul.f32 %v3082_v17, %v3053_v20  ;;  %v3299_v37 = vpop.eup %1939  ;;  %v1017_v42 = vsub.f32 %v1015_v16, %v1016_v2 }
 0x148   : > { %3848 = vst [vmem:[#allocation43_spill] sm:$0xff] %v3286_v26  ;;  %1957 = vrcp.f32 %v3286_v26  ;;  %v3303_v6 = vmul.f32 %v3222_v5, %v1064_v15  ;;  %v1125_v58 = vmul.f32 -0.5, %v3227_v11  ;;  %v1486_v39 = vadd.f32 %v1474_v34, %v2964_v56 }
 0x149   : > { %v1942_v38 = vpop.eup %1941  ;;  %v1475_v8 = vadd.f32 %v3220_v24, %v1413_v27  ;;  %v3309_v13 = vadd.f32 1.0, %v3299_v37  ;;  %vm3311_vm12 = vcmp.lt.f32.partialorder %v1066_v32, 0.0004427343  ;;  %v1128_v26 = vand.u32 2147483647, %v3227_v11 }
 0x14a   : > { %v3316_v16 = vpop.eup %1943  ;;  %v1011_v2 = vmul.f32 %v1942_v38, %v3215_v44  ;;  %v1079_v15 = vsub.f32 %v1077_v0, %v1078_v31  ;;  %1959 = vlog2.f32 %v1122_v9  ;;  %v1126_v48 = vadd.f32 1.0, %v1125_v58  ;;  %1739 = vst [vmem:[%s2549_s17 + $0x8] sm:$0xff] %v1486_v39 }
 0x14b   : > { %3851 = vst [vmem:[#allocation44_spill] sm:$0xff] %v3309_v13  ;;  %v1946_v56 = vpop.eup %1945  ;;  %v1489_v34 = vadd.f32 %v1475_v8, %v2966_v40  ;;  %1961 = vrcp.f32 %v3309_v13  ;;  %v3323_v27 = vadd.f32 1.0, %v3316_v16  ;;  %v1139_v32 = vmax.f32 %v3094_v46, 0.0 }
 0x14c   : > { %v1948_v47 = vpop.eup %1947  ;;  %v1012_v28 = vsel %vm1010_vm2, %v1942_v38, %v1011_v2  ;;  %v1073_v44 = vmul.f32 %v1946_v56, %v3222_v5  ;;  %v3330_v9 = vmul.f32 %v3227_v11, %v1126_v48  ;;  %v1140_v0 = vmul.f32 %v3113_v50, %v3094_v46 }
 0x14d   : > { %3854 = vst [vmem:[#allocation45_spill] sm:$0xff] %v3323_v27  ;;  %v1950_v40 = vpop.eup %1949  ;;  %1741 = vst [vmem:[%s2549_s17 + $0x10] sm:$0xff] %v1489_v34  ;;  %v1013_v31 = vmul.f32 %v1012_v28, %v3047_v53  ;;  %v1135_v58 = vmul.f32 %v1948_v47, %v3227_v11  ;;  %1963 = vrcp.f32 %v3323_v27  ;;  %vm3338_vm13 = vcmp.lt.f32.partialorder %v1128_v26, 0.0004427343 }
 0x14e   : > { %v1187_v5 = vmul.f32 -0.5, %v3239_v57  ;;  %v1952_v10 = vpop.eup %1951  ;;  %v1074_v48 = vsel %vm1072_vm3, %v1946_v56, %v1073_v44  ;;  %v1197_v38 = vmul.f32 %v1950_v40, %v3239_v57  ;;  %v1141_v8 = vsub.f32 %v1139_v32, %v1140_v0 }
 0x14f   : > { %1965 = vlog2.f32 %v3252_v23  ;;  %v1954_v28 = vpop.eup %1953  ;;  %v1042_v11 = vmul.f32 %v1013_v31, %v3045_v25  ;;  %v1075_v2 = vmul.f32 %v1074_v48, %v3055_v63  ;;  %v1136_v26 = vsel %vm1134_vm4, %v1948_v47, %v1135_v58 }
 0x150   : > { %v1259_v34 = vmul.f32 %v1952_v10, %v3254_v33  ;;  %v1956_v27 = vpop.eup %1955  ;;  %v1137_v13 = vmul.f32 %v1136_v26, %v3103_v21  ;;  %v1198_v20 = vsel %vm1196_vm5, %v1950_v40, %v1197_v38  ;;  %v1000_v56 = vmul.f32 0.6931472, %v1954_v28 }
 0x151   : > { %v1188_v32 = vadd.f32 1.0, %v1187_v5  ;;  %v1104_v23 = vmul.f32 %v1075_v2, %v3082_v17  ;;  %v1199_v44 = vmul.f32 %v1198_v20, %v3116_v3  ;;  %v1106_v0 = vadd.f32 %v1075_v2, %v1013_v31 }
 0x152   : > { %v1260_v25 = vsel %vm1258_vm7, %v1952_v10, %v1259_v34  ;;  %v1958_v46 = vpop.eup %1957  ;;  %v1166_v47 = vmul.f32 %v1137_v13, %v3113_v50  ;;  %v1006_v48 = vsel %vm3292_vm11, %v3289_v51, %v1000_v56  ;;  %v1062_v40 = vmul.f32 0.6931472, %v1956_v27 }
 0x153   : > { %v1261_v58 = vmul.f32 %v1260_v25, %v3153_v22  ;;  %v1105_v38 = vadd.f32 %v1104_v23, %v1042_v11  ;;  %v1228_v5 = vmul.f32 %v1199_v44, %v3134_v4  ;;  %v1321_v17 = vmul.f32 %v1958_v46, %v3281_v49 }
 0x154   : > { %v1168_v28 = vadd.f32 %v1137_v13, %v1106_v0  ;;  %v1960_v26 = vpop.eup %1959  ;;  %v1018_v31 = vadd.f32 %v1017_v42, %v1006_v48  ;;  %v1068_v50 = vsel %vm3311_vm12, %v3303_v6, %v1062_v40  ;;  %v1189_v2 = vmul.f32 %v3239_v57, %v1188_v32 }
 0x155   : > { %v1290_v10 = vmul.f32 %v1261_v58, %v3161_v1  ;;  %v1962_v34 = vpop.eup %1961  ;;  %v3857_v41 = vand.u32 2147483647, %v3026_v60  ;;  %v1167_v27 = vadd.f32 %v1166_v47, %v1105_v38  ;;  %v1322_v13 = vsel %vm1320_vm8, %v1958_v46, %v1321_v17 }
 0x156   : > { %v1230_v11 = vadd.f32 %v1199_v44, %v1168_v28  ;;  %v1080_v20 = vadd.f32 %v1079_v15, %v1068_v50  ;;  %v1323_v42 = vmul.f32 %v1322_v13, %v3177_v12  ;;  %v1383_v14 = vmul.f32 %v1962_v34, %v3299_v37 }
 0x157   : > { %vm3373_vm14 = vcmp.lt.f32.partialorder %v3857_v41, 0.0004427343  ;;  %v1019_v6 = vmul.f32 %v1018_v31, %v3047_v53  ;;  %v1124_v56 = vmul.f32 0.6931472, %v1960_v26  ;;  %v1964_v32 = vpop.eup %1963  ;;  %v1229_v23 = vadd.f32 %v1228_v5, %v1167_v27 }
 0x158   : > { %v1292_v60 = vadd.f32 %v1261_v58, %v1230_v11  ;;  %v1081_v25 = vmul.f32 %v1080_v20, %v3055_v63  ;;  %v1190_v0 = vand.u32 2147483647, %v3239_v57  ;;  %v1352_v48 = vmul.f32 %v1323_v42, %v3187_v36 }
 0x159   : > { %v1966_v47 = vpop.eup %1965  ;;  %v1384_v15 = vsel %vm1382_vm9, %v1962_v34, %v1383_v14  ;;  %v1445_v44 = vmul.f32 %v1964_v32, %v3316_v16  ;;  %v1130_v46 = vsel %vm3338_vm13, %v3330_v9, %v1124_v56  ;;  %v1291_v40 = vadd.f32 %v1290_v10, %v1229_v23  ;;  %v3862_v56 = vld [vmem:[#allocation41_spill] sm:$0xff] }
 0x15a   : > { %v1385_v38 = vmul.f32 %v1384_v15, %v3204_v52  ;;  %v1354_v58 = vadd.f32 %v1323_v42, %v1292_v60  ;;  %v1107_v5 = vadd.f32 %v1081_v25, %v1019_v6  ;;  %v1142_v17 = vadd.f32 %v1141_v8, %v1130_v46  ;;  %v3865_v60 = vld [vmem:[#allocation43_spill] sm:$0xff]  ;;  %v3866_v25 = vld [vmem:[#allocation25_spill] sm:$0xff] }
 0x15b   : > { %v1446_v57 = vsel %vm1444_vm10, %v1964_v32, %v1445_v44  ;;  %v1186_v28 = vmul.f32 0.6931472, %v1966_v47  ;;  %vm3394_vm15 = vcmp.lt.f32.partialorder %v1190_v0, 0.0004427343  ;;  %v1353_v31 = vadd.f32 %v1352_v48, %v1291_v40  ;;  %v3864_v32 = vld [vmem:[#allocation34_spill] sm:$0xff] }
 0x15c   : > { %v1414_v50 = vmul.f32 %v1385_v38, %v3209_v18  ;;  %v1447_v39 = vmul.f32 %v1446_v57, %v3213_v29  ;;  %v1416_v9 = vadd.f32 %v1385_v38, %v1354_v58  ;;  %v1143_v10 = vmul.f32 %v1142_v17, %v3103_v21  ;;  %v3867_v58 = vld [vmem:[#allocation44_spill] sm:$0xff] }
 0x15d   : > { %v1192_v34 = vsel %vm3394_vm15, %v1189_v2, %v1186_v28  ;;  %v1201_v41 = vmax.f32 %v3111_v55, 0.0  ;;  %v1202_v8 = vmul.f32 %v3134_v4, %v3111_v55  ;;  %1967 = vlog2.f32 %v3264_v61  ;;  %v3869_v17 = vld [vmem:[#allocation36_spill] sm:$0xff] }
 0x15e   : > { %v1415_v27 = vadd.f32 %v1414_v50, %v1353_v31  ;;  %v1476_v13 = vmul.f32 %v1447_v39, %v3220_v24  ;;  %v1478_v11 = vadd.f32 %v1447_v39, %v1416_v9  ;;  %1969 = vlog2.f32 %v3201_v62  ;;  %v3863_v62 = vld [vmem:[#allocation42_spill] sm:$0xff]  ;;  %v3872_v50 = vld [vmem:[#allocation45_spill] sm:$0xff] }
 0x15f   : > { %v3410_v20 = vadd.f32 1.0, %v3257_v59  ;;  %v1203_v42 = vsub.f32 %v1201_v41, %v1202_v8  ;;  %v1249_v2 = vmul.f32 -0.5, %v3254_v33  ;;  %v934_v14 = vadd.f32 1.0, %v3159_v30  ;;  %v3467_v8 = vld [vmem:[%s2539_s18 + $0x40] sm:$0xff] }
 0x160   : > { %v3415_v6 = vmul.f32 -0.5, %v3159_v30  ;;  %v1477_v4 = vadd.f32 %v1476_v13, %v1415_v27  ;;  %v1495_v55 = vadd.f32 %v1478_v11, %v2968_v43  ;;  %v3420_v61 = vmul.f32 %v3862_v56, %v3813_v19 }
 0x161   : > { %v694_v59 = vsel %vm3373_vm14, %v3864_v32, %v3863_v62  ;;  %v1204_v23 = vadd.f32 %v1203_v42, %v1192_v34  ;;  %1971 = vlog2.f32 %v3865_v60  ;;  %v1169_v47 = vadd.f32 %v1143_v10, %v1107_v5  ;;  %v3868_v5 = vld [vmem:[#allocation18_spill] sm:$0xff]  ;;  %v3485_v60 = vld [vmem:[%s2539_s18 + $0x48] sm:$0xff] }
 0x162   : > { %v1492_v0 = vadd.f32 %v1477_v4, %v3866_v25  ;;  %1745 = vst [vmem:[%s2549_s17 + $0x20] sm:$0xff] %v1495_v55  ;;  %v1252_v48 = vand.u32 2147483647, %v3254_v33  ;;  %v1311_v43 = vmul.f32 -0.5, %v3281_v49  ;;  %v1250_v15 = vadd.f32 1.0, %v1249_v2 }
 0x163   : > { %v1263_v19 = vmax.f32 %v3130_v7, 0.0  ;;  %v1264_v44 = vmul.f32 %v3161_v1, %v3130_v7  ;;  %v1314_v51 = vand.u32 2147483647, %v3281_v49  ;;  %v1205_v46 = vmul.f32 %v1204_v23, %v3116_v3 }
 0x164   : > { %1743 = vst [vmem:[%s2549_s17 + $0x18] sm:$0xff] %v1492_v0  ;;  %v1325_v40 = vmax.f32 %v3165_v35, 0.0  ;;  %v1326_v38 = vmul.f32 %v3187_v36, %v3165_v35  ;;  %1973 = vlog2.f32 %v3867_v58  ;;  %v3442_v57 = vadd.f32 %v694_v59, %v3868_v5  ;;  %v3873_v35 = vld [vmem:[#allocation31_spill] sm:$0xff] }
 0x165   : > { %v3445_v28 = vmul.f32 0.6931472, %v3869_v17  ;;  %1975 = vlog2.f32 %v934_v14  ;;  %v1373_v7 = vmul.f32 -0.5, %v3299_v37  ;;  %vm3448_vm0 = vcmp.lt.f32.partialorder %v1252_v48, 0.0004427343  ;;  %v3883_v17 = vld [vmem:[#allocation33_spill] sm:$0xff] }
 0x166   : > { %v1312_v26 = vadd.f32 1.0, %v1311_v43  ;;  %v1376_v31 = vand.u32 2147483647, %v3299_v37  ;;  %1977 = vlog2.f32 %v3872_v50  ;;  %v3874_v36 = vand.u32 2147483647, %v3873_v35  ;;  %v3513_v35 = vld [vmem:[%s2539_s18 + $0x50] sm:$0xff] }
 0x167   : > { %v1251_v9 = vmul.f32 %v3254_v33, %v1250_v15  ;;  %v1265_v10 = vsub.f32 %v1263_v19, %v1264_v44  ;;  %vm3461_vm2 = vcmp.lt.f32.partialorder %v1314_v51, 0.0004427343  ;;  %v1435_v41 = vmul.f32 -0.5, %v3316_v16  ;;  %v1968_v27 = vpop.eup %1967 }
 0x168   : > { %vm3456_vm1 = vcmp.lt.f32.partialorder %v3874_v36, 0.0004427343  ;;  %v1231_v13 = vadd.f32 %v1205_v46, %v1169_v47  ;;  %v1327_v11 = vsub.f32 %v1325_v40, %v1326_v38  ;;  %v1387_v42 = vmax.f32 %v3192_v54, 0.0  ;;  %v3472_v14 = vpop.eup %1969 }
 0x169   : > { %v1108_v2 = vadd.f32 %v3055_v63, %v3047_v53  ;;  %v1248_v33 = vmul.f32 0.6931472, %v1968_v27  ;;  %v1374_v4 = vadd.f32 1.0, %v1373_v7  ;;  %v1388_v55 = vmul.f32 %v3209_v18, %v3192_v54 }
 0x16a   : > { %v1438_v56 = vand.u32 2147483647, %v3316_v16  ;;  %v1313_v62 = vmul.f32 %v3281_v49, %v1312_v26  ;;  %vm3478_vm3 = vcmp.lt.f32.partialorder %v1376_v31, 0.0004427343  ;;  %v1020_v23 = vand.u32 2147483647, %v3467_v8 }
 0x16b   : > { %v1170_v59 = vadd.f32 %v3103_v21, %v1108_v2  ;;  %v1972_v25 = vpop.eup %1971  ;;  %v1254_v0 = vsel %vm3448_vm0, %v1251_v9, %v1248_v33  ;;  %v1436_v47 = vadd.f32 1.0, %v1435_v41  ;;  %v1449_v18 = vmax.f32 %v3207_v45, 0.0 }
 0x16c   : > { %v1450_v54 = vmul.f32 %v3220_v24, %v3207_v45  ;;  %v1266_v49 = vadd.f32 %v1265_v10, %v1254_v0  ;;  %v1310_v48 = vmul.f32 0.6931472, %v1972_v25  ;;  %v1021_v15 = vsub.f32 0.0, %v1020_v23  ;;  %v3535_v0 = vld [vmem:[%s2539_s18 + $0x60] sm:$0xff] }
 0x16d   : > { %v1232_v43 = vadd.f32 %v3116_v3, %v1170_v59  ;;  %v1375_v19 = vmul.f32 %v3299_v37, %v1374_v4  ;;  %v1389_v44 = vsub.f32 %v1387_v42, %v1388_v55  ;;  %vm3494_vm4 = vcmp.lt.f32.partialorder %v1438_v56, 0.0004427343  ;;  %v3526_v55 = vld [vmem:[%s2539_s18 + $0x58] sm:$0xff]  ;;  %v3888_v56 = vld [vmem:[#allocation39_spill] sm:$0xff] }
 0x16e   : > { %v1082_v46 = vand.u32 2147483647, %v3485_v60  ;;  %v1974_v40 = vpop.eup %1973  ;;  %v1267_v38 = vmul.f32 %v1266_v49, %v3153_v22  ;;  %v1316_v45 = vsel %vm3461_vm2, %v1313_v62, %v1310_v48  ;;  %v1022_v58 = vmul.f32 1.442695, %v1021_v15  ;;  %v3891_v49 = vld [vmem:[#allocation40_spill] sm:$0xff] }
 0x16f   : > { %v1294_v24 = vadd.f32 %v3153_v22, %v1232_v43  ;;  %v3503_v5 = vpop.eup %1975  ;;  %v3884_v37 = vand.u32 2147483647, %v3883_v17  ;;  %v1328_v1 = vadd.f32 %v1327_v11, %v1316_v45  ;;  %v1372_v26 = vmul.f32 0.6931472, %v1974_v40  ;;  %v3893_v40 = vld [vmem:[#allocation35_spill] sm:$0xff]  ;;  %v3894_v45 = vld [vmem:[#allocation32_spill] sm:$0xff] }
 0x170   : > { %v1437_v31 = vmul.f32 %v3316_v16, %v1436_v47  ;;  %v1083_v50 = vsub.f32 0.0, %v1082_v46  ;;  %v1978_v36 = vpop.eup %1977  ;;  %v1293_v9 = vadd.f32 %v1267_v38, %v1231_v13  ;;  %v1451_v10 = vsub.f32 %v1449_v18, %v1450_v54  ;;  %v3887_v16 = vld [vmem:[#allocation37_spill] sm:$0xff]  ;;  %v3889_v47 = vld [vmem:[#allocation19_spill] sm:$0xff]  ;;  %v3890_v54 = vld [vmem:[#allocation28_spill] sm:$0xff] }
 0x171   : > { %vm3507_vm5 = vcmp.lt.f32.partialorder %v3884_v37, 0.0004427343  ;;  %v1356_v34 = vadd.f32 %v3177_v12, %v1294_v24  ;;  %1979 = vpow2.f32 %v1022_v58  ;;  %v1329_v41 = vmul.f32 %v1328_v1, %v3177_v12  ;;  %v3895_v24 = vld [vmem:[#allocation20_spill] sm:$0xff]  ;;  %v3552_v1 = vld [vmem:[%s2539_s18 + $0x68] sm:$0xff] }
 0x172   : > { %v1378_v27 = vsel %vm3478_vm3, %v1375_v19, %v1372_v26  ;;  %v1434_v11 = vmul.f32 0.6931472, %v1978_v36  ;;  %v1084_v42 = vmul.f32 1.442695, %v1083_v50  ;;  %v756_v2 = vsel %vm3456_vm1, %v3887_v16, %v3445_v28  ;;  %v992_v36 = vld [vmem:[%s2551_s27 + $0x20] sm:$0xff]  }
 0x173   : > { %v1390_v33 = vadd.f32 %v1389_v44, %v1378_v27  ;;  %v1418_v13 = vadd.f32 %v3204_v52, %v1356_v34  ;;  %v1144_v4 = vand.u32 2147483647, %v3513_v35  ;;  %v644_v62 = vadd.f32 %v3420_v61, %v3888_v56  ;;  %v3892_v44 = vld [vmem:[#allocation26_spill] sm:$0xff] }
 0x174   : > { %v1355_v32 = vadd.f32 %v1329_v41, %v1293_v9  ;;  %v1440_v59 = vsel %vm3494_vm4, %v1437_v31, %v1434_v11  ;;  %1981 = vpow2.f32 %v1084_v42  ;;  %v696_v18 = vmul.f32 %v3442_v57, %v3889_v47  ;;  %v3898_v42 = vld [vmem:[#allocation38_spill] sm:$0xff] }
 0x175   : > { %v1391_v23 = vmul.f32 %v1390_v33, %v3204_v52  ;;  %v1452_v25 = vadd.f32 %v1451_v10, %v1440_v59  ;;  %v1480_v28 = vadd.f32 %v3213_v29, %v1418_v13  ;;  %v1145_v39 = vsub.f32 0.0, %v1144_v4  ;;  %v3897_v10 = vld [vmem:[#allocation21_spill] sm:$0xff]  ;;  %v3576_v59 = vld [vmem:[%s2539_s18 + $0x70] sm:$0xff] }
 0x176   : > { %v757_v61 = vadd.f32 %v756_v2, %v3890_v54  ;;  %v812_v48 = vmul.f32 0.6931472, %v3891_v49  ;;  %v1206_v43 = vand.u32 2147483647, %v3526_v55  ;;  %v878_v38 = vand.u32 2147483647, %v3893_v40 }
 0x177   : > { %v1417_v15 = vadd.f32 %v1391_v23, %v1355_v32  ;;  %v1453_v19 = vmul.f32 %v1452_v25, %v3213_v29  ;;  %v1501_v51 = vadd.f32 %v1480_v28, %v3892_v44  ;;  %v1146_v46 = vmul.f32 1.442695, %v1145_v39  ;;  %v3902_v28 = vld [vmem:[#allocation29_spill] sm:$0xff] }
 0x178   : > { %v3896_v58 = vmax.f32 %v3895_v24, 0.0  ;;  %v1207_v17 = vsub.f32 0.0, %v1206_v43  ;;  %v1268_v37 = vand.u32 2147483647, %v3535_v0  ;;  %v877_v26 = vmul.f32 %v3893_v40, %v3410_v20 }
 0x179   : > { %v938_v31 = vadd.f32 1.0, %v3415_v6  ;;  %v1479_v50 = vadd.f32 %v1453_v19, %v1417_v15  ;;  %1749 = vst [vmem:[%s2549_s17 + $0x30] sm:$0xff] %v1501_v51  ;;  %1983 = vpow2.f32 %v1146_v46  ;;  %v706_v9 = vadd.f32 %v696_v18, %v644_v62  ;;  %v3899_v6 = vld [vmem:[#allocation27_spill] sm:$0xff] }
 0x17a   : > { %v3548_v57 = vsub.f32 %v3896_v58, %v3894_v45  ;;  %v758_v34 = vmul.f32 %v757_v61, %v3897_v10  ;;  %v1208_v41 = vmul.f32 1.442695, %v1207_v17  ;;  %v1269_v27 = vsub.f32 0.0, %v1268_v37  ;;  %v1116_v18 = vld [vmem:[%s2551_s27 + $0x28] sm:$0xff]   ;;  %v3903_v58 = vld [vmem:[#allocation22_spill] sm:$0xff] }
 0x17b   : > { %v3560_v11 = vpop.eup %1979  ;;  %v818_v16 = vsel %vm3507_vm5, %v3898_v42, %v812_v48  ;;  %v874_v20 = vmul.f32 0.6931472, %v3472_v14  ;;  %v1498_v2 = vadd.f32 %v1479_v50, %v3899_v6  ;;  %v1330_v33 = vand.u32 2147483647, %v3552_v1  ;;  %v3592_v48 = vld [vmem:[%s2539_s18 + $0x78] sm:$0xff] }
 0x17c   : > { %vm3568_vm6 = vcmp.lt.f32.partialorder %v878_v38, 0.0004427343  ;;  %v993_v4 = vunpack.c.l.bf16 %v992_v36  ;;  %v1027_v56 = vadd.f32 1.0, %v3560_v11  ;;  %1985 = vpow2.f32 %v1208_v41 }
 0x17d   : > { %v940_v62 = vand.u32 2147483647, %v3159_v30  ;;  %1747 = vst [vmem:[%s2549_s17 + $0x28] sm:$0xff] %v1498_v2  ;;  %v1055_v7 = vunpack.c.h.bf16 %v992_v36  ;;  %v1270_v32 = vmul.f32 1.442695, %v1269_v27  ;;  %v1331_v14 = vsub.f32 0.0, %v1330_v33 }
 0x17e   : > { %v3578_v23 = vpop.eup %1981  ;;  %v3580_v25 = vadd.f32 %v758_v34, %v706_v9  ;;  %v819_v39 = vadd.f32 %v818_v16, %v3902_v28  ;;  %v3584_v47 = vmul.f32 %v3159_v30, %v938_v31  ;;  %1987 = vlog2.f32 %v1027_v56  ;;  %v1240_v2 = vld [vmem:[%s2551_s27 + $0x30] sm:$0xff]  }
 0x17f   : > { %v880_v54 = vsel %vm3568_vm6, %v877_v26, %v874_v20  ;;  %v1030_v61 = vmul.f32 -0.5, %v3560_v11  ;;  %v1089_v49 = vadd.f32 1.0, %v3578_v23  ;;  %1989 = vpow2.f32 %v1270_v32 }
 0x180   : > { %v1024_v43 = vmax.f32 %v3467_v8, 0.0  ;;  %v1025_v15 = vmul.f32 %v993_v4, %v3467_v8  ;;  %v1332_v19 = vmul.f32 1.442695, %v1331_v14  ;;  %v1392_v30 = vand.u32 2147483647, %v3576_v59  ;;  %v3904_v8 = vld [vmem:[#allocation30_spill] sm:$0xff] }
 0x181   : > { %v1086_v44 = vmax.f32 %v3485_v60, 0.0  ;;  %v1087_v51 = vmul.f32 %v1055_v7, %v3485_v60  ;;  %1991 = vlog2.f32 %v1089_v49  ;;  %v1117_v46 = vunpack.c.l.bf16 %v1116_v18 }
 0x182   : > { %v1092_v40 = vmul.f32 -0.5, %v3578_v23  ;;  %1993 = vpow2.f32 %v1332_v19  ;;  %v1393_v38 = vsub.f32 0.0, %v1392_v30  ;;  %v1454_v45 = vand.u32 2147483647, %v3592_v48 }
 0x183   : > { %v3601_v24 = vpop.eup %1983  ;;  %v3604_v17 = vmul.f32 %v819_v39, %v3903_v58  ;;  %v3607_v37 = vadd.f32 %v880_v54, %v3904_v8  ;;  %v3610_v26 = vmul.f32 0.6931472, %v3503_v5  ;;  %v1031_v60 = vadd.f32 1.0, %v1030_v61 }
 0x184   : > { %v1033_v31 = vand.u32 2147483647, %v3560_v11  ;;  %v1151_v50 = vadd.f32 1.0, %v3601_v24  ;;  %v1179_v36 = vunpack.c.h.bf16 %v1116_v18  ;;  %v1394_v9 = vmul.f32 1.442695, %v1393_v38 }
 0x185   : > { %vm3614_vm7 = vcmp.lt.f32.partialorder %v940_v62, 0.0004427343  ;;  %v1026_v34 = vsub.f32 %v1024_v43, %v1025_v15  ;;  %v1088_v41 = vsub.f32 %v1086_v44, %v1087_v51  ;;  %v1148_v27 = vmax.f32 %v3513_v35, 0.0 }
 0x186   : > { %v1455_v42 = vsub.f32 0.0, %v1454_v45  ;;  %v3619_v16 = vpop.eup %1985  ;;  %v1093_v5 = vadd.f32 1.0, %v1092_v40  ;;  %v1095_v20 = vand.u32 2147483647, %v3578_v23  ;;  %v1149_v6 = vmul.f32 %v1117_v46, %v3513_v35 }
 0x187   : > { %1995 = vlog2.f32 %v1151_v50  ;;  %v1032_v33 = vmul.f32 %v3560_v11, %v1031_v60  ;;  %v1154_v13 = vmul.f32 -0.5, %v3601_v24  ;;  %v1213_v4 = vadd.f32 1.0, %v3619_v16 }
 0x188   : > { %1997 = vpow2.f32 %v1394_v9  ;;  %v1988_v56 = vpop.eup %1987  ;;  %vm3627_vm8 = vcmp.lt.f32.partialorder %v1033_v31, 0.0004427343  ;;  %v1210_v7 = vmax.f32 %v3526_v55, 0.0  ;;  %v1211_v32 = vmul.f32 %v1179_v36, %v3526_v55 }
 0x189   : > { %v1456_v14 = vmul.f32 1.442695, %v1455_v42  ;;  %v3633_v35 = vpop.eup %1989  ;;  %v1029_v28 = vmul.f32 0.6931472, %v1988_v56  ;;  %1999 = vlog2.f32 %v1213_v4  ;;  %v1241_v11 = vunpack.c.l.bf16 %v1240_v2 }
 0x18a   : > { %v1303_v39 = vunpack.c.h.bf16 %v1240_v2  ;;  %v1094_v18 = vmul.f32 %v3578_v23, %v1093_v5  ;;  %v1216_v54 = vmul.f32 -0.5, %v3619_v16  ;;  %v1275_v61 = vadd.f32 1.0, %v3633_v35 }
 0x18b   : > { %2001 = vpow2.f32 %v1456_v14  ;;  %v1992_v49 = vpop.eup %1991  ;;  %v1035_v43 = vsel %vm3627_vm8, %v1032_v33, %v1029_v28  ;;  %vm3640_vm9 = vcmp.lt.f32.partialorder %v1095_v20, 0.0004427343  ;;  %v1155_v15 = vadd.f32 1.0, %v1154_v13 }
 0x18c   : > { %v1272_v19 = vmax.f32 %v3535_v0, 0.0  ;;  %v3645_v30 = vpop.eup %1993  ;;  %v1036_v44 = vadd.f32 %v1035_v43, %v1026_v34  ;;  %v1091_v23 = vmul.f32 0.6931472, %v1992_v49  ;;  %v1157_v51 = vand.u32 2147483647, %v3601_v24 }
 0x18d   : > { %2003 = vlog2.f32 %v1275_v61  ;;  %v1273_v46 = vmul.f32 %v1241_v11, %v3535_v0  ;;  %v1278_v40 = vmul.f32 -0.5, %v3633_v35  ;;  %v1334_v38 = vmax.f32 %v3552_v1, 0.0 }
 0x18e   : > { %v1337_v45 = vadd.f32 1.0, %v3645_v30  ;;  %v1097_v58 = vsel %vm3640_vm9, %v1094_v18, %v1091_v23  ;;  %v1217_v8 = vadd.f32 1.0, %v1216_v54  ;;  %v1219_v60 = vand.u32 2147483647, %v3619_v16 }
 0x18f   : > { %v1335_v31 = vmul.f32 %v1303_v39, %v3552_v1  ;;  %v1098_v50 = vadd.f32 %v1097_v58, %v1088_v41  ;;  %v1156_v36 = vmul.f32 %v3601_v24, %v1155_v15  ;;  %v1340_v0 = vmul.f32 -0.5, %v3645_v30 }
 0x190   : > { %2005 = vlog2.f32 %v1337_v45  ;;  %v942_v34 = vsel %vm3614_vm7, %v3584_v47, %v3610_v26  ;;  %v1037_v42 = vmul.f32 %v1036_v44, %v3047_v53  ;;  %v1150_v5 = vsub.f32 %v1148_v27, %v1149_v6 }
 0x191   : > { %v1996_v9 = vpop.eup %1995  ;;  %vm3663_vm10 = vcmp.lt.f32.partialorder %v1157_v51, 0.0004427343  ;;  %v1099_v24 = vmul.f32 %v1098_v50, %v3055_v63  ;;  %v1212_v2 = vsub.f32 %v1210_v7, %v1211_v32  ;;  %v1279_v33 = vadd.f32 1.0, %v1278_v40  ;;  %v1364_v63 = vld [vmem:[%s2551_s27 + $0x38] sm:$0xff]  }
 0x192   : > { %v1998_v1 = vpop.eup %1997  ;;  %v1153_v41 = vmul.f32 0.6931472, %v1996_v9  ;;  %v1218_v13 = vmul.f32 %v3619_v16, %v1217_v8  ;;  %v1274_v4 = vsub.f32 %v1272_v19, %v1273_v46  ;;  %v1281_v10 = vand.u32 2147483647, %v3633_v35 }
 0x193   : > { %v1399_v47 = vadd.f32 1.0, %v1998_v1  ;;  %v2000_v26 = vpop.eup %1999  ;;  %vm3672_vm11 = vcmp.lt.f32.partialorder %v1219_v60, 0.0004427343  ;;  %v1336_v6 = vsub.f32 %v1334_v38, %v1335_v31  ;;  %v1341_v56 = vadd.f32 1.0, %v1340_v0  ;;  %v3915_v31 = vld [vmem:[#allocation23_spill] sm:$0xff] }
 0x194   : > { %v1159_v53 = vsel %vm3663_vm10, %v1156_v36, %v1153_v41  ;;  %v1109_v7 = vadd.f32 %v1099_v24, %v1037_v42  ;;  %v1215_v14 = vmul.f32 0.6931472, %v2000_v26  ;;  %v1280_v16 = vmul.f32 %v3633_v35, %v1279_v33 }
 0x195   : > { %v2002_v62 = vpop.eup %2001  ;;  %v1160_v32 = vadd.f32 %v1159_v53, %v1150_v5  ;;  %2007 = vlog2.f32 %v1399_v47  ;;  %v1343_v28 = vand.u32 2147483647, %v3645_v30  ;;  %v1402_v11 = vmul.f32 -0.5, %v1998_v1  ;;  %v1736_v53 = vld [vmem:[%s2549_s17 + $0x38] sm:$0xff] }
 0x196   : > { %v1461_v39 = vadd.f32 1.0, %v2002_v62  ;;  %v1221_v61 = vsel %vm3672_vm11, %v1218_v13, %v1215_v14  ;;  %vm1282_vm12 = vcmp.lt.f32.partialorder %v1281_v10, 0.0004427343  ;;  %v1365_v49 = vunpack.c.l.bf16 %v1364_v63 }
 0x197   : > { %v2004_v18 = vpop.eup %2003  ;;  %v1161_v54 = vmul.f32 %v1160_v32, %v3103_v21  ;;  %v1222_v43 = vadd.f32 %v1221_v61, %v1212_v2  ;;  %v1396_v15 = vmax.f32 %v3576_v59, 0.0  ;;  %v1342_v35 = vmul.f32 %v3645_v30, %v1341_v56 }
 0x198   : > { %v1277_v55 = vmul.f32 0.6931472, %v2004_v18  ;;  %2009 = vlog2.f32 %v1461_v39  ;;  %v1427_v44 = vunpack.c.h.bf16 %v1364_v63  ;;  %v1464_v23 = vmul.f32 -0.5, %v2002_v62 }
 0x199   : > { %v1171_v19 = vadd.f32 %v1161_v54, %v1109_v7  ;;  %v1223_v46 = vmul.f32 %v1222_v43, %v3116_v3  ;;  %vm1344_vm13 = vcmp.lt.f32.partialorder %v1343_v28, 0.0004427343  ;;  %v1403_v21 = vadd.f32 1.0, %v1402_v11 }
 0x19a   : > { %v2006_v51 = vpop.eup %2005  ;;  %v1283_v40 = vsel %vm1282_vm12, %v1280_v16, %v1277_v55  ;;  %v1397_v58 = vmul.f32 %v1365_v49, %v3576_v59  ;;  %v1405_v8 = vand.u32 2147483647, %v1998_v1  ;;  %v830_v60 = vadd.f32 %v3604_v17, %v3580_v25 }
 0x19b   : > { %v1284_v38 = vadd.f32 %v1283_v40, %v1274_v4  ;;  %v1339_v45 = vmul.f32 0.6931472, %v2006_v51  ;;  %v882_v50 = vmul.f32 %v3607_v37, %v3915_v31  ;;  %v943_v30 = vadd.f32 %v942_v34, %v3548_v57  ;;  %v3916_v37 = vld [vmem:[#allocation24_spill] sm:$0xff] }
 0x19c   : > { %v1233_v36 = vadd.f32 %v1223_v46, %v1171_v19  ;;  %v1458_v9 = vmax.f32 %v3592_v48, 0.0  ;;  %v1465_v42 = vadd.f32 1.0, %v1464_v23  ;;  %v1404_v20 = vmul.f32 %v1998_v1, %v1403_v21 }
 0x19d   : > { %v1285_v0 = vmul.f32 %v1284_v38, %v3153_v22  ;;  %v1345_v3 = vsel %vm1344_vm13, %v1342_v35, %v1339_v45  ;;  %v1459_v59 = vmul.f32 %v1427_v44, %v3592_v48  ;;  %v1467_v24 = vand.u32 2147483647, %v2002_v62 }
 0x19e   : > { %v1346_v5 = vadd.f32 %v1345_v3, %v1336_v6  ;;  %v1398_v25 = vsub.f32 %v1396_v15, %v1397_v58  ;;  %vm1406_vm14 = vcmp.lt.f32.partialorder %v1405_v8, 0.0004427343  ;;  %v892_v17 = vadd.f32 %v882_v50, %v830_v60 }
 0x19f   : > { %v2008_v41 = vpop.eup %2007  ;;  %v1295_v2 = vadd.f32 %v1285_v0, %v1233_v36  ;;  %v944_v57 = vmul.f32 %v943_v30, %v3916_v37  ;;  %v1466_v33 = vmul.f32 %v2002_v62, %v1465_v42  ;;  %v1460_v10 = vsub.f32 %v1458_v9, %v1459_v59 }
 0x1a0   : > { %v1347_v34 = vmul.f32 %v1346_v5, %v3177_v12  ;;  %v1401_v22 = vmul.f32 0.6931472, %v2008_v41  ;;  %vm1468_vm15 = vcmp.lt.f32.partialorder %v1467_v24, 0.0004427343 }
 0x1a1   : > { %v954_v26 = vadd.f32 %v944_v57, %v892_v17 }
 0x1a2   : > { %v2010_v13 = vpop.eup %2009  ;;  %v1407_v4 = vsel %vm1406_vm14, %v1404_v20, %v1401_v22  ;;  %v1357_v1 = vadd.f32 %v1347_v34, %v1295_v2 }
 0x1a3   : > { %v1408_v48 = vadd.f32 %v1407_v4, %v1398_v25  ;;  %v1463_v47 = vmul.f32 0.6931472, %v2010_v13  ;;  %v984_v7 = vadd.f32 %v1736_v53, %v954_v26 }
 0x1a5   : > { %v1409_v27 = vmul.f32 %v1408_v48, %v3204_v52  ;;  %v1469_v6 = vsel %vm1468_vm15, %v1466_v33, %v1463_v47 }
 0x1a6   : > { %v1470_v56 = vadd.f32 %v1469_v6, %v1460_v10 }
 0x1a7   : > { %v1419_v63 = vadd.f32 %v1409_v27, %v1357_v1 }
 0x1a8   : > { %v1471_v12 = vmul.f32 %v1470_v56, %v3213_v29 }
 0x1aa   : > { %v1481_v32 = vadd.f32 %v1471_v12, %v1419_v63 }
 0x1ac   : > { %v1504_v62 = vadd.f32 %v1481_v32, %v984_v7 }
 0x1ae   : > { %1751 = vst [vmem:[%s2549_s17 + $0x38] sm:$0xff] %v1504_v62 }
 0x1af PF: > { %s24_s25 = sadd.s32 1, %s2235_s25   ;;  %s3917_s21 = sld [smem:[#allocation17_spill]] }
 0x1b0   : > { %p21_p11 = scmp.ge.s32.totalorder %s24_s25, 6   ;;  %s3918_s22 = sld [smem:[#allocation13_spill]] }
 0x1b1   : > { %s3919_s7 = sld [smem:[#allocation14_spill]]  ;;  %s3920_s23 = sld [smem:[#allocation15_spill]] }
 0x1b2   : > { %s3921_s24 = sld [smem:[#allocation16_spill]]  ;;  %s3922_s18 = smov %s2211_s19 }
 0x1b3   : > { %s3923_s19 = smov %s2215_s20  ;;  %23 = sbr.rel (!%p21_p11) target bundleno = 13 (0xd), region = 139 }
 0x1b5   : > { %s3924_s20 = smov %s3917_s21 }
 0x1b6   : > { %s3925_s21 = smov %s3918_s22 }
 0x1b7   : > { %s3926_s22 = smov %s3919_s7 }
 0x1ba   :  { %1528 = vsyncpa [#allocation3], 1 }
 0x1bb   :  { %1530 = vsyncpa [#allocation3 + $0x1], 1 }
 0x1bc   :  { %1531 = vsyncpa [#allocation5], 1 }
 0x1bd   :  { %1533 = vsyncpa [#allocation5 + $0x1], 1 }
 0x1be   :  { %1534 = vsyncpa [#allocation8], 1 }
 0x1bf   :  { %1536 = vsyncpa [#allocation8 + $0x1], 1 }

</bundles_post_ra>
